<compile_context>
chip_gen: v7x
topology: tpu7x:2x2x1
jax: 0.10.0
libtpu: 0.0.40
codegen_flags: <defaults>
</compile_context>

<pallas_src>
import functools

import jax
import jax.numpy as jnp
from jax.experimental import pallas as pl
from jax.experimental.pallas import tpu as pltpu

VMEM_LIMIT = 32 * 1024 * 1024  # fits v5e/v6e/v7x scoped-VMEM budgets with headroom


def _vmem_spec():
    return pl.BlockSpec(memory_space=pltpu.MemorySpace.VMEM)


def _round_up(x, m):
    return (x + m - 1) // m * m


# ---------------------------------------------------------------------------
# Kernels
# ---------------------------------------------------------------------------
def conv_bn_relu_pool_kernel(p_ref, w_ref, b_ref, o_ref):
    # p_ref: (4, TM, 9*Cin) bf16 -- one im2col slab per 2x2 pool phase
    # w_ref: (9*Cin, Cout)   bf16 -- BN scale already folded in
    # b_ref: (1, Cout)       f32  -- folded BN bias
    # o_ref: (TM, Cout)      bf16 -- pooled + ReLU'd output rows
    w = w_ref[...]
    a0 = jnp.dot(p_ref[0], w, preferred_element_type=jnp.float32)
    a1 = jnp.dot(p_ref[1], w, preferred_element_type=jnp.float32)
    a2 = jnp.dot(p_ref[2], w, preferred_element_type=jnp.float32)
    a3 = jnp.dot(p_ref[3], w, preferred_element_type=jnp.float32)
    m = jnp.maximum(jnp.maximum(a0, a1), jnp.maximum(a2, a3))   # maxpool 2x2
    o_ref[...] = jnp.maximum(m + b_ref[...], 0.0).astype(o_ref.dtype)


def tail_kernel(p_ref, pool_ref, w4_ref, b4_ref, w1_ref, b1_ref,
                w2_ref, b2_ref, o_ref):
    # p_ref: (M4, 9*256) bf16 im2col for conv4;  pool_ref: (N, M4) f32 avg-pool matrix
    # w4: (9*256, 512) bf16, b4: (1, 512) f32
    # w1: (512, 256)   bf16, b1: (1, 256) f32
    # w2: (256, 2F)    bf16, b2: (1, 2F)  f32
    # o_ref: (N, 2F) f32
    f = jnp.dot(p_ref[...], w4_ref[...], preferred_element_type=jnp.float32)
    f = jnp.maximum(f + b4_ref[...], 0.0)                       # conv4 + BN + ReLU
    feat = jnp.dot(pool_ref[...], f,
                   preferred_element_type=jnp.float32)          # AdaptiveAvgPool(1)
    h = jnp.dot(feat.astype(jnp.bfloat16), w1_ref[...],
                preferred_element_type=jnp.float32)
    h = jnp.maximum(h + b1_ref[...], 0.0)                       # fc1 + ReLU
    o_ref[...] = (jnp.dot(h.astype(jnp.bfloat16), w2_ref[...],
                          preferred_element_type=jnp.float32)
                  + b2_ref[...])                                # fc2


# ---------------------------------------------------------------------------
# Wrappers (glue: padding, im2col, phase stacking)
# ---------------------------------------------------------------------------
def _im2col(x_nhwc):
    # (N, H, W, C) -> (N, H, W, 9*C), tap order (dy, dx) row-major, channels minor
    n, h, w, c = x_nhwc.shape
    xp = jnp.pad(x_nhwc, ((0, 0), (1, 1), (1, 1), (0, 0)))
    return jnp.concatenate(
        [xp[:, dy:dy + h, dx:dx + w, :] for dy in range(3) for dx in range(3)],
        axis=-1)


def conv_bn_relu_pool(x_nhwc, w_kc, bias, *, tile_m=512):
    n, h, wd, _ = x_nhwc.shape
    k, cout = w_kc.shape
    ho, wo = h // 2, wd // 2
    mp = n * ho * wo

    cols = _im2col(x_nhwc)                                   # (N, H, W, 9*Cin)
    # Stack the four 2x2 pooling phases: (4, N*Ho*Wo, 9*Cin)
    phases = cols.reshape(n, ho, 2, wo, 2, k)
    phases = jnp.transpose(phases, (2, 4, 0, 1, 3, 5)).reshape(4, mp, k)
    phases = phases.astype(jnp.bfloat16)

    tm = min(tile_m, _round_up(mp, 8))
    mp_pad = _round_up(mp, tm)
    if mp_pad != mp:
        phases = jnp.pad(phases, ((0, 0), (0, mp_pad - mp), (0, 0)))

    out = pl.pallas_call(
        conv_bn_relu_pool_kernel,
        out_shape=jax.ShapeDtypeStruct((mp_pad, cout), jnp.bfloat16),
        grid=(mp_pad // tm,),
        in_specs=[
            pl.BlockSpec((4, tm, k), lambda i: (0, i, 0)),
            pl.BlockSpec((k, cout), lambda i: (0, 0)),    # resident weights
            pl.BlockSpec((1, cout), lambda i: (0, 0)),    # resident bias
        ],
        out_specs=pl.BlockSpec((tm, cout), lambda i: (i, 0)),
        compiler_params=pltpu.CompilerParams(
            dimension_semantics=("parallel",),
            vmem_limit_bytes=VMEM_LIMIT),
    )(phases, w_kc, bias.reshape(1, cout))
    return out[:mp].reshape(n, ho, wo, cout)


def tail(x_nhwc, w4, b4, w1, b1, w2, b2, num_f):
    # conv4 + BN + ReLU + AdaptiveAvgPool(1) + fc1/ReLU + fc2, one kernel.
    n, h, wd, _ = x_nhwc.shape
    k4, _ = w4.shape
    m4 = n * h * wd
    cols = _im2col(x_nhwc).reshape(m4, k4).astype(jnp.bfloat16)
    # Per-batch averaging matrix: row b has 1/(H*W) over batch b's rows.
    pool_mat = (jnp.repeat(jnp.eye(n, dtype=jnp.float32), h * wd, axis=1)
                / float(h * wd))                              # (N, M4)
    out = pl.pallas_call(
        tail_kernel,
        out_shape=jax.ShapeDtypeStruct((n, num_f * 2), jnp.float32),
        in_specs=[_vmem_spec()] * 8,
        out_specs=_vmem_spec(),
        compiler_params=pltpu.CompilerParams(vmem_limit_bytes=VMEM_LIMIT),
    )(cols, pool_mat, w4, b4.reshape(1, -1), w1, b1.reshape(1, -1),
      w2, b2.reshape(1, -1))
    return out.reshape(n, num_f, 2)


def localization_network(x_nchw, params, num_f):
    # PyTorch NCHW input -> NHWC bf16 for the kernels.
    x = jnp.transpose(x_nchw, (0, 2, 3, 1)).astype(jnp.bfloat16)
    for i in range(3):                       # conv1..3 each followed by maxpool
        w, b = params["conv"][i]
        x = conv_bn_relu_pool(x, w, b)
    w4, b4 = params["conv"][3]               # conv4 (no pool) fused into the tail
    return tail(x, w4, b4, params["w1"], params["b1"],
                params["w2"], params["b2"], num_f)


# ---------------------------------------------------------------------------
# Deterministic parameter init (synthetic; mirrors module __init__ shapes)
# ---------------------------------------------------------------------------
def init_params(key, num_f, in_ch):
    # TODO(synk): BatchNorm is folded in eval mode with synthetic running
    # statistics (scale folded into weights); PyTorch train-mode batch stats
    # have no static-kernel equivalent here.
    chans = [in_ch, 64, 128, 256, 512]
    params = {"conv": []}
    for i in range(4):
        cin, cout = chans[i], chans[i + 1]
        key, kw, kg, kb, km, kv = jax.random.split(key, 6)
        w = jax.random.normal(kw, (3, 3, cin, cout), jnp.float32)
        w = w * (2.0 / (9 * cin)) ** 0.5
        gamma = 1.0 + 0.1 * jax.random.normal(kg, (cout,), jnp.float32)
        beta = 0.1 * jax.random.normal(kb, (cout,), jnp.float32)
        mean = 0.1 * jax.random.normal(km, (cout,), jnp.float32)
        var = 1.0 + 0.1 * jax.random.uniform(kv, (cout,), jnp.float32)
        scale = gamma / jnp.sqrt(var + 1e-5)
        bias = beta - mean * scale
        w_folded = (w * scale).reshape(9 * cin, cout).astype(jnp.bfloat16)
        params["conv"].append((w_folded, bias.astype(jnp.float32)))

    key, k1, kb1 = jax.random.split(key, 3)
    params["w1"] = (jax.random.normal(k1, (512, 256), jnp.float32)
                    * (1.0 / 512) ** 0.5).astype(jnp.bfloat16)
    params["b1"] = 0.01 * jax.random.normal(kb1, (256,), jnp.float32)

    # fc2: zero weight, bias = TPS fiducial control points (as in the module).
    params["w2"] = jnp.zeros((256, num_f * 2), jnp.bfloat16)
    k = num_f // 2
    cx = jnp.linspace(-1.0, 1.0, k)
    cy_top = jnp.linspace(0.0, -1.0, k)
    cy_bot = jnp.linspace(1.0, 0.0, k)
    top = jnp.stack([cx, cy_top], axis=1)
    bot = jnp.stack([cx, cy_bot], axis=1)
    params["b2"] = jnp.concatenate([top, bot], axis=0).reshape(-1).astype(jnp.float32)
    return params


if __name__ == "__main__":
    NUM_F = 20          # number of fiducial points
    IN_CH = 4
    key = jax.random.PRNGKey(0)
    kx, kp = jax.random.split(key)

    x = jax.random.normal(kx, (2, IN_CH, 16, 16), jnp.float32)   # NCHW input
    params = init_params(kp, NUM_F, IN_CH)

    fwd = jax.jit(functools.partial(localization_network, num_f=NUM_F))
    out = fwd(x, params)
    out = jax.block_until_ready(out)

    assert out.shape == (2, NUM_F, 2), out.shape
    # With fc2.weight == 0 the output equals the fiducial-point bias exactly.
    expected = params["b2"].reshape(1, NUM_F, 2)
    assert jnp.allclose(out, jnp.broadcast_to(expected, out.shape), atol=1e-5)
    print("KERNEL_OK")
</pallas_src>

<mosaic_0001>
module attributes {stable_mosaic.version = 11 : i64} {
  func.func @conv_bn_relu_pool_kernel(%arg0: i32, %arg1: memref<4x128x36xbf16, #tpu.memory_space<vmem>>, %arg2: memref<36x64xbf16, #tpu.memory_space<vmem>>, %arg3: memref<1x64xf32, #tpu.memory_space<vmem>>, %arg4: memref<128x64xbf16, #tpu.memory_space<vmem>>) attributes {dimension_semantics = [#tpu.dimension_semantics<parallel>], iteration_bounds = array<i64: 1>, scalar_prefetch = 0 : i64, scratch_operands = 0 : i64, tpu.core_type = #tpu.core_type<tc>, window_params = [{transform_indices = @transform_0, window_bounds = array<i64: 4, 128, 36>}, {pipeline_mode = #tpu.pipeline_mode<synchronous>, transform_indices = @transform_1, window_bounds = array<i64: 36, 64>}, {pipeline_mode = #tpu.pipeline_mode<synchronous>, transform_indices = @transform_2, window_bounds = array<i64: 1, 64>}, {transform_indices = @transform_3, window_bounds = array<i64: 128, 64>}]} {
    %c0 = arith.constant 0 : index
    %c0_0 = arith.constant 0 : index
    %0 = vector.load %arg2[%c0, %c0_0] : memref<36x64xbf16, #tpu.memory_space<vmem>>, vector<36x64xbf16>
    %c0_1 = arith.constant 0 : index
    %c0_2 = arith.constant 0 : index
    %c0_3 = arith.constant 0 : index
    %1 = vector.load %arg1[%c0_1, %c0_2, %c0_3] : memref<4x128x36xbf16, #tpu.memory_space<vmem>>, vector<1x128x36xbf16>
    %2 = vector.shape_cast %1 : vector<1x128x36xbf16> to vector<128x36xbf16>
    %cst = arith.constant dense<0.000000e+00> : vector<128x64xf32>
    %3 = tpu.matmul %2, %0, %cst {dimension_numbers = #tpu.dot_dimension_numbers<[1], [0], [0], [1], [0, 0, 1, 1], [], []>} : vector<128x36xbf16>, vector<36x64xbf16>, vector<128x64xf32> -> vector<128x64xf32>
    %c1 = arith.constant 1 : index
    %c0_4 = arith.constant 0 : index
    %c0_5 = arith.constant 0 : index
    %4 = vector.load %arg1[%c1, %c0_4, %c0_5] : memref<4x128x36xbf16, #tpu.memory_space<vmem>>, vector<1x128x36xbf16>
    %5 = vector.shape_cast %4 : vector<1x128x36xbf16> to vector<128x36xbf16>
    %cst_6 = arith.constant dense<0.000000e+00> : vector<128x64xf32>
    %6 = tpu.matmul %5, %0, %cst_6 {dimension_numbers = #tpu.dot_dimension_numbers<[1], [0], [0], [1], [0, 0, 1, 1], [], []>} : vector<128x36xbf16>, vector<36x64xbf16>, vector<128x64xf32> -> vector<128x64xf32>
    %c2 = arith.constant 2 : index
    %c0_7 = arith.constant 0 : index
    %c0_8 = arith.constant 0 : index
    %7 = vector.load %arg1[%c2, %c0_7, %c0_8] : memref<4x128x36xbf16, #tpu.memory_space<vmem>>, vector<1x128x36xbf16>
    %8 = vector.shape_cast %7 : vector<1x128x36xbf16> to vector<128x36xbf16>
    %cst_9 = arith.constant dense<0.000000e+00> : vector<128x64xf32>
    %9 = tpu.matmul %8, %0, %cst_9 {dimension_numbers = #tpu.dot_dimension_numbers<[1], [0], [0], [1], [0, 0, 1, 1], [], []>} : vector<128x36xbf16>, vector<36x64xbf16>, vector<128x64xf32> -> vector<128x64xf32>
    %c3 = arith.constant 3 : index
    %c0_10 = arith.constant 0 : index
    %c0_11 = arith.constant 0 : index
    %10 = vector.load %arg1[%c3, %c0_10, %c0_11] : memref<4x128x36xbf16, #tpu.memory_space<vmem>>, vector<1x128x36xbf16>
    %11 = vector.shape_cast %10 : vector<1x128x36xbf16> to vector<128x36xbf16>
    %cst_12 = arith.constant dense<0.000000e+00> : vector<128x64xf32>
    %12 = tpu.matmul %11, %0, %cst_12 {dimension_numbers = #tpu.dot_dimension_numbers<[1], [0], [0], [1], [0, 0, 1, 1], [], []>} : vector<128x36xbf16>, vector<36x64xbf16>, vector<128x64xf32> -> vector<128x64xf32>
    %13 = arith.maximumf %3, %6 : vector<128x64xf32>
    %14 = arith.maximumf %9, %12 : vector<128x64xf32>
    %15 = arith.maximumf %13, %14 : vector<128x64xf32>
    %c0_13 = arith.constant 0 : index
    %c0_14 = arith.constant 0 : index
    %16 = vector.load %arg3[%c0_13, %c0_14] : memref<1x64xf32, #tpu.memory_space<vmem>>, vector<1x64xf32>
    %17 = vector.broadcast %16 : vector<1x64xf32> to vector<128x64xf32>
    %18 = arith.addf %15, %17 : vector<128x64xf32>
    %cst_15 = arith.constant 0.000000e+00 : f32
    %19 = vector.broadcast %cst_15 : f32 to vector<128x64xf32>
    %20 = arith.maximumf %18, %19 : vector<128x64xf32>
    %21 = arith.truncf %20 : vector<128x64xf32> to vector<128x64xbf16>
    %c0_16 = arith.constant 0 : index
    %c0_17 = arith.constant 0 : index
    %22 = vector.load %arg4[%c0_16, %c0_17] : memref<128x64xbf16, #tpu.memory_space<vmem>>, vector<128x64xbf16>
    tpu.vector_store %arg4[%c0_16, %c0_17], %21 {strides = array<i32>} : memref<128x64xbf16, #tpu.memory_space<vmem>>, vector<128x64xbf16>,
    return
  }
  func.func @transform_0(%arg0: i32) -> (i32, i32, i32) {
    %c0_i32 = arith.constant 0 : i32
    %c0_i32_0 = arith.constant 0 : i32
    %c0_i32_1 = arith.constant 0 : i32
    return %c0_i32, %arg0, %c0_i32_0 : i32, i32, i32
  }
  func.func @transform_1(%arg0: i32) -> (i32, i32) {
    %c0_i32 = arith.constant 0 : i32
    %c0_i32_0 = arith.constant 0 : i32
    %c0_i32_1 = arith.constant 0 : i32
    return %c0_i32, %c0_i32_0 : i32, i32
  }
  func.func @transform_2(%arg0: i32) -> (i32, i32) {
    %c0_i32 = arith.constant 0 : i32
    %c0_i32_0 = arith.constant 0 : i32
    %c0_i32_1 = arith.constant 0 : i32
    return %c0_i32, %c0_i32_0 : i32, i32
  }
  func.func @transform_3(%arg0: i32) -> (i32, i32) {
    %c0_i32 = arith.constant 0 : i32
    %c0_i32_0 = arith.constant 0 : i32
    return %arg0, %c0_i32 : i32, i32
  }
}

module attributes {stable_mosaic.version = 11 : i64} {
  func.func @conv_bn_relu_pool_kernel(%arg0: i32, %arg1: memref<4x32x576xbf16, #tpu.memory_space<vmem>>, %arg2: memref<576x128xbf16, #tpu.memory_space<vmem>>, %arg3: memref<1x128xf32, #tpu.memory_space<vmem>>, %arg4: memref<32x128xbf16, #tpu.memory_space<vmem>>) attributes {dimension_semantics = [#tpu.dimension_semantics<parallel>], iteration_bounds = array<i64: 1>, scalar_prefetch = 0 : i64, scratch_operands = 0 : i64, tpu.core_type = #tpu.core_type<tc>, window_params = [{transform_indices = @transform_0, window_bounds = array<i64: 4, 32, 576>}, {pipeline_mode = #tpu.pipeline_mode<synchronous>, transform_indices = @transform_1, window_bounds = array<i64: 576, 128>}, {pipeline_mode = #tpu.pipeline_mode<synchronous>, transform_indices = @transform_2, window_bounds = array<i64: 1, 128>}, {transform_indices = @transform_3, window_bounds = array<i64: 32, 128>}]} {
    %c0 = arith.constant 0 : index
    %c0_0 = arith.constant 0 : index
    %0 = vector.load %arg2[%c0, %c0_0] : memref<576x128xbf16, #tpu.memory_space<vmem>>, vector<576x128xbf16>
    %c0_1 = arith.constant 0 : index
    %c0_2 = arith.constant 0 : index
    %c0_3 = arith.constant 0 : index
    %1 = vector.load %arg1[%c0_1, %c0_2, %c0_3] : memref<4x32x576xbf16, #tpu.memory_space<vmem>>, vector<1x32x576xbf16>
    %2 = vector.shape_cast %1 : vector<1x32x576xbf16> to vector<32x576xbf16>
    %cst = arith.constant dense<0.000000e+00> : vector<32x128xf32>
    %3 = tpu.matmul %2, %0, %cst {dimension_numbers = #tpu.dot_dimension_numbers<[1], [0], [0], [1], [0, 0, 1, 1], [], []>} : vector<32x576xbf16>, vector<576x128xbf16>, vector<32x128xf32> -> vector<32x128xf32>
    %c1 = arith.constant 1 : index
    %c0_4 = arith.constant 0 : index
    %c0_5 = arith.constant 0 : index
    %4 = vector.load %arg1[%c1, %c0_4, %c0_5] : memref<4x32x576xbf16, #tpu.memory_space<vmem>>, vector<1x32x576xbf16>
    %5 = vector.shape_cast %4 : vector<1x32x576xbf16> to vector<32x576xbf16>
    %cst_6 = arith.constant dense<0.000000e+00> : vector<32x128xf32>
    %6 = tpu.matmul %5, %0, %cst_6 {dimension_numbers = #tpu.dot_dimension_numbers<[1], [0], [0], [1], [0, 0, 1, 1], [], []>} : vector<32x576xbf16>, vector<576x128xbf16>, vector<32x128xf32> -> vector<32x128xf32>
    %c2 = arith.constant 2 : index
    %c0_7 = arith.constant 0 : index
    %c0_8 = arith.constant 0 : index
    %7 = vector.load %arg1[%c2, %c0_7, %c0_8] : memref<4x32x576xbf16, #tpu.memory_space<vmem>>, vector<1x32x576xbf16>
    %8 = vector.shape_cast %7 : vector<1x32x576xbf16> to vector<32x576xbf16>
    %cst_9 = arith.constant dense<0.000000e+00> : vector<32x128xf32>
    %9 = tpu.matmul %8, %0, %cst_9 {dimension_numbers = #tpu.dot_dimension_numbers<[1], [0], [0], [1], [0, 0, 1, 1], [], []>} : vector<32x576xbf16>, vector<576x128xbf16>, vector<32x128xf32> -> vector<32x128xf32>
    %c3 = arith.constant 3 : index
    %c0_10 = arith.constant 0 : index
    %c0_11 = arith.constant 0 : index
    %10 = vector.load %arg1[%c3, %c0_10, %c0_11] : memref<4x32x576xbf16, #tpu.memory_space<vmem>>, vector<1x32x576xbf16>
    %11 = vector.shape_cast %10 : vector<1x32x576xbf16> to vector<32x576xbf16>
    %cst_12 = arith.constant dense<0.000000e+00> : vector<32x128xf32>
    %12 = tpu.matmul %11, %0, %cst_12 {dimension_numbers = #tpu.dot_dimension_numbers<[1], [0], [0], [1], [0, 0, 1, 1], [], []>} : vector<32x576xbf16>, vector<576x128xbf16>, vector<32x128xf32> -> vector<32x128xf32>
    %13 = arith.maximumf %3, %6 : vector<32x128xf32>
    %14 = arith.maximumf %9, %12 : vector<32x128xf32>
    %15 = arith.maximumf %13, %14 : vector<32x128xf32>
    %c0_13 = arith.constant 0 : index
    %c0_14 = arith.constant 0 : index
    %16 = vector.load %arg3[%c0_13, %c0_14] : memref<1x128xf32, #tpu.memory_space<vmem>>, vector<1x128xf32>
    %17 = vector.broadcast %16 : vector<1x128xf32> to vector<32x128xf32>
    %18 = arith.addf %15, %17 : vector<32x128xf32>
    %cst_15 = arith.constant 0.000000e+00 : f32
    %19 = vector.broadcast %cst_15 : f32 to vector<32x128xf32>
    %20 = arith.maximumf %18, %19 : vector<32x128xf32>
    %21 = arith.truncf %20 : vector<32x128xf32> to vector<32x128xbf16>
    %c0_16 = arith.constant 0 : index
    %c0_17 = arith.constant 0 : index
    %22 = vector.load %arg4[%c0_16, %c0_17] : memref<32x128xbf16, #tpu.memory_space<vmem>>, vector<32x128xbf16>
    tpu.vector_store %arg4[%c0_16, %c0_17], %21 {strides = array<i32>} : memref<32x128xbf16, #tpu.memory_space<vmem>>, vector<32x128xbf16>,
    return
  }
  func.func @transform_0(%arg0: i32) -> (i32, i32, i32) {
    %c0_i32 = arith.constant 0 : i32
    %c0_i32_0 = arith.constant 0 : i32
    %c0_i32_1 = arith.constant 0 : i32
    return %c0_i32, %arg0, %c0_i32_0 : i32, i32, i32
  }
  func.func @transform_1(%arg0: i32) -> (i32, i32) {
    %c0_i32 = arith.constant 0 : i32
    %c0_i32_0 = arith.constant 0 : i32
    %c0_i32_1 = arith.constant 0 : i32
    return %c0_i32, %c0_i32_0 : i32, i32
  }
  func.func @transform_2(%arg0: i32) -> (i32, i32) {
    %c0_i32 = arith.constant 0 : i32
    %c0_i32_0 = arith.constant 0 : i32
    %c0_i32_1 = arith.constant 0 : i32
    return %c0_i32, %c0_i32_0 : i32, i32
  }
  func.func @transform_3(%arg0: i32) -> (i32, i32) {
    %c0_i32 = arith.constant 0 : i32
    %c0_i32_0 = arith.constant 0 : i32
    return %arg0, %c0_i32 : i32, i32
  }
}

module attributes {stable_mosaic.version = 11 : i64} {
  func.func @conv_bn_relu_pool_kernel(%arg0: i32, %arg1: memref<4x8x1152xbf16, #tpu.memory_space<vmem>>, %arg2: memref<1152x256xbf16, #tpu.memory_space<vmem>>, %arg3: memref<1x256xf32, #tpu.memory_space<vmem>>, %arg4: memref<8x256xbf16, #tpu.memory_space<vmem>>) attributes {dimension_semantics = [#tpu.dimension_semantics<parallel>], iteration_bounds = array<i64: 1>, scalar_prefetch = 0 : i64, scratch_operands = 0 : i64, tpu.core_type = #tpu.core_type<tc>, window_params = [{transform_indices = @transform_0, window_bounds = array<i64: 4, 8, 1152>}, {pipeline_mode = #tpu.pipeline_mode<synchronous>, transform_indices = @transform_1, window_bounds = array<i64: 1152, 256>}, {pipeline_mode = #tpu.pipeline_mode<synchronous>, transform_indices = @transform_2, window_bounds = array<i64: 1, 256>}, {transform_indices = @transform_3, window_bounds = array<i64: 8, 256>}]} {
    %c0 = arith.constant 0 : index
    %c0_0 = arith.constant 0 : index
    %0 = vector.load %arg2[%c0, %c0_0] : memref<1152x256xbf16, #tpu.memory_space<vmem>>, vector<1152x256xbf16>
    %c0_1 = arith.constant 0 : index
    %c0_2 = arith.constant 0 : index
    %c0_3 = arith.constant 0 : index
    %1 = vector.load %arg1[%c0_1, %c0_2, %c0_3] : memref<4x8x1152xbf16, #tpu.memory_space<vmem>>, vector<1x8x1152xbf16>
    %2 = vector.shape_cast %1 : vector<1x8x1152xbf16> to vector<8x1152xbf16>
    %cst = arith.constant dense<0.000000e+00> : vector<8x256xf32>
    %3 = tpu.matmul %2, %0, %cst {dimension_numbers = #tpu.dot_dimension_numbers<[1], [0], [0], [1], [0, 0, 1, 1], [], []>} : vector<8x1152xbf16>, vector<1152x256xbf16>, vector<8x256xf32> -> vector<8x256xf32>
    %c1 = arith.constant 1 : index
    %c0_4 = arith.constant 0 : index
    %c0_5 = arith.constant 0 : index
    %4 = vector.load %arg1[%c1, %c0_4, %c0_5] : memref<4x8x1152xbf16, #tpu.memory_space<vmem>>, vector<1x8x1152xbf16>
    %5 = vector.shape_cast %4 : vector<1x8x1152xbf16> to vector<8x1152xbf16>
    %cst_6 = arith.constant dense<0.000000e+00> : vector<8x256xf32>
    %6 = tpu.matmul %5, %0, %cst_6 {dimension_numbers = #tpu.dot_dimension_numbers<[1], [0], [0], [1], [0, 0, 1, 1], [], []>} : vector<8x1152xbf16>, vector<1152x256xbf16>, vector<8x256xf32> -> vector<8x256xf32>
    %c2 = arith.constant 2 : index
    %c0_7 = arith.constant 0 : index
    %c0_8 = arith.constant 0 : index
    %7 = vector.load %arg1[%c2, %c0_7, %c0_8] : memref<4x8x1152xbf16, #tpu.memory_space<vmem>>, vector<1x8x1152xbf16>
    %8 = vector.shape_cast %7 : vector<1x8x1152xbf16> to vector<8x1152xbf16>
    %cst_9 = arith.constant dense<0.000000e+00> : vector<8x256xf32>
    %9 = tpu.matmul %8, %0, %cst_9 {dimension_numbers = #tpu.dot_dimension_numbers<[1], [0], [0], [1], [0, 0, 1, 1], [], []>} : vector<8x1152xbf16>, vector<1152x256xbf16>, vector<8x256xf32> -> vector<8x256xf32>
    %c3 = arith.constant 3 : index
    %c0_10 = arith.constant 0 : index
    %c0_11 = arith.constant 0 : index
    %10 = vector.load %arg1[%c3, %c0_10, %c0_11] : memref<4x8x1152xbf16, #tpu.memory_space<vmem>>, vector<1x8x1152xbf16>
    %11 = vector.shape_cast %10 : vector<1x8x1152xbf16> to vector<8x1152xbf16>
    %cst_12 = arith.constant dense<0.000000e+00> : vector<8x256xf32>
    %12 = tpu.matmul %11, %0, %cst_12 {dimension_numbers = #tpu.dot_dimension_numbers<[1], [0], [0], [1], [0, 0, 1, 1], [], []>} : vector<8x1152xbf16>, vector<1152x256xbf16>, vector<8x256xf32> -> vector<8x256xf32>
    %13 = arith.maximumf %3, %6 : vector<8x256xf32>
    %14 = arith.maximumf %9, %12 : vector<8x256xf32>
    %15 = arith.maximumf %13, %14 : vector<8x256xf32>
    %c0_13 = arith.constant 0 : index
    %c0_14 = arith.constant 0 : index
    %16 = vector.load %arg3[%c0_13, %c0_14] : memref<1x256xf32, #tpu.memory_space<vmem>>, vector<1x256xf32>
    %17 = vector.broadcast %16 : vector<1x256xf32> to vector<8x256xf32>
    %18 = arith.addf %15, %17 : vector<8x256xf32>
    %cst_15 = arith.constant 0.000000e+00 : f32
    %19 = vector.broadcast %cst_15 : f32 to vector<8x256xf32>
    %20 = arith.maximumf %18, %19 : vector<8x256xf32>
    %21 = arith.truncf %20 : vector<8x256xf32> to vector<8x256xbf16>
    %c0_16 = arith.constant 0 : index
    %c0_17 = arith.constant 0 : index
    %22 = vector.load %arg4[%c0_16, %c0_17] : memref<8x256xbf16, #tpu.memory_space<vmem>>, vector<8x256xbf16>
    tpu.vector_store %arg4[%c0_16, %c0_17], %21 {strides = array<i32>} : memref<8x256xbf16, #tpu.memory_space<vmem>>, vector<8x256xbf16>,
    return
  }
  func.func @transform_0(%arg0: i32) -> (i32, i32, i32) {
    %c0_i32 = arith.constant 0 : i32
    %c0_i32_0 = arith.constant 0 : i32
    %c0_i32_1 = arith.constant 0 : i32
    return %c0_i32, %arg0, %c0_i32_0 : i32, i32, i32
  }
  func.func @transform_1(%arg0: i32) -> (i32, i32) {
    %c0_i32 = arith.constant 0 : i32
    %c0_i32_0 = arith.constant 0 : i32
    %c0_i32_1 = arith.constant 0 : i32
    return %c0_i32, %c0_i32_0 : i32, i32
  }
  func.func @transform_2(%arg0: i32) -> (i32, i32) {
    %c0_i32 = arith.constant 0 : i32
    %c0_i32_0 = arith.constant 0 : i32
    %c0_i32_1 = arith.constant 0 : i32
    return %c0_i32, %c0_i32_0 : i32, i32
  }
  func.func @transform_3(%arg0: i32) -> (i32, i32) {
    %c0_i32 = arith.constant 0 : i32
    %c0_i32_0 = arith.constant 0 : i32
    return %arg0, %c0_i32 : i32, i32
  }
}

module attributes {stable_mosaic.version = 11 : i64} {
  func.func @tail_kernel(%arg0: memref<8x2304xbf16, #tpu.memory_space<vmem>>, %arg1: memref<2x8xf32, #tpu.memory_space<vmem>>, %arg2: memref<2304x512xbf16, #tpu.memory_space<vmem>>, %arg3: memref<1x512xf32, #tpu.memory_space<vmem>>, %arg4: memref<512x256xbf16, #tpu.memory_space<vmem>>, %arg5: memref<1x256xf32, #tpu.memory_space<vmem>>, %arg6: memref<256x40xbf16, #tpu.memory_space<vmem>>, %arg7: memref<1x40xf32, #tpu.memory_space<vmem>>, %arg8: memref<2x40xf32, #tpu.memory_space<vmem>>) attributes {dimension_semantics = [], scalar_prefetch = 0 : i64, scratch_operands = 0 : i64, tpu.core_type = #tpu.core_type<tc>} {
    %c0 = arith.constant 0 : index
    %c0_0 = arith.constant 0 : index
    %0 = vector.load %arg0[%c0, %c0_0] : memref<8x2304xbf16, #tpu.memory_space<vmem>>, vector<8x2304xbf16>
    %c0_1 = arith.constant 0 : index
    %c0_2 = arith.constant 0 : index
    %1 = vector.load %arg2[%c0_1, %c0_2] : memref<2304x512xbf16, #tpu.memory_space<vmem>>, vector<2304x512xbf16>
    %cst = arith.constant dense<0.000000e+00> : vector<8x512xf32>
    %2 = tpu.matmul %0, %1, %cst {dimension_numbers = #tpu.dot_dimension_numbers<[1], [0], [0], [1], [0, 0, 1, 1], [], []>} : vector<8x2304xbf16>, vector<2304x512xbf16>, vector<8x512xf32> -> vector<8x512xf32>
    %c0_3 = arith.constant 0 : index
    %c0_4 = arith.constant 0 : index
    %3 = vector.load %arg3[%c0_3, %c0_4] : memref<1x512xf32, #tpu.memory_space<vmem>>, vector<1x512xf32>
    %4 = vector.broadcast %3 : vector<1x512xf32> to vector<8x512xf32>
    %5 = arith.addf %2, %4 : vector<8x512xf32>
    %cst_5 = arith.constant 0.000000e+00 : f32
    %6 = vector.broadcast %cst_5 : f32 to vector<8x512xf32>
    %7 = arith.maximumf %5, %6 : vector<8x512xf32>
    %c0_6 = arith.constant 0 : index
    %c0_7 = arith.constant 0 : index
    %8 = vector.load %arg1[%c0_6, %c0_7] : memref<2x8xf32, #tpu.memory_space<vmem>>, vector<2x8xf32>
    %cst_8 = arith.constant dense<0.000000e+00> : vector<2x512xf32>
    %9 = tpu.matmul %8, %7, %cst_8 {dimension_numbers = #tpu.dot_dimension_numbers<[1], [0], [0], [1], [0, 0, 1, 1], [], []>} : vector<2x8xf32>, vector<8x512xf32>, vector<2x512xf32> -> vector<2x512xf32>
    %10 = arith.truncf %9 : vector<2x512xf32> to vector<2x512xbf16>
    %c0_9 = arith.constant 0 : index
    %c0_10 = arith.constant 0 : index
    %11 = vector.load %arg4[%c0_9, %c0_10] : memref<512x256xbf16, #tpu.memory_space<vmem>>, vector<512x256xbf16>
    %cst_11 = arith.constant dense<0.000000e+00> : vector<2x256xf32>
    %12 = tpu.matmul %10, %11, %cst_11 {dimension_numbers = #tpu.dot_dimension_numbers<[1], [0], [0], [1], [0, 0, 1, 1], [], []>} : vector<2x512xbf16>, vector<512x256xbf16>, vector<2x256xf32> -> vector<2x256xf32>
    %c0_12 = arith.constant 0 : index
    %c0_13 = arith.constant 0 : index
    %13 = vector.load %arg5[%c0_12, %c0_13] : memref<1x256xf32, #tpu.memory_space<vmem>>, vector<1x256xf32>
    %14 = vector.broadcast %13 : vector<1x256xf32> to vector<2x256xf32>
    %15 = arith.addf %12, %14 : vector<2x256xf32>
    %cst_14 = arith.constant 0.000000e+00 : f32
    %16 = vector.broadcast %cst_14 : f32 to vector<2x256xf32>
    %17 = arith.maximumf %15, %16 : vector<2x256xf32>
    %18 = arith.truncf %17 : vector<2x256xf32> to vector<2x256xbf16>
    %c0_15 = arith.constant 0 : index
    %c0_16 = arith.constant 0 : index
    %19 = vector.load %arg6[%c0_15, %c0_16] : memref<256x40xbf16, #tpu.memory_space<vmem>>, vector<256x40xbf16>
    %cst_17 = arith.constant dense<0.000000e+00> : vector<2x40xf32>
    %20 = tpu.matmul %18, %19, %cst_17 {dimension_numbers = #tpu.dot_dimension_numbers<[1], [0], [0], [1], [0, 0, 1, 1], [], []>} : vector<2x256xbf16>, vector<256x40xbf16>, vector<2x40xf32> -> vector<2x40xf32>
    %c0_18 = arith.constant 0 : index
    %c0_19 = arith.constant 0 : index
    %21 = vector.load %arg7[%c0_18, %c0_19] : memref<1x40xf32, #tpu.memory_space<vmem>>, vector<1x40xf32>
    %22 = vector.broadcast %21 : vector<1x40xf32> to vector<2x40xf32>
    %23 = arith.addf %20, %22 : vector<2x40xf32>
    %c0_20 = arith.constant 0 : index
    %c0_21 = arith.constant 0 : index
    %24 = vector.load %arg8[%c0_20, %c0_21] : memref<2x40xf32, #tpu.memory_space<vmem>>, vector<2x40xf32>
    tpu.vector_store %arg8[%c0_20, %c0_21], %23 {strides = array<i32>} : memref<2x40xf32, #tpu.memory_space<vmem>>, vector<2x40xf32>,
    return
  }
}

</mosaic_0001>

<bundles_post_ra>
// kernel: localization_network.4
= control target key start
LH: loop header
LB: loop body
LE: loop exit
PB: predicated region body
PF: predicated region fallthrough
CT: control target
= control target key end

     0   :  { %vm91_vm0 = vcmask 293888   ;;  %vm116_vm1 = vcmask 1041408   ;;  %vm902_vm2 = vcmask 519168   ;;  %s1597_s1 = inlined_call_operand.vmem [shape: bf16[36,64], index: 1, kind: input, shape index: {}]   ;;  %s1598_s0 = inlined_call_operand.vmem [shape: bf16[4,128,36], index: 0, kind: input, shape index: {}]   ;;  %s1599_s2 = inlined_call_operand.vmem [shape: f32[1,64], index: 2, kind: input, shape index: {}]   ;;  %s1600_s3 = inlined_call_operand.vmem [shape: bf16[128,64], index: 3, kind: output, shape index: {}]  }
   0x1   :  { %v1207_v0 = vld [vmem:[%s1597_s1] sm:$0xff]   ;;  %v1208_v1 = vld [vmem:[%s1597_s1 + $0x8] sm:$0xff]   ;;  %v1209_v2 = vld [vmem:[%s1597_s1 + $0x10] ss:$0 sps:$4 sm:$0x33]  }
   0x2   :  { %1115 = vmatprep.subr.bf16.mxu0 %v1207_v0  ;;  %1137 = vmatprep.subr.bf16.mxu1 %v1207_v0  ;;  %v1210_v3 = vld [vmem:[%s1598_s0] sm:$0xff]   ;;  %v118_v5 = vsel %vm116_vm1, %v1209_v2, 0  ;;  %v1212_v6 = vld [vmem:[%s1598_s0 + $0x8] sm:$0xff]   ;;  %v1214_v8 = vld [vmem:[%s1598_s0 + $0x10] sm:$0xff]  }
   0x3   :  { %1116 = vmatpush3.bf16.msra.mxu0 %v1207_v0  ;;  %1138 = vmatpush3.bf16.msra.mxu1 %v1207_v0  ;;  %v1211_v4 = vld [vmem:[%s1598_s0 + $0x40] sm:$0xff]   ;;  %v1213_v7 = vld [vmem:[%s1598_s0 + $0x48] sm:$0xff]   ;;  %v1215_v9 = vld [vmem:[%s1598_s0 + $0x50] sm:$0xff]  }
   0x4   :  { %1117 = vmatprep.subr.bf16.mxu0 %v1208_v1  ;;  %1139 = vmatprep.subr.bf16.mxu1 %v1208_v1  ;;  %v1216_v10 = vld [vmem:[%s1598_s0 + $0x18] sm:$0xff]   ;;  %v1218_v12 = vld [vmem:[%s1598_s0 + $0x20] sm:$0xff]   ;;  %v1220_v14 = vld [vmem:[%s1598_s0 + $0x28] sm:$0xff]  }
   0x5   :  { %1121 = vmatprep.mubr.msk.bf16.mxu0 %vm91_vm0, %v1210_v3  ;;  %1143 = vmatprep.mubr.msk.bf16.mxu1 %vm91_vm0, %v1211_v4  ;;  %v1217_v11 = vld [vmem:[%s1598_s0 + $0x58] sm:$0xff]   ;;  %v1219_v13 = vld [vmem:[%s1598_s0 + $0x60] sm:$0xff]   ;;  %v1221_v15 = vld [vmem:[%s1598_s0 + $0x68] sm:$0xff]  }
   0x6   :  { %v1222_v16 = vld [vmem:[%s1598_s0 + $0x30] sm:$0xff]   ;;  %v1224_v18 = vld [vmem:[%s1598_s0 + $0x38] sm:$0xff]   ;;  %v1226_v20 = vld [vmem:[%s1598_s0 + $0x80] sm:$0xff]  }
   0x7   :  { %1118 = vmatpush3.bf16.msra.mxu0 %v1208_v1  ;;  %1140 = vmatpush3.bf16.msra.mxu1 %v1208_v1  ;;  %v1223_v17 = vld [vmem:[%s1598_s0 + $0x70] sm:$0xff]   ;;  %v1225_v19 = vld [vmem:[%s1598_s0 + $0x78] sm:$0xff]   ;;  %v1227_v21 = vld [vmem:[%s1598_s0 + $0xc0] sm:$0xff]  }
   0x8   :  { %1203 = vmatprep.subr.msk.bf16.mxu0 %vm116_vm1, %v1209_v2  ;;  %1204 = vmatprep.subr.msk.bf16.mxu1 %vm116_vm1, %v1209_v2  ;;  %v1228_v22 = vld [vmem:[%s1598_s0 + $0x88] sm:$0xff]   ;;  %v1230_v24 = vld [vmem:[%s1598_s0 + $0x90] sm:$0xff]   ;;  %v1232_v26 = vld [vmem:[%s1598_s0 + $0x98] sm:$0xff]  }
   0x9   :  { %v1229_v23 = vld [vmem:[%s1598_s0 + $0xc8] sm:$0xff]   ;;  %v1231_v25 = vld [vmem:[%s1598_s0 + $0xd0] sm:$0xff]   ;;  %v1233_v27 = vld [vmem:[%s1598_s0 + $0xd8] sm:$0xff]  }
   0xa   :  { %v1234_v28 = vld [vmem:[%s1598_s0 + $0xa0] sm:$0xff]   ;;  %v1236_v30 = vld [vmem:[%s1598_s0 + $0xa8] sm:$0xff]   ;;  %v1238_v32 = vld [vmem:[%s1598_s0 + $0xb0] sm:$0xff]  }
   0xb   :  { %1120 = vmatpush3.bf16.msra.mxu0 %v118_v5  ;;  %1142 = vmatpush3.bf16.msra.mxu1 %v118_v5  ;;  %v1235_v29 = vld [vmem:[%s1598_s0 + $0xe0] sm:$0xff]   ;;  %v1237_v31 = vld [vmem:[%s1598_s0 + $0xe8] sm:$0xff]   ;;  %v1239_v33 = vld [vmem:[%s1598_s0 + $0xf0] sm:$0xff]  }
   0xc   :  { %1159 = vmatprep.subr.bf16.mxu0 %v1207_v0  ;;  %1181 = vmatprep.subr.bf16.mxu1 %v1207_v0  ;;  %v1240_v34 = vld [vmem:[%s1598_s0 + $0xb8] sm:$0xff]  }
   0xd   :  { %v1241_v35 = vld [vmem:[%s1598_s0 + $0xf8] sm:$0xff]  }
   0xe   :  { %1122 = vmatmul.mubr.msk.bf16.vlgmr.msra.gmra.mrb[0].mxu0 %vm91_vm0, %v1212_v6  ;;  %1144 = vmatmul.mubr.msk.bf16.vlgmr.msra.gmra.mrb[0].mxu1 %vm91_vm0, %v1213_v7 }
   0xf   :  { %1160 = vmatpush3.bf16.msra.mxu0 %v1207_v0  ;;  %1182 = vmatpush3.bf16.msra.mxu1 %v1207_v0 }
  0x10   :  { %1125 = vmatprep.mubr.msk.bf16.mxu0 %vm91_vm0, %v1214_v8  ;;  %1147 = vmatprep.mubr.msk.bf16.mxu1 %vm91_vm0, %v1215_v9 }
  0x11   :  { %1161 = vmatprep.subr.bf16.mxu0 %v1208_v1  ;;  %1183 = vmatprep.subr.bf16.mxu1 %v1208_v1 }
  0x13   :  { %1162 = vmatpush3.bf16.msra.mxu0 %v1208_v1  ;;  %1184 = vmatpush3.bf16.msra.mxu1 %v1208_v1 }
  0x14   :  { %1205 = vmatprep.subr.msk.bf16.mxu0 %vm116_vm1, %v1209_v2  ;;  %1206 = vmatprep.subr.msk.bf16.mxu1 %vm116_vm1, %v1209_v2 }
  0x16   :  { %1126 = vmatmul.mubr.msk.bf16.gmra.mrb[4].mxu0 %vm91_vm0, %v1216_v10  ;;  %1148 = vmatmul.mubr.msk.bf16.gmra.mrb[4].mxu1 %vm91_vm0, %v1217_v11 }
  0x17   :  { %1129 = vmatprep.mubr.msk.bf16.mxu0 %vm91_vm0, %v1218_v12  ;;  %1151 = vmatprep.mubr.msk.bf16.mxu1 %vm91_vm0, %v1219_v13 }
  0x18   :  { %1164 = vmatpush3.bf16.msra.mxu0 %v118_v5  ;;  %1186 = vmatpush3.bf16.msra.mxu1 %v118_v5 }
  0x1e   :  { %1130 = vmatmul.mubr.msk.bf16.gmra.mrb[8].mxu0 %vm91_vm0, %v1220_v14  ;;  %1152 = vmatmul.mubr.msk.bf16.gmra.mrb[8].mxu1 %vm91_vm0, %v1221_v15 }
  0x1f   :  { %1133 = vmatprep.mubr.msk.bf16.mxu0 %vm91_vm0, %v1222_v16  ;;  %1155 = vmatprep.mubr.msk.bf16.mxu1 %vm91_vm0, %v1223_v17 }
  0x26   :  { %1134 = vmatmul.mubr.msk.bf16.gmra.mrb[12].mxu0 %vm91_vm0, %v1224_v18  ;;  %1156 = vmatmul.mubr.msk.bf16.gmra.mrb[12].mxu1 %vm91_vm0, %v1225_v19 }
  0x27   :  { %1165 = vmatprep.mubr.msk.bf16.mxu0 %vm91_vm0, %v1226_v20  ;;  %1187 = vmatprep.mubr.msk.bf16.mxu1 %vm91_vm0, %v1227_v21 }
  0x2e   :  { %1166 = vmatmul.mubr.msk.bf16.vlgmr.msra.gmra.mrb[16].mxu0 %vm91_vm0, %v1228_v22  ;;  %1188 = vmatmul.mubr.msk.bf16.vlgmr.msra.gmra.mrb[16].mxu1 %vm91_vm0, %v1229_v23 }
  0x2f   :  { %1169 = vmatprep.mubr.msk.bf16.mxu0 %vm91_vm0, %v1230_v24  ;;  %1191 = vmatprep.mubr.msk.bf16.mxu1 %vm91_vm0, %v1231_v25  ;;  %v1479_v25 = vld [vmem:[%s1599_s2] ss:$0 sm:$0xff] }
  0x36   :  { %1170 = vmatmul.mubr.msk.bf16.gmra.mrb[20].mxu0 %vm91_vm0, %v1232_v26  ;;  %1192 = vmatmul.mubr.msk.bf16.gmra.mrb[20].mxu1 %vm91_vm0, %v1233_v27 }
  0x37   :  { %1173 = vmatprep.mubr.msk.bf16.mxu0 %vm91_vm0, %v1234_v28  ;;  %1195 = vmatprep.mubr.msk.bf16.mxu1 %vm91_vm0, %v1235_v29 }
  0x3e   :  { %1174 = vmatmul.mubr.msk.bf16.gmra.mrb[24].mxu0 %vm91_vm0, %v1236_v30  ;;  %1196 = vmatmul.mubr.msk.bf16.gmra.mrb[24].mxu1 %vm91_vm0, %v1237_v31 }
  0x3f   :  { %1177 = vmatprep.mubr.msk.bf16.mxu0 %vm91_vm0, %v1238_v32  ;;  %1199 = vmatprep.mubr.msk.bf16.mxu1 %vm91_vm0, %v1239_v33 }
  0x46   :  { %1178 = vmatmul.mubr.msk.bf16.gmra.mrb[28].mxu0 %vm91_vm0, %v1240_v34  ;;  %1200 = vmatmul.mubr.msk.bf16.gmra.mrb[28].mxu1 %vm91_vm0, %v1241_v35 }
  0xe1   :  { %v1123_v36 = vpop.f32.mrb[0].mxu0  ;;  %v1145_v37 = vpop.f32.mrb[0].mxu1 }
  0xe2   :  { %v753_v38 = vmax.f32 %v1123_v36, %v1145_v37  ;;  %v154_v39 = vpop.f32.mrb[1].mxu0  ;;  %v332_v40 = vpop.f32.mrb[1].mxu1 }
  0xe3   :  { %v751_v41 = vmax.f32 %v154_v39, %v332_v40  ;;  %v1124_v42 = vpop.f32.mrb[2].mxu0  ;;  %v1146_v43 = vpop.f32.mrb[2].mxu1 }
  0xe4   :  { %v754_v44 = vmax.f32 %v1124_v42, %v1146_v43  ;;  %v157_v45 = vpop.f32.mrb[3].mxu0  ;;  %v335_v46 = vpop.f32.mrb[3].mxu1 }
  0xe5   :  { %v752_v47 = vmax.f32 %v157_v45, %v335_v46 }
  0xe9   :  { %v1404_v48 = vpop.f32.mrb[4].mxu0  ;;  %v1406_v49 = vpop.f32.mrb[4].mxu1 }
  0xea   :  { %v757_v50 = vmax.f32 %v1404_v48, %v1406_v49  ;;  %v1410_v51 = vpop.f32.mrb[5].mxu0  ;;  %v1412_v52 = vpop.f32.mrb[5].mxu1 }
  0xeb   :  { %v755_v53 = vmax.f32 %v1410_v51, %v1412_v52  ;;  %v1416_v54 = vpop.f32.mrb[6].mxu0  ;;  %v1418_v55 = vpop.f32.mrb[6].mxu1 }
  0xec   :  { %v758_v56 = vmax.f32 %v1416_v54, %v1418_v55  ;;  %v1422_v57 = vpop.f32.mrb[7].mxu0  ;;  %v1424_v58 = vpop.f32.mrb[7].mxu1 }
  0xed   :  { %v756_v59 = vmax.f32 %v1422_v57, %v1424_v58 }
  0xf1   :  { %v1428_v60 = vpop.f32.mrb[8].mxu0  ;;  %v1430_v61 = vpop.f32.mrb[8].mxu1 }
  0xf2   :  { %v761_v62 = vmax.f32 %v1428_v60, %v1430_v61  ;;  %v1434_v63 = vpop.f32.mrb[9].mxu0  ;;  %v1436_v0 = vpop.f32.mrb[9].mxu1 }
  0xf3   :  { %v759_v1 = vmax.f32 %v1434_v63, %v1436_v0  ;;  %v1440_v2 = vpop.f32.mrb[10].mxu0  ;;  %v1442_v3 = vpop.f32.mrb[10].mxu1 }
  0xf4   :  { %v762_v4 = vmax.f32 %v1440_v2, %v1442_v3  ;;  %v1446_v5 = vpop.f32.mrb[11].mxu0  ;;  %v1448_v6 = vpop.f32.mrb[11].mxu1 }
  0xf5   :  { %v760_v7 = vmax.f32 %v1446_v5, %v1448_v6 }
  0xf9   :  { %v1452_v8 = vpop.f32.mrb[12].mxu0  ;;  %v1454_v9 = vpop.f32.mrb[12].mxu1 }
  0xfa   :  { %v765_v10 = vmax.f32 %v1452_v8, %v1454_v9  ;;  %v1458_v11 = vpop.f32.mrb[13].mxu0  ;;  %v1460_v12 = vpop.f32.mrb[13].mxu1 }
  0xfb   :  { %v763_v13 = vmax.f32 %v1458_v11, %v1460_v12  ;;  %v1464_v14 = vpop.f32.mrb[14].mxu0  ;;  %v1466_v15 = vpop.f32.mrb[14].mxu1 }
  0xfc   :  { %v766_v16 = vmax.f32 %v1464_v14, %v1466_v15  ;;  %v1470_v17 = vpop.f32.mrb[15].mxu0  ;;  %v1472_v18 = vpop.f32.mrb[15].mxu1 }
  0xfd   :  { %v764_v19 = vmax.f32 %v1470_v17, %v1472_v18 }
 0x101   :  { %v1167_v20 = vpop.f32.mrb[16].mxu0  ;;  %v1189_v21 = vpop.f32.mrb[16].mxu1 }
 0x102   :  { %v769_v22 = vmax.f32 %v1167_v20, %v1189_v21  ;;  %v510_v23 = vpop.f32.mrb[17].mxu0  ;;  %v688_v24 = vpop.f32.mrb[17].mxu1 }
 0x103   :  { %v767_v26 = vmax.f32 %v510_v23, %v688_v24  ;;  %v1168_v27 = vpop.f32.mrb[18].mxu0  ;;  %v1190_v28 = vpop.f32.mrb[18].mxu1 }
 0x104   :  { %v785_v29 = vmax.f32 %v753_v38, %v769_v22  ;;  %v770_v30 = vmax.f32 %v1168_v27, %v1190_v28  ;;  %v513_v31 = vpop.f32.mrb[19].mxu0  ;;  %v691_v32 = vpop.f32.mrb[19].mxu1 }
 0x105   :  { %v783_v33 = vmax.f32 %v751_v41, %v767_v26  ;;  %v768_v34 = vmax.f32 %v513_v31, %v691_v32 }
 0x106   :  { %v808_v35 = vadd.f32 %v1479_v25, %v785_v29  ;;  %v786_v36 = vmax.f32 %v754_v44, %v770_v30 }
 0x107   :  { %v806_v37 = vadd.f32 %v1479_v25, %v783_v33  ;;  %v784_v39 = vmax.f32 %v752_v47, %v768_v34 }
 0x108   :  { %v824_v40 = vmax.f32 %v808_v35, 0.0  ;;  %v809_v42 = vadd.f32 %v1479_v25, %v786_v36 }
 0x109   :  { %v822_v43 = vmax.f32 %v806_v37, 0.0  ;;  %v807_v45 = vadd.f32 %v1479_v25, %v784_v39  ;;  %v1171_v46 = vpop.f32.mrb[20].mxu0  ;;  %v1193_v38 = vpop.f32.mrb[20].mxu1 }
 0x10a   :  { %v1057_v20 = vpack.c.bf16 %v824_v40, %v824_v40  ;;  %v825_v21 = vmax.f32 %v809_v42, 0.0  ;;  %v773_v22 = vmax.f32 %v1171_v46, %v1193_v38  ;;  %v526_v41 = vpop.f32.mrb[21].mxu0  ;;  %v704_v23 = vpop.f32.mrb[21].mxu1 }
 0x10b   :  { %v1055_v24 = vpack.c.bf16 %v822_v43, %v822_v43  ;;  %v823_v26 = vmax.f32 %v807_v45, 0.0  ;;  %v771_v44 = vmax.f32 %v526_v41, %v704_v23  ;;  %v1172_v27 = vpop.f32.mrb[22].mxu0  ;;  %v1194_v28 = vpop.f32.mrb[22].mxu1 }
 0x10c   :  { %905 = vst.msk [vmem:[%s1600_s3 + $0x8] sm:$0xf] %vm902_vm2, %v1057_v20  ;;  %v1058_v47 = vpack.c.bf16 %v825_v21, %v825_v21  ;;  %v789_v29 = vmax.f32 %v757_v50, %v773_v22  ;;  %v774_v30 = vmax.f32 %v1172_v27, %v1194_v28  ;;  %v529_v31 = vpop.f32.mrb[23].mxu0  ;;  %v707_v32 = vpop.f32.mrb[23].mxu1 }
 0x10d   :  { %903 = vst.msk [vmem:[%s1600_s3] sm:$0xf] %vm902_vm2, %v1055_v24  ;;  %v1056_v33 = vpack.c.bf16 %v823_v26, %v823_v26  ;;  %v787_v34 = vmax.f32 %v755_v53, %v771_v44  ;;  %v772_v35 = vmax.f32 %v529_v31, %v707_v32 }
 0x10e   :  { %906 = vst.msk [vmem:[%s1600_s3 + $0xc] sm:$0xf] %vm902_vm2, %v1058_v47  ;;  %v812_v48 = vadd.f32 %v1479_v25, %v789_v29  ;;  %v790_v49 = vmax.f32 %v758_v56, %v774_v30 }
 0x10f   :  { %904 = vst.msk [vmem:[%s1600_s3 + $0x4] sm:$0xf] %vm902_vm2, %v1056_v33  ;;  %v810_v50 = vadd.f32 %v1479_v25, %v787_v34  ;;  %v788_v51 = vmax.f32 %v756_v59, %v772_v35 }
 0x110   :  { %v828_v52 = vmax.f32 %v812_v48, 0.0  ;;  %v813_v53 = vadd.f32 %v1479_v25, %v790_v49 }
 0x111   :  { %v826_v36 = vmax.f32 %v810_v50, 0.0  ;;  %v811_v37 = vadd.f32 %v1479_v25, %v788_v51  ;;  %v1175_v39 = vpop.f32.mrb[24].mxu0  ;;  %v1197_v54 = vpop.f32.mrb[24].mxu1 }
 0x112   :  { %v1061_v55 = vpack.c.bf16 %v828_v52, %v828_v52  ;;  %v829_v56 = vmax.f32 %v813_v53, 0.0  ;;  %v777_v40 = vmax.f32 %v1175_v39, %v1197_v54  ;;  %v542_v42 = vpop.f32.mrb[25].mxu0  ;;  %v720_v43 = vpop.f32.mrb[25].mxu1 }
 0x113   :  { %v1059_v45 = vpack.c.bf16 %v826_v36, %v826_v36  ;;  %v827_v46 = vmax.f32 %v811_v37, 0.0  ;;  %v775_v38 = vmax.f32 %v542_v42, %v720_v43  ;;  %v1176_v20 = vpop.f32.mrb[26].mxu0  ;;  %v1198_v21 = vpop.f32.mrb[26].mxu1 }
 0x114   :  { %909 = vst.msk [vmem:[%s1600_s3 + $0x18] sm:$0xf] %vm902_vm2, %v1061_v55  ;;  %v1062_v57 = vpack.c.bf16 %v829_v56, %v829_v56  ;;  %v793_v58 = vmax.f32 %v761_v62, %v777_v40  ;;  %v778_v59 = vmax.f32 %v1176_v20, %v1198_v21  ;;  %v545_v22 = vpop.f32.mrb[27].mxu0  ;;  %v723_v41 = vpop.f32.mrb[27].mxu1 }
 0x115   :  { %907 = vst.msk [vmem:[%s1600_s3 + $0x10] sm:$0xf] %vm902_vm2, %v1059_v45  ;;  %v1060_v23 = vpack.c.bf16 %v827_v46, %v827_v46  ;;  %v791_v24 = vmax.f32 %v759_v1, %v775_v38  ;;  %v776_v26 = vmax.f32 %v545_v22, %v723_v41 }
 0x116   :  { %910 = vst.msk [vmem:[%s1600_s3 + $0x1c] sm:$0xf] %vm902_vm2, %v1062_v57  ;;  %v816_v60 = vadd.f32 %v1479_v25, %v793_v58  ;;  %v794_v61 = vmax.f32 %v762_v4, %v778_v59 }
 0x117   :  { %908 = vst.msk [vmem:[%s1600_s3 + $0x14] sm:$0xf] %vm902_vm2, %v1060_v23  ;;  %v814_v62 = vadd.f32 %v1479_v25, %v791_v24  ;;  %v792_v63 = vmax.f32 %v760_v7, %v776_v26 }
 0x118   :  { %v832_v0 = vmax.f32 %v816_v60, 0.0  ;;  %v817_v1 = vadd.f32 %v1479_v25, %v794_v61 }
 0x119   :  { %v830_v44 = vmax.f32 %v814_v62, 0.0  ;;  %v815_v27 = vadd.f32 %v1479_v25, %v792_v63  ;;  %v1179_v28 = vpop.f32.mrb[28].mxu0  ;;  %v1201_v2 = vpop.f32.mrb[28].mxu1 }
 0x11a   :  { %v1065_v3 = vpack.c.bf16 %v832_v0, %v832_v0  ;;  %v833_v4 = vmax.f32 %v817_v1, 0.0  ;;  %v781_v47 = vmax.f32 %v1179_v28, %v1201_v2  ;;  %v558_v29 = vpop.f32.mrb[29].mxu0  ;;  %v736_v30 = vpop.f32.mrb[29].mxu1 }
 0x11b   :  { %v1063_v31 = vpack.c.bf16 %v830_v44, %v830_v44  ;;  %v831_v32 = vmax.f32 %v815_v27, 0.0  ;;  %v779_v33 = vmax.f32 %v558_v29, %v736_v30  ;;  %v1180_v34 = vpop.f32.mrb[30].mxu0  ;;  %v1202_v35 = vpop.f32.mrb[30].mxu1 }
 0x11c   :  { %913 = vst.msk [vmem:[%s1600_s3 + $0x28] sm:$0xf] %vm902_vm2, %v1065_v3  ;;  %v1066_v5 = vpack.c.bf16 %v833_v4, %v833_v4  ;;  %v797_v6 = vmax.f32 %v765_v10, %v781_v47  ;;  %v782_v7 = vmax.f32 %v1180_v34, %v1202_v35  ;;  %v561_v48 = vpop.f32.mrb[31].mxu0  ;;  %v739_v49 = vpop.f32.mrb[31].mxu1 }
 0x11d   :  { %911 = vst.msk [vmem:[%s1600_s3 + $0x20] sm:$0xf] %vm902_vm2, %v1063_v31  ;;  %v1064_v50 = vpack.c.bf16 %v831_v32, %v831_v32  ;;  %v795_v51 = vmax.f32 %v763_v13, %v779_v33  ;;  %v780_v52 = vmax.f32 %v561_v48, %v739_v49 }
 0x11e   :  { %914 = vst.msk [vmem:[%s1600_s3 + $0x2c] sm:$0xf] %vm902_vm2, %v1066_v5  ;;  %v820_v8 = vadd.f32 %v1479_v25, %v797_v6  ;;  %v798_v9 = vmax.f32 %v766_v16, %v782_v7 }
 0x11f   :  { %912 = vst.msk [vmem:[%s1600_s3 + $0x24] sm:$0xf] %vm902_vm2, %v1064_v50  ;;  %v818_v10 = vadd.f32 %v1479_v25, %v795_v51  ;;  %v796_v11 = vmax.f32 %v764_v19, %v780_v52 }
 0x120   :  { %v836_v12 = vmax.f32 %v820_v8, 0.0  ;;  %v821_v13 = vadd.f32 %v1479_v25, %v798_v9 }
 0x121   :  { %v834_v53 = vmax.f32 %v818_v10, 0.0  ;;  %v819_v36 = vadd.f32 %v1479_v25, %v796_v11 }
 0x122   :  { %v1069_v37 = vpack.c.bf16 %v836_v12, %v836_v12  ;;  %v837_v14 = vmax.f32 %v821_v13, 0.0 }
 0x123   :  { %v1067_v15 = vpack.c.bf16 %v834_v53, %v834_v53  ;;  %v835_v16 = vmax.f32 %v819_v36, 0.0 }
 0x124   :  { %917 = vst.msk [vmem:[%s1600_s3 + $0x38] sm:$0xf] %vm902_vm2, %v1069_v37  ;;  %v1070_v39 = vpack.c.bf16 %v837_v14, %v837_v14 }
 0x125   :  { %915 = vst.msk [vmem:[%s1600_s3 + $0x30] sm:$0xf] %vm902_vm2, %v1067_v15  ;;  %v1068_v17 = vpack.c.bf16 %v835_v16, %v835_v16 }
 0x126   :  { %918 = vst.msk [vmem:[%s1600_s3 + $0x3c] sm:$0xf] %vm902_vm2, %v1070_v39 }
 0x127   :  { %916 = vst.msk [vmem:[%s1600_s3 + $0x34] sm:$0xf] %vm902_vm2, %v1068_v17 }

// kernel: localization_network.5
= control target key start
LH: loop header
LB: loop body
LE: loop exit
PB: predicated region body
PF: predicated region fallthrough
CT: control target
= control target key end

     0   :  { %vm365_vm0 = vcmask 523264   ;;  %s2279_s1 = inlined_call_operand.vmem [shape: bf16[576,128], index: 1, kind: input, shape index: {}]   ;;  %s2280_s0 = inlined_call_operand.vmem [shape: bf16[4,32,576], index: 0, kind: input, shape index: {}]   ;;  %s2281_s2 = inlined_call_operand.vmem [shape: f32[1,128], index: 2, kind: input, shape index: {}]   ;;  %s2282_s3 = inlined_call_operand.vmem [shape: bf16[32,128], index: 3, kind: output, shape index: {}]  }
   0x1   :  { %v1769_v0 = vld [vmem:[%s2279_s1 + $0x40] sm:$0xff]   ;;  %v1792_v4 = vld [vmem:[%s2279_s1 + $0x48] sm:$0xff]   ;;  %v1816_v8 = vld [vmem:[%s2279_s1 + $0x50] sm:$0xff]  }
   0x2   :  { %v1774_v1 = vld [vmem:[%s2279_s1 + $0xc0] sm:$0xff]   ;;  %1358 = vmatprep.subr.bf16.mxu0 %v1769_v0  ;;  %v1798_v5 = vld [vmem:[%s2279_s1 + $0xc8] sm:$0xff]   ;;  %v1822_v9 = vld [vmem:[%s2279_s1 + $0xd0] sm:$0xff]  }
   0x3   :  { %v1780_v2 = vld [vmem:[%s2279_s1] sm:$0xff]   ;;  %1386 = vmatprep.subr.bf16.mxu1 %v1774_v1  ;;  %v1804_v6 = vld [vmem:[%s2279_s1 + $0x8] sm:$0xff]   ;;  %v1828_v10 = vld [vmem:[%s2279_s1 + $0x10] sm:$0xff]  }
   0x4   :  { %v1786_v3 = vld [vmem:[%s2279_s1 + $0x80] sm:$0xff]   ;;  %1359 = vmatpush3.bf16.msra.mxu0 %v1780_v2  ;;  %v1810_v7 = vld [vmem:[%s2279_s1 + $0x88] sm:$0xff]   ;;  %v1834_v11 = vld [vmem:[%s2279_s1 + $0x90] sm:$0xff]  }
   0x5   :  { %1387 = vmatpush3.bf16.msra.mxu1 %v1786_v3  ;;  %1360 = vmatprep.subr.bf16.mxu0 %v1792_v4  ;;  %v1840_v12 = vld [vmem:[%s2279_s1 + $0x58] sm:$0xff]   ;;  %v1864_v16 = vld [vmem:[%s2279_s1 + $0x60] sm:$0xff]   ;;  %v1888_v20 = vld [vmem:[%s2279_s1 + $0x68] sm:$0xff]  }
   0x6   :  { %1388 = vmatprep.subr.bf16.mxu1 %v1798_v5  ;;  %v1846_v13 = vld [vmem:[%s2279_s1 + $0xd8] sm:$0xff]   ;;  %v1870_v17 = vld [vmem:[%s2279_s1 + $0xe0] sm:$0xff]   ;;  %v1894_v21 = vld [vmem:[%s2279_s1 + $0xe8] sm:$0xff]  }
   0x7   :  { %v1852_v14 = vld [vmem:[%s2279_s1 + $0x18] sm:$0xff]   ;;  %v1876_v18 = vld [vmem:[%s2279_s1 + $0x20] sm:$0xff]   ;;  %v1900_v22 = vld [vmem:[%s2279_s1 + $0x28] sm:$0xff]  }
   0x8   :  { %1361 = vmatpush3.bf16.msra.mxu0 %v1804_v6  ;;  %v1858_v15 = vld [vmem:[%s2279_s1 + $0x98] sm:$0xff]   ;;  %v1882_v19 = vld [vmem:[%s2279_s1 + $0xa0] sm:$0xff]   ;;  %v1906_v23 = vld [vmem:[%s2279_s1 + $0xa8] sm:$0xff]  }
   0x9   :  { %1389 = vmatpush3.bf16.msra.mxu1 %v1810_v7  ;;  %1362 = vmatprep.subr.bf16.mxu0 %v1816_v8  ;;  %v1912_v24 = vld [vmem:[%s2279_s1 + $0x70] sm:$0xff]   ;;  %v1936_v28 = vld [vmem:[%s2279_s1 + $0x78] sm:$0xff]   ;;  %v1691_v35 = vld [vmem:[%s2280_s0 + $0xc] ss:$20 sps:$4 sm:$0xff]  }
   0xa   :  { %1390 = vmatprep.subr.bf16.mxu1 %v1822_v9  ;;  %v1918_v25 = vld [vmem:[%s2279_s1 + $0xf0] sm:$0xff]   ;;  %v1942_v29 = vld [vmem:[%s2279_s1 + $0xf8] sm:$0xff]   ;;  %v1974_v36 = vld [vmem:[%s2279_s1 + $0x100] sm:$0xff]   ;;  %453 = vmatprep.mubr.bf16.mxu1 %v1691_v35 }
   0xb   :  { %v1924_v26 = vld [vmem:[%s2279_s1 + $0x30] sm:$0xff]   ;;  %v1948_v30 = vld [vmem:[%s2279_s1 + $0x38] sm:$0xff]   ;;  %v1979_v37 = vld [vmem:[%s2279_s1 + $0x108] sm:$0xff]  }
   0xc   :  { %1363 = vmatpush3.bf16.msra.mxu0 %v1828_v10  ;;  %v1930_v27 = vld [vmem:[%s2279_s1 + $0xb0] sm:$0xff]   ;;  %v1954_v31 = vld [vmem:[%s2279_s1 + $0xb8] sm:$0xff]   ;;  %v1694_v38 = vld [vmem:[%s2280_s0 + $0x2c] ss:$20 sps:$4 sm:$0xff]  }
   0xd   :  { %1391 = vmatpush3.bf16.msra.mxu1 %v1834_v11  ;;  %1364 = vmatprep.subr.bf16.mxu0 %v1840_v12  ;;  %v1686_v32 = vld [vmem:[%s2280_s0] ss:$20 sps:$4 sm:$0xff]   ;;  %v1688_v33 = vld [vmem:[%s2280_s0 + $0x4] ss:$20 sps:$4 sm:$0xff]   ;;  %v1689_v34 = vld [vmem:[%s2280_s0 + $0x8] ss:$20 sps:$4 sm:$0xff]  }
   0xe   :  { %1392 = vmatprep.subr.bf16.mxu1 %v1846_v13  ;;  %404 = vmatprep.mubr.bf16.mxu0 %v1688_v33  ;;  %v1696_v39 = vld [vmem:[%s2280_s0 + $0x34] ss:$20 sps:$4 sm:$0xff]   ;;  %v1699_v42 = vld [vmem:[%s2280_s0 + $0x30] ss:$20 sps:$4 sm:$0xff]   ;;  %v2013_v44 = vld [vmem:[%s2279_s1 + $0x118] sm:$0xff]  }
   0xf   :  { %v1698_v40 = vld [vmem:[%s2280_s0 + $0x28] ss:$20 sps:$4 sm:$0xff]   ;;  %v1998_v41 = vld [vmem:[%s2279_s1 + $0x110] sm:$0xff]   ;;  %v1703_v46 = vld [vmem:[%s2280_s0 + $0x38] ss:$20 sps:$4 sm:$0xff]  }
  0x10   :  { %1365 = vmatpush3.bf16.msra.mxu0 %v1852_v14  ;;  %v1702_v43 = vld [vmem:[%s2280_s0 + $0x10] ss:$20 sps:$4 sm:$0xff]   ;;  %v1706_v45 = vld [vmem:[%s2280_s0 + $0x54] ss:$20 sps:$4 sm:$0xff]   ;;  %v1709_v50 = vld [vmem:[%s2280_s0 + $0x78] ss:$20 sps:$4 sm:$0xff]  }
  0x11   :  { %1393 = vmatpush3.bf16.msra.mxu1 %v1858_v15  ;;  %1366 = vmatprep.subr.bf16.mxu0 %v1864_v16  ;;  %v1712_v47 = vld [vmem:[%s2280_s0 + $0x5c] ss:$20 sps:$4 sm:$0xff]   ;;  %v1713_v51 = vld [vmem:[%s2280_s0 + $0x60] ss:$20 sps:$4 sm:$0xff]   ;;  %v1710_v52 = vld [vmem:[%s2280_s0 + $0x58] ss:$20 sps:$4 sm:$0xff]  }
  0x12   :  { %1394 = vmatprep.subr.bf16.mxu1 %v1870_v17  ;;  %v1704_v48 = vld [vmem:[%s2280_s0 + $0x50] ss:$20 sps:$4 sm:$0xff]   ;;  %v1714_v53 = vld [vmem:[%s2280_s0 + $0x88] ss:$20 sps:$4 sm:$0xff]   ;;  %v1723_v55 = vld [vmem:[%s2280_s0 + $0xac] ss:$20 sps:$4 sm:$0xff]  }
  0x13   :  { %v1707_v49 = vld [vmem:[%s2280_s0 + $0x7c] ss:$20 sps:$4 sm:$0xff]   ;;  %v1715_v54 = vld [vmem:[%s2280_s0 + $0x84] ss:$20 sps:$4 sm:$0xff]   ;;  %v1717_v56 = vld [vmem:[%s2280_s0 + $0x80] ss:$20 sps:$4 sm:$0xff]  }
  0x14   :  { %1367 = vmatpush3.bf16.msra.mxu0 %v1876_v18  ;;  %v1720_v57 = vld [vmem:[%s2280_s0 + $0xa4] ss:$20 sps:$4 sm:$0xff]   ;;  %v1718_v58 = vld [vmem:[%s2280_s0 + $0xa0] ss:$20 sps:$4 sm:$0xff]   ;;  %v1721_v59 = vld [vmem:[%s2280_s0 + $0xa8] ss:$20 sps:$4 sm:$0xff]  }
  0x15   :  { %1395 = vmatpush3.bf16.msra.mxu1 %v1882_v19  ;;  %1368 = vmatprep.subr.bf16.mxu0 %v1888_v20  ;;  %v1724_v60 = vld [vmem:[%s2280_s0 + $0xcc] ss:$20 sps:$4 sm:$0xff]   ;;  %v1726_v61 = vld [vmem:[%s2280_s0 + $0xd4] ss:$20 sps:$4 sm:$0xff]   ;;  %v1729_v63 = vld [vmem:[%s2280_s0 + $0xd0] ss:$20 sps:$4 sm:$0xff]  }
  0x16   :  { %1396 = vmatprep.subr.bf16.mxu1 %v1894_v21  ;;  %v1728_v62 = vld [vmem:[%s2280_s0 + $0xc8] ss:$20 sps:$4 sm:$0xff]  }
  0x18   :  { %1369 = vmatpush3.bf16.msra.mxu0 %v1900_v22 }
  0x19   :  { %1397 = vmatpush3.bf16.msra.mxu1 %v1906_v23  ;;  %1370 = vmatprep.subr.bf16.mxu0 %v1912_v24 }
  0x1a   :  { %1398 = vmatprep.subr.bf16.mxu1 %v1918_v25 }
  0x1c   :  { %1371 = vmatpush3.bf16.msra.mxu0 %v1924_v26 }
  0x1d   :  { %1399 = vmatpush3.bf16.msra.mxu1 %v1930_v27  ;;  %1372 = vmatprep.subr.bf16.mxu0 %v1936_v28 }
  0x1e   :  { %1400 = vmatprep.subr.bf16.mxu1 %v1942_v29 }
  0x20   :  { %1373 = vmatpush3.bf16.msra.mxu0 %v1948_v30 }
  0x21   :  { %1401 = vmatpush3.bf16.msra.mxu1 %v1954_v31  ;;  %1606 = vmatprep.subr.bf16.mxu0 %v1974_v36 }
  0x22   :  { %1420 = vmatprep.subr.bf16.mxu1 %v1769_v0 }
  0x23   :  { %405 = vmatmul.mubr.bf16.vlgmr.msra.gmra.mrb[0].mxu0 %v1686_v32 }
  0x24   :  { %454 = vmatmul.mubr.bf16.vlgmr.msra.gmra.mrb[0].mxu1 %v1689_v34  ;;  %1607 = vmatpush3.bf16.msra.mxu0 %v1974_v36 }
  0x25   :  { %1421 = vmatpush3.bf16.msra.mxu1 %v1780_v2  ;;  %1608 = vmatprep.subr.bf16.mxu0 %v1979_v37 }
  0x26   :  { %1422 = vmatprep.subr.bf16.mxu1 %v1792_v4  ;;  %412 = vmatprep.mubr.bf16.mxu0 %v1694_v38 }
  0x27   :  { %461 = vmatprep.mubr.bf16.mxu1 %v1696_v39 }
  0x28   :  { %1609 = vmatpush3.bf16.msra.mxu0 %v1979_v37 }
  0x29   :  { %1423 = vmatpush3.bf16.msra.mxu1 %v1804_v6  ;;  %1610 = vmatprep.subr.bf16.mxu0 %v1998_v41 }
  0x2a   :  { %1424 = vmatprep.subr.bf16.mxu1 %v1816_v8 }
  0x2b   :  { %413 = vmatmul.mubr.bf16.gmra.mrb[4].mxu0 %v1698_v40 }
  0x2c   :  { %462 = vmatmul.mubr.bf16.gmra.mrb[4].mxu1 %v1699_v42  ;;  %1614 = vmatprep.mubr.msk.bf16.mxu0 %vm365_vm0, %v1702_v43 }
  0x2d   :  { %1611 = vmatpush3.bf16.msra.mxu0 %v1998_v41  ;;  %1425 = vmatpush3.bf16.msra.mxu1 %v1828_v10 }
  0x2e   :  { %1612 = vmatprep.subr.bf16.mxu0 %v2013_v44  ;;  %1426 = vmatprep.subr.bf16.mxu1 %v1840_v12 }
  0x2f   :  { %620 = vmatprep.mubr.bf16.mxu1 %v1706_v45 }
  0x31   :  { %1613 = vmatpush3.bf16.msra.mxu0 %v2013_v44  ;;  %1427 = vmatpush3.bf16.msra.mxu1 %v1852_v14 }
  0x32   :  { %1428 = vmatprep.subr.bf16.mxu1 %v1864_v16  ;;  %1448 = vmatprep.subr.bf16.mxu0 %v1774_v1 }
  0x34   :  { %1615 = vmatmul.mubr.msk.bf16.vlgmr.msra.gmra.mrb[8].mxu0 %vm365_vm0, %v1703_v46 }
  0x35   :  { %1429 = vmatpush3.bf16.msra.mxu1 %v1876_v18  ;;  %1449 = vmatpush3.bf16.msra.mxu0 %v1786_v3 }
  0x36   :  { %1430 = vmatprep.subr.bf16.mxu1 %v1888_v20  ;;  %1450 = vmatprep.subr.bf16.mxu0 %v1798_v5 }
  0x37   :  { %669 = vmatprep.mubr.bf16.mxu0 %v1712_v47 }
  0x39   :  { %1431 = vmatpush3.bf16.msra.mxu1 %v1900_v22  ;;  %1451 = vmatpush3.bf16.msra.mxu0 %v1810_v7 }
  0x3a   :  { %1432 = vmatprep.subr.bf16.mxu1 %v1912_v24  ;;  %1452 = vmatprep.subr.bf16.mxu0 %v1822_v9 }
  0x3d   :  { %1433 = vmatpush3.bf16.msra.mxu1 %v1924_v26  ;;  %1453 = vmatpush3.bf16.msra.mxu0 %v1834_v11 }
  0x3e   :  { %1434 = vmatprep.subr.bf16.mxu1 %v1936_v28  ;;  %1454 = vmatprep.subr.bf16.mxu0 %v1846_v13 }
  0x41   :  { %1435 = vmatpush3.bf16.msra.mxu1 %v1948_v30  ;;  %1455 = vmatpush3.bf16.msra.mxu0 %v1858_v15 }
  0x42   :  { %1456 = vmatprep.subr.bf16.mxu0 %v1870_v17  ;;  %1618 = vmatprep.subr.bf16.mxu1 %v1974_v36 }
  0x44   :  { %621 = vmatmul.mubr.bf16.vlgmr.msra.gmra.mrb[8].mxu1 %v1704_v48 }
  0x45   :  { %1457 = vmatpush3.bf16.msra.mxu0 %v1882_v19  ;;  %1619 = vmatpush3.bf16.msra.mxu1 %v1974_v36 }
  0x46   :  { %1458 = vmatprep.subr.bf16.mxu0 %v1894_v21  ;;  %1620 = vmatprep.subr.bf16.mxu1 %v1979_v37 }
  0x47   :  { %628 = vmatprep.mubr.bf16.mxu1 %v1707_v49 }
  0x49   :  { %1459 = vmatpush3.bf16.msra.mxu0 %v1906_v23  ;;  %1621 = vmatpush3.bf16.msra.mxu1 %v1979_v37 }
  0x4a   :  { %1460 = vmatprep.subr.bf16.mxu0 %v1918_v25  ;;  %1622 = vmatprep.subr.bf16.mxu1 %v1998_v41 }
  0x4c   :  { %629 = vmatmul.mubr.bf16.gmra.mrb[12].mxu1 %v1709_v50 }
  0x4d   :  { %1461 = vmatpush3.bf16.msra.mxu0 %v1930_v27  ;;  %1623 = vmatpush3.bf16.msra.mxu1 %v1998_v41 }
  0x4e   :  { %1462 = vmatprep.subr.bf16.mxu0 %v1942_v29  ;;  %1624 = vmatprep.subr.bf16.mxu1 %v2013_v44 }
  0x4f   :  { %1626 = vmatprep.mubr.msk.bf16.mxu1 %vm365_vm0, %v1713_v51 }
  0x51   :  { %1463 = vmatpush3.bf16.msra.mxu0 %v1954_v31  ;;  %1625 = vmatpush3.bf16.msra.mxu1 %v2013_v44 }
  0x52   :  { %1482 = vmatprep.subr.bf16.mxu0 %v1769_v0  ;;  %1510 = vmatprep.subr.bf16.mxu1 %v1774_v1 }
  0x54   :  { %670 = vmatmul.mubr.bf16.vlgmr.msra.gmra.mrb[12].mxu0 %v1710_v52  ;;  %1627 = vmatmul.mubr.msk.bf16.vlgmr.msra.gmra.mrb[16].mxu1 %vm365_vm0, %v1714_v53 }
  0x55   :  { %1483 = vmatpush3.bf16.msra.mxu0 %v1780_v2  ;;  %1511 = vmatpush3.bf16.msra.mxu1 %v1786_v3 }
  0x56   :  { %1484 = vmatprep.subr.bf16.mxu0 %v1792_v4  ;;  %1512 = vmatprep.subr.bf16.mxu1 %v1798_v5 }
  0x57   :  { %677 = vmatprep.mubr.bf16.mxu0 %v1715_v54  ;;  %885 = vmatprep.mubr.bf16.mxu1 %v1723_v55 }
  0x59   :  { %1485 = vmatpush3.bf16.msra.mxu0 %v1804_v6  ;;  %1513 = vmatpush3.bf16.msra.mxu1 %v1810_v7 }
  0x5a   :  { %1486 = vmatprep.subr.bf16.mxu0 %v1816_v8  ;;  %1514 = vmatprep.subr.bf16.mxu1 %v1822_v9 }
  0x5c   :  { %678 = vmatmul.mubr.bf16.gmra.mrb[16].mxu0 %v1717_v56 }
  0x5d   :  { %1487 = vmatpush3.bf16.msra.mxu0 %v1828_v10  ;;  %1515 = vmatpush3.bf16.msra.mxu1 %v1834_v11 }
  0x5e   :  { %1488 = vmatprep.subr.bf16.mxu0 %v1840_v12  ;;  %1516 = vmatprep.subr.bf16.mxu1 %v1846_v13 }
  0x5f   :  { %836 = vmatprep.mubr.bf16.mxu0 %v1720_v57 }
  0x61   :  { %1489 = vmatpush3.bf16.msra.mxu0 %v1852_v14  ;;  %1517 = vmatpush3.bf16.msra.mxu1 %v1858_v15 }
  0x62   :  { %1490 = vmatprep.subr.bf16.mxu0 %v1864_v16  ;;  %1518 = vmatprep.subr.bf16.mxu1 %v1870_v17 }
  0x65   :  { %1491 = vmatpush3.bf16.msra.mxu0 %v1876_v18  ;;  %1519 = vmatpush3.bf16.msra.mxu1 %v1882_v19 }
  0x66   :  { %1492 = vmatprep.subr.bf16.mxu0 %v1888_v20  ;;  %1520 = vmatprep.subr.bf16.mxu1 %v1894_v21 }
  0x69   :  { %1493 = vmatpush3.bf16.msra.mxu0 %v1900_v22  ;;  %1521 = vmatpush3.bf16.msra.mxu1 %v1906_v23 }
  0x6a   :  { %1494 = vmatprep.subr.bf16.mxu0 %v1912_v24  ;;  %1522 = vmatprep.subr.bf16.mxu1 %v1918_v25 }
  0x6d   :  { %1495 = vmatpush3.bf16.msra.mxu0 %v1924_v26  ;;  %1523 = vmatpush3.bf16.msra.mxu1 %v1930_v27 }
  0x6e   :  { %1496 = vmatprep.subr.bf16.mxu0 %v1936_v28  ;;  %1524 = vmatprep.subr.bf16.mxu1 %v1942_v29 }
  0x71   :  { %1497 = vmatpush3.bf16.msra.mxu0 %v1948_v30  ;;  %1525 = vmatpush3.bf16.msra.mxu1 %v1954_v31 }
  0x72   :  { %1630 = vmatprep.subr.bf16.mxu0 %v1974_v36  ;;  %1544 = vmatprep.subr.bf16.mxu1 %v1769_v0  ;;  %v1730_v0 = vld [vmem:[%s2280_s0 + $0xb0] ss:$20 sps:$4 sm:$0xff]  }
  0x74   :  { %837 = vmatmul.mubr.bf16.vlgmr.msra.gmra.mrb[20].mxu0 %v1718_v58  ;;  %886 = vmatmul.mubr.bf16.vlgmr.msra.gmra.mrb[20].mxu1 %v1721_v59 }
  0x75   :  { %1631 = vmatpush3.bf16.msra.mxu0 %v1974_v36  ;;  %1545 = vmatpush3.bf16.msra.mxu1 %v1780_v2  ;;  %v1734_v2 = vld [vmem:[%s2280_s0 + $0xf4] ss:$20 sps:$4 sm:$0xff]  }
  0x76   :  { %1632 = vmatprep.subr.bf16.mxu0 %v1979_v37  ;;  %844 = vmatprep.mubr.bf16.mxu0 %v1724_v60 }
  0x77   :  { %893 = vmatprep.mubr.bf16.mxu1 %v1726_v61  ;;  %1546 = vmatprep.subr.bf16.mxu1 %v1792_v4  ;;  %v1731_v4 = vld [vmem:[%s2280_s0 + $0xd8] ss:$20 sps:$4 sm:$0xff]  }
  0x79   :  { %1633 = vmatpush3.bf16.msra.mxu0 %v1979_v37  ;;  %1547 = vmatpush3.bf16.msra.mxu1 %v1804_v6  ;;  %v1740_v6 = vld [vmem:[%s2280_s0 + $0xfc] ss:$20 sps:$4 sm:$0xff]  }
  0x7a   :  { %1634 = vmatprep.subr.bf16.mxu0 %v1998_v41  ;;  %1548 = vmatprep.subr.bf16.mxu1 %v1816_v8  ;;  %v1738_v8 = vld [vmem:[%s2280_s0 + $0xf8] ss:$20 sps:$4 sm:$0xff]  }
  0x7c   :  { %845 = vmatmul.mubr.bf16.gmra.mrb[24].mxu0 %v1728_v62  ;;  %894 = vmatmul.mubr.bf16.gmra.mrb[24].mxu1 %v1729_v63 }
  0x7d   :  { %1635 = vmatpush3.bf16.msra.mxu0 %v1998_v41  ;;  %1549 = vmatpush3.bf16.msra.mxu1 %v1828_v10  ;;  %v1743_v10 = vld [vmem:[%s2280_s0 + $0x124] ss:$20 sps:$4 sm:$0xff]  }
  0x7e   :  { %1636 = vmatprep.subr.bf16.mxu0 %v2013_v44  ;;  %1638 = vmatprep.mubr.msk.bf16.mxu0 %vm365_vm0, %v1730_v0 }
  0x7f   :  { %1550 = vmatprep.subr.bf16.mxu1 %v1840_v12  ;;  %1052 = vmatprep.mubr.bf16.mxu1 %v1734_v2 }
  0x81   :  { %1637 = vmatpush3.bf16.msra.mxu0 %v2013_v44  ;;  %1551 = vmatpush3.bf16.msra.mxu1 %v1852_v14 }
  0x82   :  { %1572 = vmatprep.subr.bf16.mxu0 %v1774_v1  ;;  %1552 = vmatprep.subr.bf16.mxu1 %v1864_v16  ;;  %v1732_v1 = vld [vmem:[%s2280_s0 + $0xf0] ss:$20 sps:$4 sm:$0xff]  }
  0x84   :  { %1639 = vmatmul.mubr.msk.bf16.vlgmr.msra.gmra.mrb[28].mxu0 %vm365_vm0, %v1731_v4 }
  0x85   :  { %1573 = vmatpush3.bf16.msra.mxu0 %v1786_v3  ;;  %1553 = vmatpush3.bf16.msra.mxu1 %v1876_v18  ;;  %v1735_v3 = vld [vmem:[%s2280_s0 + $0x11c] ss:$20 sps:$4 sm:$0xff]  }
  0x86   :  { %1574 = vmatprep.subr.bf16.mxu0 %v1798_v5  ;;  %1554 = vmatprep.subr.bf16.mxu1 %v1888_v20  ;;  %v1737_v5 = vld [vmem:[%s2280_s0 + $0x118] ss:$20 sps:$4 sm:$0xff]  }
  0x87   :  { %1101 = vmatprep.mubr.bf16.mxu0 %v1740_v6 }
  0x89   :  { %1575 = vmatpush3.bf16.msra.mxu0 %v1810_v7  ;;  %1555 = vmatpush3.bf16.msra.mxu1 %v1900_v22  ;;  %v1741_v7 = vld [vmem:[%s2280_s0 + $0x100] ss:$20 sps:$4 sm:$0xff]  }
  0x8a   :  { %1576 = vmatprep.subr.bf16.mxu0 %v1822_v9  ;;  %1556 = vmatprep.subr.bf16.mxu1 %v1912_v24  ;;  %v1742_v9 = vld [vmem:[%s2280_s0 + $0x128] ss:$20 sps:$4 sm:$0xff]  }
  0x8d   :  { %1577 = vmatpush3.bf16.msra.mxu0 %v1834_v11  ;;  %1557 = vmatpush3.bf16.msra.mxu1 %v1924_v26  ;;  %v1745_v11 = vld [vmem:[%s2280_s0 + $0x120] ss:$20 sps:$4 sm:$0xff]  }
  0x8e   :  { %1578 = vmatprep.subr.bf16.mxu0 %v1846_v13  ;;  %1558 = vmatprep.subr.bf16.mxu1 %v1936_v28 }
  0x91   :  { %1579 = vmatpush3.bf16.msra.mxu0 %v1858_v15  ;;  %1559 = vmatpush3.bf16.msra.mxu1 %v1948_v30 }
  0x92   :  { %1580 = vmatprep.subr.bf16.mxu0 %v1870_v17  ;;  %1642 = vmatprep.subr.bf16.mxu1 %v1974_v36 }
  0x94   :  { %1053 = vmatmul.mubr.bf16.vlgmr.msra.gmra.mrb[28].mxu1 %v1732_v1 }
  0x95   :  { %1581 = vmatpush3.bf16.msra.mxu0 %v1882_v19  ;;  %1643 = vmatpush3.bf16.msra.mxu1 %v1974_v36 }
  0x96   :  { %1582 = vmatprep.subr.bf16.mxu0 %v1894_v21  ;;  %1644 = vmatprep.subr.bf16.mxu1 %v1979_v37 }
  0x97   :  { %1060 = vmatprep.mubr.bf16.mxu1 %v1735_v3 }
  0x99   :  { %1583 = vmatpush3.bf16.msra.mxu0 %v1906_v23  ;;  %1645 = vmatpush3.bf16.msra.mxu1 %v1979_v37 }
  0x9a   :  { %1584 = vmatprep.subr.bf16.mxu0 %v1918_v25  ;;  %1646 = vmatprep.subr.bf16.mxu1 %v1998_v41 }
  0x9c   :  { %1061 = vmatmul.mubr.bf16.gmra.mrb[32].mxu1 %v1737_v5 }
  0x9d   :  { %1585 = vmatpush3.bf16.msra.mxu0 %v1930_v27  ;;  %1647 = vmatpush3.bf16.msra.mxu1 %v1998_v41 }
  0x9e   :  { %1586 = vmatprep.subr.bf16.mxu0 %v1942_v29  ;;  %1648 = vmatprep.subr.bf16.mxu1 %v2013_v44 }
  0x9f   :  { %1650 = vmatprep.mubr.msk.bf16.mxu1 %vm365_vm0, %v1741_v7 }
  0xa1   :  { %1587 = vmatpush3.bf16.msra.mxu0 %v1954_v31  ;;  %1649 = vmatpush3.bf16.msra.mxu1 %v2013_v44 }
  0xa4   :  { %1102 = vmatmul.mubr.bf16.vlgmr.msra.gmra.mrb[32].mxu0 %v1738_v8  ;;  %1651 = vmatmul.mubr.msk.bf16.vlgmr.msra.gmra.mrb[36].mxu1 %vm365_vm0, %v1742_v9 }
  0xa5   :  { %1109 = vmatprep.mubr.bf16.mxu0 %v1743_v10 }
  0xac   :  { %1110 = vmatmul.mubr.bf16.gmra.mrb[36].mxu0 %v1745_v11 }
  0xf6   :  { %v1374_v12 = vpop.f32.mrb[0].mxu0 }
  0xf7   :  { %v1402_v13 = vpop.f32.mrb[0].mxu1  ;;  %v1375_v14 = vpop.f32.mrb[1].mxu0 }
  0xf8   :  { %v1376_v15 = vadd.f32 %v1375_v14, %v1374_v12  ;;  %v1403_v16 = vpop.f32.mrb[1].mxu1  ;;  %v1377_v17 = vpop.f32.mrb[2].mxu0 }
  0xf9   :  { %v1404_v18 = vadd.f32 %v1403_v16, %v1402_v13  ;;  %v1405_v19 = vpop.f32.mrb[2].mxu1  ;;  %v1378_v20 = vpop.f32.mrb[3].mxu0 }
  0xfa   :  { %v1379_v21 = vadd.f32 %v1378_v20, %v1377_v17  ;;  %v1406_v22 = vpop.f32.mrb[3].mxu1 }
  0xfb   :  { %v1407_v23 = vadd.f32 %v1406_v22, %v1405_v19  ;;  %v456_v24 = vadd.f32 %v1404_v18, %v1376_v15 }
  0xfd   :  { %v459_v25 = vadd.f32 %v1407_v23, %v1379_v21 }
  0xfe   :  { %v1380_v26 = vpop.f32.mrb[4].mxu0 }
  0xff   :  { %v1408_v27 = vpop.f32.mrb[4].mxu1  ;;  %v1381_v28 = vpop.f32.mrb[5].mxu0 }
 0x100   :  { %v1382_v29 = vadd.f32 %v1381_v28, %v1380_v26  ;;  %v1409_v30 = vpop.f32.mrb[5].mxu1  ;;  %v1383_v31 = vpop.f32.mrb[6].mxu0 }
 0x101   :  { %v1410_v32 = vadd.f32 %v1409_v30, %v1408_v27  ;;  %v1411_v33 = vpop.f32.mrb[6].mxu1  ;;  %v1384_v34 = vpop.f32.mrb[7].mxu0 }
 0x102   :  { %v1385_v35 = vadd.f32 %v1384_v34, %v1383_v31  ;;  %v1412_v36 = vpop.f32.mrb[7].mxu1 }
 0x103   :  { %v1413_v37 = vadd.f32 %v1412_v36, %v1411_v33  ;;  %v464_v38 = vadd.f32 %v1410_v32, %v1382_v29 }
 0x105   :  { %v467_v39 = vadd.f32 %v1413_v37, %v1385_v35 }
 0x107   :  { %v1616_v40 = vpop.f32.mrb[8].mxu0 }
 0x108   :  { %v2234_v41 = vadd.f32 %v1616_v40, %v464_v38  ;;  %v504_v42 = vpop.f32.mrb[9].mxu0 }
 0x109   :  { %v2236_v43 = vadd.f32 %v504_v42, %v456_v24  ;;  %v1617_v44 = vpop.f32.mrb[10].mxu0 }
 0x10a   :  { %v2238_v45 = vadd.f32 %v1617_v44, %v467_v39  ;;  %v507_v46 = vpop.f32.mrb[11].mxu0 }
 0x10b   :  { %v2240_v47 = vadd.f32 %v507_v46, %v459_v25 }
 0x117   :  { %v1436_v48 = vpop.f32.mrb[8].mxu1 }
 0x118   :  { %v1437_v49 = vpop.f32.mrb[9].mxu1 }
 0x119   :  { %v1438_v50 = vadd.f32 %v1437_v49, %v1436_v48  ;;  %v1439_v51 = vpop.f32.mrb[10].mxu1 }
 0x11a   :  { %v1440_v52 = vpop.f32.mrb[11].mxu1 }
 0x11b   :  { %v1441_v53 = vadd.f32 %v1440_v52, %v1439_v51 }
 0x11f   :  { %v1442_v54 = vpop.f32.mrb[12].mxu1 }
 0x120   :  { %v1443_v55 = vpop.f32.mrb[13].mxu1 }
 0x121   :  { %v1444_v56 = vadd.f32 %v1443_v55, %v1442_v54  ;;  %v1445_v57 = vpop.f32.mrb[14].mxu1 }
 0x122   :  { %v1446_v58 = vpop.f32.mrb[15].mxu1 }
 0x123   :  { %v1447_v59 = vadd.f32 %v1446_v58, %v1445_v57 }
 0x127   :  { %v1464_v60 = vpop.f32.mrb[12].mxu0  ;;  %v1628_v61 = vpop.f32.mrb[16].mxu1 }
 0x128   :  { %v1465_v62 = vpop.f32.mrb[13].mxu0  ;;  %v720_v63 = vpop.f32.mrb[17].mxu1 }
 0x129   :  { %v1466_v0 = vadd.f32 %v1465_v62, %v1464_v60  ;;  %v1467_v2 = vpop.f32.mrb[14].mxu0  ;;  %v1629_v4 = vpop.f32.mrb[18].mxu1 }
 0x12a   :  { %v1468_v6 = vpop.f32.mrb[15].mxu0  ;;  %v723_v1 = vpop.f32.mrb[19].mxu1 }
 0x12b   :  { %v1469_v3 = vadd.f32 %v1468_v6, %v1467_v2  ;;  %v672_v5 = vadd.f32 %v1466_v0, %v1438_v50 }
 0x12d   :  { %v2242_v7 = vadd.f32 %v720_v63, %v672_v5  ;;  %v675_v8 = vadd.f32 %v1469_v3, %v1441_v53 }
 0x12f   :  { %v1167_v9 = vmax.f32 %v2236_v43, %v2242_v7  ;;  %v2246_v10 = vadd.f32 %v723_v1, %v675_v8  ;;  %v1470_v11 = vpop.f32.mrb[16].mxu0 }
 0x130   :  { %v1471_v12 = vpop.f32.mrb[17].mxu0 }
 0x131   :  { %v1168_v13 = vmax.f32 %v2240_v47, %v2246_v10  ;;  %v1472_v14 = vadd.f32 %v1471_v12, %v1470_v11  ;;  %v1473_v15 = vpop.f32.mrb[18].mxu0 }
 0x132   :  { %v1474_v16 = vpop.f32.mrb[19].mxu0 }
 0x133   :  { %v680_v17 = vadd.f32 %v1472_v14, %v1444_v56  ;;  %v1475_v18 = vadd.f32 %v1474_v16, %v1473_v15 }
 0x135   :  { %v2250_v19 = vadd.f32 %v1628_v61, %v680_v17  ;;  %v683_v20 = vadd.f32 %v1475_v18, %v1447_v59 }
 0x137   :  { %v1169_v21 = vmax.f32 %v2234_v41, %v2250_v19  ;;  %v2254_v22 = vadd.f32 %v1629_v4, %v683_v20 }
 0x139   :  { %v1170_v23 = vmax.f32 %v2238_v45, %v2254_v22 }
 0x147   :  { %v1498_v24 = vpop.f32.mrb[20].mxu0  ;;  %v1526_v25 = vpop.f32.mrb[20].mxu1 }
 0x148   :  { %v1499_v26 = vpop.f32.mrb[21].mxu0  ;;  %v1527_v27 = vpop.f32.mrb[21].mxu1 }
 0x149   :  { %v1500_v28 = vadd.f32 %v1499_v26, %v1498_v24  ;;  %v1528_v29 = vadd.f32 %v1527_v27, %v1526_v25  ;;  %v1501_v30 = vpop.f32.mrb[22].mxu0  ;;  %v1529_v31 = vpop.f32.mrb[22].mxu1 }
 0x14a   :  { %v1502_v32 = vpop.f32.mrb[23].mxu0  ;;  %v1530_v33 = vpop.f32.mrb[23].mxu1 }
 0x14b   :  { %v1503_v34 = vadd.f32 %v1502_v32, %v1501_v30  ;;  %v1531_v35 = vadd.f32 %v1530_v33, %v1529_v31  ;;  %v888_v36 = vadd.f32 %v1528_v29, %v1500_v28 }
 0x14d   :  { %v891_v37 = vadd.f32 %v1531_v35, %v1503_v34 }
 0x14f   :  { %v1504_v38 = vpop.f32.mrb[24].mxu0  ;;  %v1532_v39 = vpop.f32.mrb[24].mxu1 }
 0x150   :  { %v1505_v40 = vpop.f32.mrb[25].mxu0  ;;  %v1533_v42 = vpop.f32.mrb[25].mxu1 }
 0x151   :  { %v1506_v44 = vadd.f32 %v1505_v40, %v1504_v38  ;;  %v1534_v46 = vadd.f32 %v1533_v42, %v1532_v39  ;;  %v1507_v48 = vpop.f32.mrb[26].mxu0  ;;  %v1535_v49 = vpop.f32.mrb[26].mxu1 }
 0x152   :  { %v1508_v50 = vpop.f32.mrb[27].mxu0  ;;  %v1536_v51 = vpop.f32.mrb[27].mxu1 }
 0x153   :  { %v1509_v52 = vadd.f32 %v1508_v50, %v1507_v48  ;;  %v1537_v53 = vadd.f32 %v1536_v51, %v1535_v49  ;;  %v896_v54 = vadd.f32 %v1534_v46, %v1506_v44 }
 0x155   :  { %v899_v55 = vadd.f32 %v1537_v53, %v1509_v52 }
 0x157   :  { %v1640_v56 = vpop.f32.mrb[28].mxu0 }
 0x158   :  { %v945_v57 = vadd.f32 %v1640_v56, %v896_v54  ;;  %v936_v58 = vpop.f32.mrb[29].mxu0 }
 0x159   :  { %v937_v59 = vadd.f32 %v936_v58, %v888_v36  ;;  %v1641_v60 = vpop.f32.mrb[30].mxu0  ;;  %v1338_v36 = vld [vmem:[%s2281_s2] ss:$0 sm:$0xff] }
 0x15a   :  { %v948_v61 = vadd.f32 %v1641_v60, %v899_v55  ;;  %v939_v62 = vpop.f32.mrb[31].mxu0 }
 0x15b   :  { %v940_v63 = vadd.f32 %v939_v62, %v891_v37 }
 0x167   :  { %v1560_v0 = vpop.f32.mrb[28].mxu1 }
 0x168   :  { %v1561_v2 = vpop.f32.mrb[29].mxu1 }
 0x169   :  { %v1562_v4 = vadd.f32 %v1561_v2, %v1560_v0  ;;  %v1563_v6 = vpop.f32.mrb[30].mxu1 }
 0x16a   :  { %v1564_v1 = vpop.f32.mrb[31].mxu1 }
 0x16b   :  { %v1565_v3 = vadd.f32 %v1564_v1, %v1563_v6 }
 0x16f   :  { %v1566_v5 = vpop.f32.mrb[32].mxu1 }
 0x170   :  { %v1567_v8 = vpop.f32.mrb[33].mxu1 }
 0x171   :  { %v1568_v11 = vadd.f32 %v1567_v8, %v1566_v5  ;;  %v1569_v12 = vpop.f32.mrb[34].mxu1 }
 0x172   :  { %v1570_v14 = vpop.f32.mrb[35].mxu1 }
 0x173   :  { %v1571_v15 = vadd.f32 %v1570_v14, %v1569_v12 }
 0x177   :  { %v1588_v16 = vpop.f32.mrb[32].mxu0  ;;  %v1652_v17 = vpop.f32.mrb[36].mxu1 }
 0x178   :  { %v1589_v18 = vpop.f32.mrb[33].mxu0  ;;  %v1152_v20 = vpop.f32.mrb[37].mxu1 }
 0x179   :  { %v1590_v24 = vadd.f32 %v1589_v18, %v1588_v16  ;;  %v1591_v25 = vpop.f32.mrb[34].mxu0  ;;  %v1653_v26 = vpop.f32.mrb[38].mxu1 }
 0x17a   :  { %v1592_v27 = vpop.f32.mrb[35].mxu0  ;;  %v1155_v28 = vpop.f32.mrb[39].mxu1 }
 0x17b   :  { %v1593_v29 = vadd.f32 %v1592_v27, %v1591_v25  ;;  %v1104_v30 = vadd.f32 %v1590_v24, %v1562_v4 }
 0x17d   :  { %v1153_v31 = vadd.f32 %v1152_v20, %v1104_v30  ;;  %v1107_v32 = vadd.f32 %v1593_v29, %v1565_v3 }
 0x17f   :  { %v1171_v33 = vmax.f32 %v937_v59, %v1153_v31  ;;  %v1156_v34 = vadd.f32 %v1155_v28, %v1107_v32  ;;  %v1594_v35 = vpop.f32.mrb[36].mxu0 }
 0x180   :  { %v1595_v37 = vpop.f32.mrb[37].mxu0 }
 0x181   :  { %v1175_v38 = vmax.f32 %v1167_v9, %v1171_v33  ;;  %v1172_v39 = vmax.f32 %v940_v63, %v1156_v34  ;;  %v1596_v40 = vadd.f32 %v1595_v37, %v1594_v35  ;;  %v1597_v42 = vpop.f32.mrb[38].mxu0 }
 0x182   :  { %v1598_v44 = vpop.f32.mrb[39].mxu0 }
 0x183   :  { %v1186_v46 = vadd.f32 %v1338_v36, %v1175_v38  ;;  %v1176_v48 = vmax.f32 %v1168_v13, %v1172_v39  ;;  %v1112_v49 = vadd.f32 %v1596_v40, %v1568_v11  ;;  %v1599_v50 = vadd.f32 %v1598_v44, %v1597_v42 }
 0x185   :  { %v1187_v51 = vadd.f32 %v1338_v36, %v1176_v48  ;;  %v1161_v52 = vadd.f32 %v1652_v17, %v1112_v49  ;;  %v1115_v53 = vadd.f32 %v1599_v50, %v1571_v15  ;;  %v1190_v54 = vmax.f32 %v1186_v46, 0.0 }
 0x187   :  { %v1191_v55 = vmax.f32 %v1187_v51, 0.0  ;;  %v1173_v56 = vmax.f32 %v945_v57, %v1161_v52  ;;  %v1164_v58 = vadd.f32 %v1653_v26, %v1115_v53 }
 0x189   :  { %v1350_v43 = vpack.c.bf16 %v1191_v55, %v1190_v54  ;;  %v1177_v7 = vmax.f32 %v1169_v21, %v1173_v56  ;;  %v1174_v9 = vmax.f32 %v948_v61, %v1164_v58 }
 0x18b   :  { %1351 = vst [vmem:[%s2282_s3] sm:$0xff] %v1350_v43   ;;  %v1188_v47 = vadd.f32 %v1338_v36, %v1177_v7  ;;  %v1178_v10 = vmax.f32 %v1170_v23, %v1174_v9 }
 0x18d   :  { %v1189_v13 = vadd.f32 %v1338_v36, %v1178_v10  ;;  %v1192_v59 = vmax.f32 %v1188_v47, 0.0 }
 0x18f   :  { %v1193_v60 = vmax.f32 %v1189_v13, 0.0 }
 0x191   :  { %v1355_v57 = vpack.c.bf16 %v1193_v60, %v1192_v59 }
 0x193   :  { %1357 = vst [vmem:[%s2282_s3 + $0x8] sm:$0xff] %v1355_v57  }

// kernel: localization_network.6
= control target key start
LH: loop header
LB: loop body
LE: loop exit
PB: predicated region body
PF: predicated region fallthrough
CT: control target
= control target key end

     0   :  { %s3834_s1 = inlined_call_operand.vmem [shape: bf16[1152,256], index: 1, kind: input, shape index: {}]   ;;  %s3835_s0 = inlined_call_operand.vmem [shape: bf16[4,8,1152], index: 0, kind: input, shape index: {}]   ;;  %s3836_s2 = inlined_call_operand.vmem [shape: f32[1,256], index: 2, kind: input, shape index: {}]   ;;  %s3837_s3 = inlined_call_operand.vmem [shape: bf16[8,256], index: 3, kind: output, shape index: {}]  }
   0x1   :  { %v2147_v0 = vld [vmem:[%s3834_s1 + $0x4] ss:$8 sps:$4 sm:$0xff]   ;;  %v2149_v1 = vld [vmem:[%s3834_s1] ss:$8 sps:$4 sm:$0xff]   ;;  %v2150_v2 = vld [vmem:[%s3834_s1 + $0x14] ss:$8 sps:$4 sm:$0xff]  }
   0x2   :  { %916 = vmatprep.subr.bf16.mxu0 %v2147_v0  ;;  %1159 = vmatprep.subr.bf16.mxu1 %v2147_v0  ;;  %v2152_v3 = vld [vmem:[%s3834_s1 + $0x10] ss:$8 sps:$4 sm:$0xff]   ;;  %v2153_v4 = vld [vmem:[%s3834_s1 + $0x24] ss:$8 sps:$4 sm:$0xff]   ;;  %v2155_v5 = vld [vmem:[%s3834_s1 + $0x20] ss:$8 sps:$4 sm:$0xff]  }
   0x3   :  { %917 = vmatpush1.bf16.msra.mxu0 %v2149_v1  ;;  %1160 = vmatpush1.bf16.msra.mxu1 %v2149_v1  ;;  %v2156_v6 = vld [vmem:[%s3834_s1 + $0x34] ss:$8 sps:$4 sm:$0xff]   ;;  %v2158_v7 = vld [vmem:[%s3834_s1 + $0x30] ss:$8 sps:$4 sm:$0xff]   ;;  %v2159_v8 = vld [vmem:[%s3834_s1 + $0x44] ss:$8 sps:$4 sm:$0xff]  }
   0x4   :  { %918 = vmatprep.subr.bf16.mxu0 %v2150_v2  ;;  %1161 = vmatprep.subr.bf16.mxu1 %v2150_v2  ;;  %v2161_v9 = vld [vmem:[%s3834_s1 + $0x40] ss:$8 sps:$4 sm:$0xff]   ;;  %v2162_v10 = vld [vmem:[%s3834_s1 + $0x54] ss:$8 sps:$4 sm:$0xff]   ;;  %v2164_v11 = vld [vmem:[%s3834_s1 + $0x50] ss:$8 sps:$4 sm:$0xff]  }
   0x5   :  { %v2165_v12 = vld [vmem:[%s3834_s1 + $0x64] ss:$8 sps:$4 sm:$0xff]   ;;  %v2167_v16 = vld [vmem:[%s3834_s1 + $0x60] ss:$8 sps:$4 sm:$0xff]   ;;  %v2168_v18 = vld [vmem:[%s3834_s1 + $0x74] ss:$8 sps:$4 sm:$0xff]  }
   0x6   :  { %v2495_v13 = vld [vmem:[%s3835_s0] sm:$0xff]  ;;  %v2170_v19 = vld [vmem:[%s3834_s1 + $0x70] ss:$8 sps:$4 sm:$0xff]   ;;  %v2174_v22 = vld [vmem:[%s3834_s1 + $0x94] ss:$8 sps:$4 sm:$0xff]  }
   0x7   :  { %919 = vmatpush1.bf16.msra.mxu0 %v2152_v3  ;;  %1162 = vmatpush1.bf16.msra.mxu1 %v2152_v3  ;;  %v1886_v14 = vcombine.high %v2495_v13, %v2495_v13  ;;  %v2502_v15 = vld [vmem:[%s3835_s0 + $0x24] sm:$0xff]  ;;  %v2176_v23 = vld [vmem:[%s3834_s1 + $0x90] ss:$8 sps:$4 sm:$0xff]   ;;  %v2180_v26 = vld [vmem:[%s3834_s1 + $0xb4] ss:$8 sps:$4 sm:$0xff]   ;;  %v1885_v37 = vcombine.low %v2495_v13, %v2495_v13 }
   0x8   :  { %920 = vmatprep.subr.bf16.mxu0 %v2153_v4  ;;  %1163 = vmatprep.subr.bf16.mxu1 %v2153_v4  ;;  %v2044_v17 = vcombine.high %v2502_v15, %v2502_v15  ;;  %v2171_v20 = vld [vmem:[%s3834_s1 + $0x84] ss:$8 sps:$4 sm:$0xff]   ;;  %v2173_v21 = vld [vmem:[%s3834_s1 + $0x80] ss:$8 sps:$4 sm:$0xff]   ;;  %v2182_v27 = vld [vmem:[%s3834_s1 + $0xb0] ss:$8 sps:$4 sm:$0xff]   ;;  %v2043_v38 = vcombine.low %v2502_v15, %v2502_v15 }
   0x9   :  { %948 = vmatprep.mubr.bf16.mxu0 %v1886_v14  ;;  %v2177_v24 = vld [vmem:[%s3834_s1 + $0xa4] ss:$8 sps:$4 sm:$0xff]   ;;  %v2179_v25 = vld [vmem:[%s3834_s1 + $0xa0] ss:$8 sps:$4 sm:$0xff]   ;;  %v2186_v30 = vld [vmem:[%s3834_s1 + $0xd4] ss:$8 sps:$4 sm:$0xff]  }
   0xa   :  { %1191 = vmatprep.mubr.bf16.mxu1 %v2044_v17  ;;  %v2183_v28 = vld [vmem:[%s3834_s1 + $0xc4] ss:$8 sps:$4 sm:$0xff]   ;;  %v2185_v29 = vld [vmem:[%s3834_s1 + $0xc0] ss:$8 sps:$4 sm:$0xff]   ;;  %v2188_v31 = vld [vmem:[%s3834_s1 + $0xd0] ss:$8 sps:$4 sm:$0xff]  }
   0xb   :  { %921 = vmatpush1.bf16.msra.mxu0 %v2155_v5  ;;  %1164 = vmatpush1.bf16.msra.mxu1 %v2155_v5  ;;  %v2189_v32 = vld [vmem:[%s3834_s1 + $0xe4] ss:$8 sps:$4 sm:$0xff]   ;;  %v2191_v33 = vld [vmem:[%s3834_s1 + $0xe0] ss:$8 sps:$4 sm:$0xff]   ;;  %v2192_v34 = vld [vmem:[%s3834_s1 + $0xf4] ss:$8 sps:$4 sm:$0xff]  }
   0xc   :  { %922 = vmatprep.subr.bf16.mxu0 %v2156_v6  ;;  %1165 = vmatprep.subr.bf16.mxu1 %v2156_v6  ;;  %v2194_v35 = vld [vmem:[%s3834_s1 + $0xf0] ss:$8 sps:$4 sm:$0xff]   ;;  %v2197_v36 = vld [vmem:[%s3834_s1 + $0x104] ss:$8 sps:$4 sm:$0xff]   ;;  %v2583_v41 = vld [vmem:[%s3834_s1 + $0x100] ss:$8 sps:$4 sm:$0xff]  }
   0xd   :  { %v2573_v39 = vld [vmem:[%s3835_s0 + $0x8] sm:$0xff]  ;;  %v2588_v42 = vld [vmem:[%s3834_s1 + $0x114] ss:$8 sps:$4 sm:$0xff]   ;;  %v2599_v45 = vld [vmem:[%s3834_s1 + $0x110] ss:$8 sps:$4 sm:$0xff]  }
   0xe   :  { %v2578_v40 = vld [vmem:[%s3835_s0 + $0x2c] sm:$0xff]  ;;  %v1888_v43 = vcombine.high %v2573_v39, %v2573_v39  ;;  %v2613_v47 = vld [vmem:[%s3834_s1 + $0x120] ss:$8 sps:$4 sm:$0xff]   ;;  %v2620_v48 = vld [vmem:[%s3834_s1 + $0x134] ss:$8 sps:$4 sm:$0xff]  }
   0xf   :  { %923 = vmatpush1.bf16.msra.mxu0 %v2158_v7  ;;  %1166 = vmatpush1.bf16.msra.mxu1 %v2158_v7  ;;  %v2046_v44 = vcombine.high %v2578_v40, %v2578_v40  ;;  %v2606_v46 = vld [vmem:[%s3834_s1 + $0x124] ss:$8 sps:$4 sm:$0xff]   ;;  %v2627_v49 = vld [vmem:[%s3834_s1 + $0x130] ss:$8 sps:$4 sm:$0xff]   ;;  %v2641_v51 = vld [vmem:[%s3834_s1 + $0x140] ss:$8 sps:$4 sm:$0xff]  }
  0x10   :  { %924 = vmatprep.subr.bf16.mxu0 %v2159_v8  ;;  %1167 = vmatprep.subr.bf16.mxu1 %v2159_v8  ;;  %v2634_v50 = vld [vmem:[%s3834_s1 + $0x144] ss:$8 sps:$4 sm:$0xff]   ;;  %v2648_v52 = vld [vmem:[%s3834_s1 + $0x154] ss:$8 sps:$4 sm:$0xff]   ;;  %v2655_v53 = vld [vmem:[%s3834_s1 + $0x150] ss:$8 sps:$4 sm:$0xff]  }
  0x11   :  { %v2662_v54 = vld [vmem:[%s3834_s1 + $0x164] ss:$8 sps:$4 sm:$0xff]   ;;  %v2669_v55 = vld [vmem:[%s3834_s1 + $0x160] ss:$8 sps:$4 sm:$0xff]   ;;  %v2676_v56 = vld [vmem:[%s3834_s1 + $0x174] ss:$8 sps:$4 sm:$0xff]  }
  0x12   :  { %v2683_v57 = vld [vmem:[%s3834_s1 + $0x170] ss:$8 sps:$4 sm:$0xff]   ;;  %v2690_v58 = vld [vmem:[%s3834_s1 + $0x184] ss:$8 sps:$4 sm:$0xff]   ;;  %v2697_v59 = vld [vmem:[%s3834_s1 + $0x180] ss:$8 sps:$4 sm:$0xff]  }
  0x13   :  { %925 = vmatpush1.bf16.msra.mxu0 %v2161_v9  ;;  %1168 = vmatpush1.bf16.msra.mxu1 %v2161_v9  ;;  %v2704_v60 = vld [vmem:[%s3834_s1 + $0x194] ss:$8 sps:$4 sm:$0xff]   ;;  %v2711_v61 = vld [vmem:[%s3834_s1 + $0x190] ss:$8 sps:$4 sm:$0xff]   ;;  %v2718_v62 = vld [vmem:[%s3834_s1 + $0x1a4] ss:$8 sps:$4 sm:$0xff]  }
  0x14   :  { %926 = vmatprep.subr.bf16.mxu0 %v2162_v10  ;;  %1169 = vmatprep.subr.bf16.mxu1 %v2162_v10  ;;  %v2725_v63 = vld [vmem:[%s3834_s1 + $0x1a0] ss:$8 sps:$4 sm:$0xff]   ;;  %v2732_v0 = vld [vmem:[%s3834_s1 + $0x1b4] ss:$8 sps:$4 sm:$0xff]   ;;  %v2739_v1 = vld [vmem:[%s3834_s1 + $0x1b0] ss:$8 sps:$4 sm:$0xff]  }
  0x15   :  { %v2746_v2 = vld [vmem:[%s3834_s1 + $0x1c4] ss:$8 sps:$4 sm:$0xff]   ;;  %v2753_v3 = vld [vmem:[%s3834_s1 + $0x1c0] ss:$8 sps:$4 sm:$0xff]   ;;  %v2760_v4 = vld [vmem:[%s3834_s1 + $0x1d4] ss:$8 sps:$4 sm:$0xff]  }
  0x16   :  { %v2767_v5 = vld [vmem:[%s3834_s1 + $0x1d0] ss:$8 sps:$4 sm:$0xff]   ;;  %v2774_v6 = vld [vmem:[%s3834_s1 + $0x1e4] ss:$8 sps:$4 sm:$0xff]   ;;  %v2781_v7 = vld [vmem:[%s3834_s1 + $0x1e0] ss:$8 sps:$4 sm:$0xff]  }
  0x17   :  { %927 = vmatpush1.bf16.msra.mxu0 %v2164_v11  ;;  %1170 = vmatpush1.bf16.msra.mxu1 %v2164_v11  ;;  %v2788_v8 = vld [vmem:[%s3834_s1 + $0x1f4] ss:$8 sps:$4 sm:$0xff]   ;;  %v2795_v9 = vld [vmem:[%s3834_s1 + $0x1f0] ss:$8 sps:$4 sm:$0xff]   ;;  %v2802_v10 = vld [vmem:[%s3834_s1 + $0x204] ss:$8 sps:$4 sm:$0xff]   ;;  %v1887_v11 = vcombine.low %v2573_v39, %v2573_v39 }
  0x18   :  { %928 = vmatprep.subr.bf16.mxu0 %v2165_v12  ;;  %1171 = vmatprep.subr.bf16.mxu1 %v2165_v12  ;;  %v2045_v12 = vcombine.low %v2578_v40, %v2578_v40  ;;  %v2811_v13 = vld [vmem:[%s3835_s0 + $0x10] sm:$0xff]  ;;  %v2823_v15 = vld [vmem:[%s3834_s1 + $0x200] ss:$8 sps:$4 sm:$0xff]   ;;  %v2988_v40 = vld [vmem:[%s3834_s1 + $0x2c4] ss:$8 sps:$4 sm:$0xff]  }
  0x19   :  { %v2816_v14 = vld [vmem:[%s3835_s0 + $0x34] sm:$0xff]  ;;  %v1890_v17 = vcombine.high %v2811_v13, %v2811_v13  ;;  %3953 = vst [vmem:[#allocation3_spill] sm:$0xff] %v2988_v40 }
  0x1a   :  { %v2981_v39 = vld [vmem:[%s3834_s1 + $0x2b0] ss:$8 sps:$4 sm:$0xff]  }
  0x1b   :  { %929 = vmatpush1.bf16.msra.mxu0 %v2167_v16  ;;  %1172 = vmatpush1.bf16.msra.mxu1 %v2167_v16  ;;  %v2830_v16 = vld [vmem:[%s3834_s1 + $0x214] ss:$8 sps:$4 sm:$0xff]   ;;  %3952 = vst [vmem:[#allocation2_spill] sm:$0xff] %v2981_v39 }
  0x1c   :  { %930 = vmatprep.subr.bf16.mxu0 %v2168_v18  ;;  %1173 = vmatprep.subr.bf16.mxu1 %v2168_v18  ;;  %v2048_v18 = vcombine.high %v2816_v14, %v2816_v14 }
  0x1f   :  { %931 = vmatpush1.bf16.msra.mxu0 %v2170_v19  ;;  %1174 = vmatpush1.bf16.msra.mxu1 %v2170_v19  ;;  %v2841_v19 = vld [vmem:[%s3834_s1 + $0x210] ss:$8 sps:$4 sm:$0xff]  }
  0x20   :  { %932 = vmatprep.subr.bf16.mxu0 %v2171_v20  ;;  %1175 = vmatprep.subr.bf16.mxu1 %v2171_v20  ;;  %v2848_v20 = vld [vmem:[%s3834_s1 + $0x224] ss:$8 sps:$4 sm:$0xff]  }
  0x23   :  { %933 = vmatpush1.bf16.msra.mxu0 %v2173_v21  ;;  %1176 = vmatpush1.bf16.msra.mxu1 %v2173_v21  ;;  %v2855_v21 = vld [vmem:[%s3834_s1 + $0x220] ss:$8 sps:$4 sm:$0xff]  }
  0x24   :  { %934 = vmatprep.subr.bf16.mxu0 %v2174_v22  ;;  %1177 = vmatprep.subr.bf16.mxu1 %v2174_v22  ;;  %v2862_v22 = vld [vmem:[%s3834_s1 + $0x234] ss:$8 sps:$4 sm:$0xff]  }
  0x27   :  { %935 = vmatpush1.bf16.msra.mxu0 %v2176_v23  ;;  %1178 = vmatpush1.bf16.msra.mxu1 %v2176_v23  ;;  %v2869_v23 = vld [vmem:[%s3834_s1 + $0x230] ss:$8 sps:$4 sm:$0xff]  }
  0x28   :  { %936 = vmatprep.subr.bf16.mxu0 %v2177_v24  ;;  %1179 = vmatprep.subr.bf16.mxu1 %v2177_v24  ;;  %v2876_v24 = vld [vmem:[%s3834_s1 + $0x244] ss:$8 sps:$4 sm:$0xff]  }
  0x2b   :  { %937 = vmatpush1.bf16.msra.mxu0 %v2179_v25  ;;  %1180 = vmatpush1.bf16.msra.mxu1 %v2179_v25  ;;  %v2883_v25 = vld [vmem:[%s3834_s1 + $0x240] ss:$8 sps:$4 sm:$0xff]  }
  0x2c   :  { %938 = vmatprep.subr.bf16.mxu0 %v2180_v26  ;;  %1181 = vmatprep.subr.bf16.mxu1 %v2180_v26  ;;  %v2890_v26 = vld [vmem:[%s3834_s1 + $0x254] ss:$8 sps:$4 sm:$0xff]  }
  0x2f   :  { %939 = vmatpush1.bf16.msra.mxu0 %v2182_v27  ;;  %1182 = vmatpush1.bf16.msra.mxu1 %v2182_v27  ;;  %v2897_v27 = vld [vmem:[%s3834_s1 + $0x250] ss:$8 sps:$4 sm:$0xff]  }
  0x30   :  { %940 = vmatprep.subr.bf16.mxu0 %v2183_v28  ;;  %1183 = vmatprep.subr.bf16.mxu1 %v2183_v28  ;;  %v2904_v28 = vld [vmem:[%s3834_s1 + $0x264] ss:$8 sps:$4 sm:$0xff]  }
  0x33   :  { %941 = vmatpush1.bf16.msra.mxu0 %v2185_v29  ;;  %1184 = vmatpush1.bf16.msra.mxu1 %v2185_v29  ;;  %v2911_v29 = vld [vmem:[%s3834_s1 + $0x260] ss:$8 sps:$4 sm:$0xff]  }
  0x34   :  { %942 = vmatprep.subr.bf16.mxu0 %v2186_v30  ;;  %1185 = vmatprep.subr.bf16.mxu1 %v2186_v30  ;;  %v2918_v30 = vld [vmem:[%s3834_s1 + $0x274] ss:$8 sps:$4 sm:$0xff]  }
  0x37   :  { %943 = vmatpush1.bf16.msra.mxu0 %v2188_v31  ;;  %1186 = vmatpush1.bf16.msra.mxu1 %v2188_v31  ;;  %v2925_v31 = vld [vmem:[%s3834_s1 + $0x270] ss:$8 sps:$4 sm:$0xff]  }
  0x38   :  { %944 = vmatprep.subr.bf16.mxu0 %v2189_v32  ;;  %1187 = vmatprep.subr.bf16.mxu1 %v2189_v32  ;;  %v2932_v32 = vld [vmem:[%s3834_s1 + $0x284] ss:$8 sps:$4 sm:$0xff]  }
  0x3b   :  { %945 = vmatpush1.bf16.msra.mxu0 %v2191_v33  ;;  %1188 = vmatpush1.bf16.msra.mxu1 %v2191_v33  ;;  %v2939_v33 = vld [vmem:[%s3834_s1 + $0x280] ss:$8 sps:$4 sm:$0xff]  }
  0x3c   :  { %946 = vmatprep.subr.bf16.mxu0 %v2192_v34  ;;  %1189 = vmatprep.subr.bf16.mxu1 %v2192_v34  ;;  %v2946_v34 = vld [vmem:[%s3834_s1 + $0x294] ss:$8 sps:$4 sm:$0xff]  }
  0x3f   :  { %947 = vmatpush1.bf16.msra.mxu0 %v2194_v35  ;;  %1190 = vmatpush1.bf16.msra.mxu1 %v2194_v35  ;;  %v2953_v35 = vld [vmem:[%s3834_s1 + $0x290] ss:$8 sps:$4 sm:$0xff]  }
  0x40   :  { %957 = vmatprep.subr.bf16.mxu0 %v2197_v36  ;;  %1200 = vmatprep.subr.bf16.mxu1 %v2197_v36  ;;  %v2960_v36 = vld [vmem:[%s3834_s1 + $0x2a4] ss:$8 sps:$4 sm:$0xff]  }
  0x42   :  { %949 = vmatmul.mubr.bf16.vlgmr.msra.gmra.mrb[0].mxu0 %v1885_v37  ;;  %1192 = vmatmul.mubr.bf16.vlgmr.msra.gmra.mrb[0].mxu1 %v2043_v38  ;;  %v2967_v37 = vld [vmem:[%s3834_s1 + $0x2a0] ss:$8 sps:$4 sm:$0xff]   ;;  %v2974_v38 = vld [vmem:[%s3834_s1 + $0x2b4] ss:$8 sps:$4 sm:$0xff]  }
  0x43   :  { %958 = vmatpush1.bf16.msra.mxu0 %v2583_v41  ;;  %1201 = vmatpush1.bf16.msra.mxu1 %v2583_v41 }
  0x44   :  { %959 = vmatprep.subr.bf16.mxu0 %v2588_v42  ;;  %1202 = vmatprep.subr.bf16.mxu1 %v2588_v42 }
  0x45   :  { %989 = vmatprep.mubr.bf16.mxu0 %v1888_v43  ;;  %1232 = vmatprep.mubr.bf16.mxu1 %v2046_v44  ;;  %v2995_v43 = vld [vmem:[%s3834_s1 + $0x2c0] ss:$8 sps:$4 sm:$0xff]   ;;  %v3002_v44 = vld [vmem:[%s3834_s1 + $0x2d4] ss:$8 sps:$4 sm:$0xff]  }
  0x46   :  { %3954 = vst [vmem:[#allocation4_spill] sm:$0xff] %v2995_v43  ;;  %3955 = vst [vmem:[#allocation5_spill] sm:$0xff] %v3002_v44 }
  0x47   :  { %960 = vmatpush1.bf16.msra.mxu0 %v2599_v45  ;;  %1203 = vmatpush1.bf16.msra.mxu1 %v2599_v45 }
  0x48   :  { %961 = vmatprep.subr.bf16.mxu0 %v2606_v46  ;;  %1204 = vmatprep.subr.bf16.mxu1 %v2606_v46 }
  0x4b   :  { %962 = vmatpush1.bf16.msra.mxu0 %v2613_v47  ;;  %1205 = vmatpush1.bf16.msra.mxu1 %v2613_v47 }
  0x4c   :  { %963 = vmatprep.subr.bf16.mxu0 %v2620_v48  ;;  %1206 = vmatprep.subr.bf16.mxu1 %v2620_v48 }
  0x4f   :  { %964 = vmatpush1.bf16.msra.mxu0 %v2627_v49  ;;  %1207 = vmatpush1.bf16.msra.mxu1 %v2627_v49 }
  0x50   :  { %965 = vmatprep.subr.bf16.mxu0 %v2634_v50  ;;  %1208 = vmatprep.subr.bf16.mxu1 %v2634_v50 }
  0x53   :  { %966 = vmatpush1.bf16.msra.mxu0 %v2641_v51  ;;  %1209 = vmatpush1.bf16.msra.mxu1 %v2641_v51 }
  0x54   :  { %967 = vmatprep.subr.bf16.mxu0 %v2648_v52  ;;  %1210 = vmatprep.subr.bf16.mxu1 %v2648_v52 }
  0x57   :  { %968 = vmatpush1.bf16.msra.mxu0 %v2655_v53  ;;  %1211 = vmatpush1.bf16.msra.mxu1 %v2655_v53 }
  0x58   :  { %969 = vmatprep.subr.bf16.mxu0 %v2662_v54  ;;  %1212 = vmatprep.subr.bf16.mxu1 %v2662_v54 }
  0x5b   :  { %970 = vmatpush1.bf16.msra.mxu0 %v2669_v55  ;;  %1213 = vmatpush1.bf16.msra.mxu1 %v2669_v55 }
  0x5c   :  { %971 = vmatprep.subr.bf16.mxu0 %v2676_v56  ;;  %1214 = vmatprep.subr.bf16.mxu1 %v2676_v56 }
  0x5f   :  { %972 = vmatpush1.bf16.msra.mxu0 %v2683_v57  ;;  %1215 = vmatpush1.bf16.msra.mxu1 %v2683_v57 }
  0x60   :  { %973 = vmatprep.subr.bf16.mxu0 %v2690_v58  ;;  %1216 = vmatprep.subr.bf16.mxu1 %v2690_v58 }
  0x63   :  { %974 = vmatpush1.bf16.msra.mxu0 %v2697_v59  ;;  %1217 = vmatpush1.bf16.msra.mxu1 %v2697_v59 }
  0x64   :  { %975 = vmatprep.subr.bf16.mxu0 %v2704_v60  ;;  %1218 = vmatprep.subr.bf16.mxu1 %v2704_v60 }
  0x67   :  { %976 = vmatpush1.bf16.msra.mxu0 %v2711_v61  ;;  %1219 = vmatpush1.bf16.msra.mxu1 %v2711_v61 }
  0x68   :  { %977 = vmatprep.subr.bf16.mxu0 %v2718_v62  ;;  %1220 = vmatprep.subr.bf16.mxu1 %v2718_v62 }
  0x6b   :  { %978 = vmatpush1.bf16.msra.mxu0 %v2725_v63  ;;  %1221 = vmatpush1.bf16.msra.mxu1 %v2725_v63 }
  0x6c   :  { %979 = vmatprep.subr.bf16.mxu0 %v2732_v0  ;;  %1222 = vmatprep.subr.bf16.mxu1 %v2732_v0 }
  0x6f   :  { %980 = vmatpush1.bf16.msra.mxu0 %v2739_v1  ;;  %1223 = vmatpush1.bf16.msra.mxu1 %v2739_v1 }
  0x70   :  { %981 = vmatprep.subr.bf16.mxu0 %v2746_v2  ;;  %1224 = vmatprep.subr.bf16.mxu1 %v2746_v2 }
  0x73   :  { %982 = vmatpush1.bf16.msra.mxu0 %v2753_v3  ;;  %1225 = vmatpush1.bf16.msra.mxu1 %v2753_v3 }
  0x74   :  { %983 = vmatprep.subr.bf16.mxu0 %v2760_v4  ;;  %1226 = vmatprep.subr.bf16.mxu1 %v2760_v4 }
  0x77   :  { %984 = vmatpush1.bf16.msra.mxu0 %v2767_v5  ;;  %1227 = vmatpush1.bf16.msra.mxu1 %v2767_v5 }
  0x78   :  { %985 = vmatprep.subr.bf16.mxu0 %v2774_v6  ;;  %1228 = vmatprep.subr.bf16.mxu1 %v2774_v6 }
  0x7b   :  { %986 = vmatpush1.bf16.msra.mxu0 %v2781_v7  ;;  %1229 = vmatpush1.bf16.msra.mxu1 %v2781_v7 }
  0x7c   :  { %987 = vmatprep.subr.bf16.mxu0 %v2788_v8  ;;  %1230 = vmatprep.subr.bf16.mxu1 %v2788_v8 }
  0x7f   :  { %988 = vmatpush1.bf16.msra.mxu0 %v2795_v9  ;;  %1231 = vmatpush1.bf16.msra.mxu1 %v2795_v9 }
  0x80   :  { %998 = vmatprep.subr.bf16.mxu0 %v2802_v10  ;;  %1241 = vmatprep.subr.bf16.mxu1 %v2802_v10 }
  0x82   :  { %990 = vmatmul.mubr.bf16.vlgmr.msra.gmra.mrb[0].mxu0 %v1887_v11  ;;  %1233 = vmatmul.mubr.bf16.vlgmr.msra.gmra.mrb[0].mxu1 %v2045_v12  ;;  %v3009_v11 = vld [vmem:[%s3834_s1 + $0x2d0] ss:$8 sps:$4 sm:$0xff]   ;;  %v3016_v12 = vld [vmem:[%s3834_s1 + $0x2e4] ss:$8 sps:$4 sm:$0xff]  }
  0x83   :  { %999 = vmatpush1.bf16.msra.mxu0 %v2823_v15  ;;  %1242 = vmatpush1.bf16.msra.mxu1 %v2823_v15  ;;  %3956 = vst [vmem:[#allocation6_spill] sm:$0xff] %v3009_v11  ;;  %3957 = vst [vmem:[#allocation7_spill] sm:$0xff] %v3016_v12 }
  0x84   :  { %1000 = vmatprep.subr.bf16.mxu0 %v2830_v16  ;;  %1243 = vmatprep.subr.bf16.mxu1 %v2830_v16 }
  0x85   :  { %1030 = vmatprep.mubr.bf16.mxu0 %v1890_v17  ;;  %1273 = vmatprep.mubr.bf16.mxu1 %v2048_v18  ;;  %v3023_v17 = vld [vmem:[%s3834_s1 + $0x2e0] ss:$8 sps:$4 sm:$0xff]   ;;  %v3030_v18 = vld [vmem:[%s3834_s1 + $0x2f4] ss:$8 sps:$4 sm:$0xff]  }
  0x86   :  { %3958 = vst [vmem:[#allocation8_spill] sm:$0xff] %v3023_v17  ;;  %3959 = vst [vmem:[#allocation9_spill] sm:$0xff] %v3030_v18 }
  0x87   :  { %1001 = vmatpush1.bf16.msra.mxu0 %v2841_v19  ;;  %1244 = vmatpush1.bf16.msra.mxu1 %v2841_v19 }
  0x88   :  { %1002 = vmatprep.subr.bf16.mxu0 %v2848_v20  ;;  %1245 = vmatprep.subr.bf16.mxu1 %v2848_v20 }
  0x8b   :  { %1003 = vmatpush1.bf16.msra.mxu0 %v2855_v21  ;;  %1246 = vmatpush1.bf16.msra.mxu1 %v2855_v21 }
  0x8c   :  { %1004 = vmatprep.subr.bf16.mxu0 %v2862_v22  ;;  %1247 = vmatprep.subr.bf16.mxu1 %v2862_v22 }
  0x8f   :  { %1005 = vmatpush1.bf16.msra.mxu0 %v2869_v23  ;;  %1248 = vmatpush1.bf16.msra.mxu1 %v2869_v23 }
  0x90   :  { %1006 = vmatprep.subr.bf16.mxu0 %v2876_v24  ;;  %1249 = vmatprep.subr.bf16.mxu1 %v2876_v24 }
  0x93   :  { %1007 = vmatpush1.bf16.msra.mxu0 %v2883_v25  ;;  %1250 = vmatpush1.bf16.msra.mxu1 %v2883_v25 }
  0x94   :  { %1008 = vmatprep.subr.bf16.mxu0 %v2890_v26  ;;  %1251 = vmatprep.subr.bf16.mxu1 %v2890_v26 }
  0x97   :  { %1009 = vmatpush1.bf16.msra.mxu0 %v2897_v27  ;;  %1252 = vmatpush1.bf16.msra.mxu1 %v2897_v27 }
  0x98   :  { %1010 = vmatprep.subr.bf16.mxu0 %v2904_v28  ;;  %1253 = vmatprep.subr.bf16.mxu1 %v2904_v28 }
  0x9b   :  { %1011 = vmatpush1.bf16.msra.mxu0 %v2911_v29  ;;  %1254 = vmatpush1.bf16.msra.mxu1 %v2911_v29 }
  0x9c   :  { %1012 = vmatprep.subr.bf16.mxu0 %v2918_v30  ;;  %1255 = vmatprep.subr.bf16.mxu1 %v2918_v30 }
  0x9f   :  { %1013 = vmatpush1.bf16.msra.mxu0 %v2925_v31  ;;  %1256 = vmatpush1.bf16.msra.mxu1 %v2925_v31 }
  0xa0   :  { %1014 = vmatprep.subr.bf16.mxu0 %v2932_v32  ;;  %1257 = vmatprep.subr.bf16.mxu1 %v2932_v32 }
  0xa3   :  { %1015 = vmatpush1.bf16.msra.mxu0 %v2939_v33  ;;  %1258 = vmatpush1.bf16.msra.mxu1 %v2939_v33 }
  0xa4   :  { %1016 = vmatprep.subr.bf16.mxu0 %v2946_v34  ;;  %1259 = vmatprep.subr.bf16.mxu1 %v2946_v34 }
  0xa7   :  { %1017 = vmatpush1.bf16.msra.mxu0 %v2953_v35  ;;  %1260 = vmatpush1.bf16.msra.mxu1 %v2953_v35 }
  0xa8   :  { %1018 = vmatprep.subr.bf16.mxu0 %v2960_v36  ;;  %1261 = vmatprep.subr.bf16.mxu1 %v2960_v36 }
  0xab   :  { %1019 = vmatpush1.bf16.msra.mxu0 %v2967_v37  ;;  %1262 = vmatpush1.bf16.msra.mxu1 %v2967_v37 }
  0xac   :  { %1020 = vmatprep.subr.bf16.mxu0 %v2974_v38  ;;  %1263 = vmatprep.subr.bf16.mxu1 %v2974_v38 }
  0xaf   :  { %1021 = vmatpush1.bf16.msra.mxu0 %v2981_v39  ;;  %1264 = vmatpush1.bf16.msra.mxu1 %v2981_v39  ;;  %v3090_v39 = vld [vmem:[%s3834_s1 + $0x324] ss:$8 sps:$4 sm:$0xff]  }
  0xb0   :  { %1022 = vmatprep.subr.bf16.mxu0 %v2988_v40  ;;  %1265 = vmatprep.subr.bf16.mxu1 %v2988_v40  ;;  %3964 = vst [vmem:[#allocation14_spill] sm:$0xff] %v3090_v39 }
  0xb3   :  { %1023 = vmatpush1.bf16.msra.mxu0 %v2995_v43  ;;  %1266 = vmatpush1.bf16.msra.mxu1 %v2995_v43  ;;  %v3053_v43 = vld [vmem:[%s3835_s0 + $0x18] sm:$0xff] }
  0xb4   :  { %1024 = vmatprep.subr.bf16.mxu0 %v3002_v44  ;;  %1267 = vmatprep.subr.bf16.mxu1 %v3002_v44  ;;  %v1889_v44 = vcombine.low %v2811_v13, %v2811_v13  ;;  %v3065_v13 = vld [vmem:[%s3834_s1 + $0x300] ss:$8 sps:$4 sm:$0xff]   ;;  %v1892_v40 = vcombine.high %v3053_v43, %v3053_v43 }
  0xb7   :  { %1025 = vmatpush1.bf16.msra.mxu0 %v3009_v11  ;;  %1268 = vmatpush1.bf16.msra.mxu1 %v3009_v11  ;;  %v3037_v11 = vld [vmem:[%s3834_s1 + $0x2f0] ss:$8 sps:$4 sm:$0xff]  }
  0xb8   :  { %1026 = vmatprep.subr.bf16.mxu0 %v3016_v12  ;;  %1269 = vmatprep.subr.bf16.mxu1 %v3016_v12  ;;  %3960 = vst [vmem:[#allocation10_spill] sm:$0xff] %v3037_v11  ;;  %v3044_v12 = vld [vmem:[%s3834_s1 + $0x304] ss:$8 sps:$4 sm:$0xff]  }
  0xb9   :  { %3961 = vst [vmem:[#allocation11_spill] sm:$0xff] %v3044_v12 }
  0xbb   :  { %1027 = vmatpush1.bf16.msra.mxu0 %v3023_v17  ;;  %1270 = vmatpush1.bf16.msra.mxu1 %v3023_v17  ;;  %v2047_v17 = vcombine.low %v2816_v14, %v2816_v14  ;;  %v3072_v14 = vld [vmem:[%s3834_s1 + $0x314] ss:$8 sps:$4 sm:$0xff]  }
  0xbc   :  { %1028 = vmatprep.subr.bf16.mxu0 %v3030_v18  ;;  %1271 = vmatprep.subr.bf16.mxu1 %v3030_v18  ;;  %v3058_v18 = vld [vmem:[%s3835_s0 + $0x3c] sm:$0xff]  ;;  %3962 = vst [vmem:[#allocation12_spill] sm:$0xff] %v3072_v14 }
  0xbf   :  { %1029 = vmatpush1.bf16.msra.mxu0 %v3037_v11  ;;  %1272 = vmatpush1.bf16.msra.mxu1 %v3037_v11  ;;  %v2050_v11 = vcombine.high %v3058_v18, %v3058_v18 }
  0xc0   :  { %1039 = vmatprep.subr.bf16.mxu0 %v3044_v12  ;;  %1282 = vmatprep.subr.bf16.mxu1 %v3044_v12  ;;  %v3083_v12 = vld [vmem:[%s3834_s1 + $0x310] ss:$8 sps:$4 sm:$0xff]  }
  0xc1   :  { %3963 = vst [vmem:[#allocation13_spill] sm:$0xff] %v3083_v12 }
  0xc2   :  { %1031 = vmatmul.mubr.bf16.vlgmr.msra.gmra.mrb[0].mxu0 %v1889_v44  ;;  %1274 = vmatmul.mubr.bf16.vlgmr.msra.gmra.mrb[0].mxu1 %v2047_v17  ;;  %v3097_v44 = vld [vmem:[%s3834_s1 + $0x320] ss:$8 sps:$4 sm:$0xff]   ;;  %v3104_v17 = vld [vmem:[%s3834_s1 + $0x334] ss:$8 sps:$4 sm:$0xff]  }
  0xc3   :  { %1040 = vmatpush1.bf16.msra.mxu0 %v3065_v13  ;;  %1283 = vmatpush1.bf16.msra.mxu1 %v3065_v13  ;;  %3965 = vst [vmem:[#allocation15_spill] sm:$0xff] %v3097_v44  ;;  %3966 = vst [vmem:[#allocation16_spill] sm:$0xff] %v3104_v17 }
  0xc4   :  { %1041 = vmatprep.subr.bf16.mxu0 %v3072_v14  ;;  %1284 = vmatprep.subr.bf16.mxu1 %v3072_v14  ;;  %v2400_v14 = vld [vmem:[%s3834_s1] ss:$8 sps:$4 sm:$0xff]  }
  0xc5   :  { %1071 = vmatprep.mubr.bf16.mxu0 %v1892_v40  ;;  %1314 = vmatprep.mubr.bf16.mxu1 %v2050_v11  ;;  %v3111_v40 = vld [vmem:[%s3834_s1 + $0x330] ss:$8 sps:$4 sm:$0xff]   ;;  %v3118_v11 = vld [vmem:[%s3834_s1 + $0x344] ss:$8 sps:$4 sm:$0xff]  }
  0xc6   :  { %3967 = vst [vmem:[#allocation17_spill] sm:$0xff] %v3111_v40  ;;  %3968 = vst [vmem:[#allocation18_spill] sm:$0xff] %v3118_v11 }
  0xc7   :  { %1042 = vmatpush1.bf16.msra.mxu0 %v3083_v12  ;;  %1285 = vmatpush1.bf16.msra.mxu1 %v3083_v12  ;;  %v3297_v12 = vld [vmem:[%s3834_s1 + $0x400] ss:$8 sps:$4 sm:$0xff]  }
  0xc8   :  { %1043 = vmatprep.subr.bf16.mxu0 %v3090_v39  ;;  %1286 = vmatprep.subr.bf16.mxu1 %v3090_v39  ;;  %v1891_v39 = vcombine.low %v3053_v43, %v3053_v43  ;;  %3993 = vst [vmem:[#allocation43_spill] sm:$0xff] %v3297_v12  ;;  %v3304_v43 = vld [vmem:[%s3834_s1 + $0x414] ss:$8 sps:$4 sm:$0xff]  }
  0xc9   :  { %3994 = vst [vmem:[#allocation44_spill] sm:$0xff] %v3304_v43 }
  0xcb   :  { %1044 = vmatpush1.bf16.msra.mxu0 %v3097_v44  ;;  %1287 = vmatpush1.bf16.msra.mxu1 %v3097_v44  ;;  %v3125_v44 = vld [vmem:[%s3834_s1 + $0x340] ss:$8 sps:$4 sm:$0xff]  }
  0xcc   :  { %1045 = vmatprep.subr.bf16.mxu0 %v3104_v17  ;;  %1288 = vmatprep.subr.bf16.mxu1 %v3104_v17  ;;  %3969 = vst [vmem:[#allocation19_spill] sm:$0xff] %v3125_v44  ;;  %v3132_v17 = vld [vmem:[%s3834_s1 + $0x354] ss:$8 sps:$4 sm:$0xff]  }
  0xcd   :  { %3970 = vst [vmem:[#allocation20_spill] sm:$0xff] %v3132_v17 }
  0xcf   :  { %1046 = vmatpush1.bf16.msra.mxu0 %v3111_v40  ;;  %1289 = vmatpush1.bf16.msra.mxu1 %v3111_v40  ;;  %v3139_v40 = vld [vmem:[%s3834_s1 + $0x350] ss:$8 sps:$4 sm:$0xff]  }
  0xd0   :  { %1047 = vmatprep.subr.bf16.mxu0 %v3118_v11  ;;  %1290 = vmatprep.subr.bf16.mxu1 %v3118_v11  ;;  %3971 = vst [vmem:[#allocation21_spill] sm:$0xff] %v3139_v40  ;;  %v3146_v11 = vld [vmem:[%s3834_s1 + $0x364] ss:$8 sps:$4 sm:$0xff]  }
  0xd1   :  { %3972 = vst [vmem:[#allocation22_spill] sm:$0xff] %v3146_v11 }
  0xd3   :  { %1048 = vmatpush1.bf16.msra.mxu0 %v3125_v44  ;;  %1291 = vmatpush1.bf16.msra.mxu1 %v3125_v44  ;;  %v3153_v44 = vld [vmem:[%s3834_s1 + $0x360] ss:$8 sps:$4 sm:$0xff]  }
  0xd4   :  { %1049 = vmatprep.subr.bf16.mxu0 %v3132_v17  ;;  %1292 = vmatprep.subr.bf16.mxu1 %v3132_v17  ;;  %3973 = vst [vmem:[#allocation23_spill] sm:$0xff] %v3153_v44  ;;  %v3160_v17 = vld [vmem:[%s3834_s1 + $0x374] ss:$8 sps:$4 sm:$0xff]  }
  0xd5   :  { %3974 = vst [vmem:[#allocation24_spill] sm:$0xff] %v3160_v17 }
  0xd7   :  { %1050 = vmatpush1.bf16.msra.mxu0 %v3139_v40  ;;  %1293 = vmatpush1.bf16.msra.mxu1 %v3139_v40  ;;  %v3167_v40 = vld [vmem:[%s3834_s1 + $0x370] ss:$8 sps:$4 sm:$0xff]  }
  0xd8   :  { %1051 = vmatprep.subr.bf16.mxu0 %v3146_v11  ;;  %1294 = vmatprep.subr.bf16.mxu1 %v3146_v11  ;;  %3975 = vst [vmem:[#allocation25_spill] sm:$0xff] %v3167_v40  ;;  %v3174_v11 = vld [vmem:[%s3834_s1 + $0x384] ss:$8 sps:$4 sm:$0xff]  }
  0xd9   :  { %3976 = vst [vmem:[#allocation26_spill] sm:$0xff] %v3174_v11 }
  0xdb   :  { %1052 = vmatpush1.bf16.msra.mxu0 %v3153_v44  ;;  %1295 = vmatpush1.bf16.msra.mxu1 %v3153_v44  ;;  %v3181_v44 = vld [vmem:[%s3834_s1 + $0x380] ss:$8 sps:$4 sm:$0xff]  }
  0xdc   :  { %1053 = vmatprep.subr.bf16.mxu0 %v3160_v17  ;;  %1296 = vmatprep.subr.bf16.mxu1 %v3160_v17  ;;  %3977 = vst [vmem:[#allocation27_spill] sm:$0xff] %v3181_v44  ;;  %v3188_v17 = vld [vmem:[%s3834_s1 + $0x394] ss:$8 sps:$4 sm:$0xff]  }
  0xdd   :  { %3978 = vst [vmem:[#allocation28_spill] sm:$0xff] %v3188_v17 }
  0xdf   :  { %1054 = vmatpush1.bf16.msra.mxu0 %v3167_v40  ;;  %1297 = vmatpush1.bf16.msra.mxu1 %v3167_v40  ;;  %v3195_v40 = vld [vmem:[%s3834_s1 + $0x390] ss:$8 sps:$4 sm:$0xff]  }
  0xe0   :  { %1055 = vmatprep.subr.bf16.mxu0 %v3174_v11  ;;  %1298 = vmatprep.subr.bf16.mxu1 %v3174_v11  ;;  %3979 = vst [vmem:[#allocation29_spill] sm:$0xff] %v3195_v40  ;;  %v3202_v11 = vld [vmem:[%s3834_s1 + $0x3a4] ss:$8 sps:$4 sm:$0xff]  }
  0xe1   :  { %3980 = vst [vmem:[#allocation30_spill] sm:$0xff] %v3202_v11 }
  0xe3   :  { %1056 = vmatpush1.bf16.msra.mxu0 %v3181_v44  ;;  %1299 = vmatpush1.bf16.msra.mxu1 %v3181_v44  ;;  %v3209_v44 = vld [vmem:[%s3834_s1 + $0x3a0] ss:$8 sps:$4 sm:$0xff]  }
  0xe4   :  { %1057 = vmatprep.subr.bf16.mxu0 %v3188_v17  ;;  %1300 = vmatprep.subr.bf16.mxu1 %v3188_v17  ;;  %3981 = vst [vmem:[#allocation31_spill] sm:$0xff] %v3209_v44  ;;  %v3216_v17 = vld [vmem:[%s3834_s1 + $0x3b4] ss:$8 sps:$4 sm:$0xff]  }
  0xe5   :  { %3982 = vst [vmem:[#allocation32_spill] sm:$0xff] %v3216_v17 }
  0xe7   :  { %1058 = vmatpush1.bf16.msra.mxu0 %v3195_v40  ;;  %1301 = vmatpush1.bf16.msra.mxu1 %v3195_v40  ;;  %v3223_v40 = vld [vmem:[%s3834_s1 + $0x3b0] ss:$8 sps:$4 sm:$0xff]  }
  0xe8   :  { %1059 = vmatprep.subr.bf16.mxu0 %v3202_v11  ;;  %1302 = vmatprep.subr.bf16.mxu1 %v3202_v11  ;;  %3983 = vst [vmem:[#allocation33_spill] sm:$0xff] %v3223_v40  ;;  %v3230_v11 = vld [vmem:[%s3834_s1 + $0x3c4] ss:$8 sps:$4 sm:$0xff]  }
  0xe9   :  { %3984 = vst [vmem:[#allocation34_spill] sm:$0xff] %v3230_v11 }
  0xeb   :  { %1060 = vmatpush1.bf16.msra.mxu0 %v3209_v44  ;;  %1303 = vmatpush1.bf16.msra.mxu1 %v3209_v44  ;;  %v3237_v44 = vld [vmem:[%s3834_s1 + $0x3c0] ss:$8 sps:$4 sm:$0xff]  }
  0xec   :  { %1061 = vmatprep.subr.bf16.mxu0 %v3216_v17  ;;  %1304 = vmatprep.subr.bf16.mxu1 %v3216_v17  ;;  %3985 = vst [vmem:[#allocation35_spill] sm:$0xff] %v3237_v44  ;;  %v3244_v17 = vld [vmem:[%s3834_s1 + $0x3d4] ss:$8 sps:$4 sm:$0xff]  }
  0xed   :  { %3986 = vst [vmem:[#allocation36_spill] sm:$0xff] %v3244_v17 }
  0xef   :  { %1062 = vmatpush1.bf16.msra.mxu0 %v3223_v40  ;;  %1305 = vmatpush1.bf16.msra.mxu1 %v3223_v40  ;;  %v3251_v40 = vld [vmem:[%s3834_s1 + $0x3d0] ss:$8 sps:$4 sm:$0xff]  }
  0xf0   :  { %1063 = vmatprep.subr.bf16.mxu0 %v3230_v11  ;;  %1306 = vmatprep.subr.bf16.mxu1 %v3230_v11  ;;  %3987 = vst [vmem:[#allocation37_spill] sm:$0xff] %v3251_v40  ;;  %v3258_v11 = vld [vmem:[%s3834_s1 + $0x3e4] ss:$8 sps:$4 sm:$0xff]  }
  0xf1   :  { %3988 = vst [vmem:[#allocation38_spill] sm:$0xff] %v3258_v11 }
  0xf3   :  { %1064 = vmatpush1.bf16.msra.mxu0 %v3237_v44  ;;  %1307 = vmatpush1.bf16.msra.mxu1 %v3237_v44  ;;  %v3265_v44 = vld [vmem:[%s3834_s1 + $0x3e0] ss:$8 sps:$4 sm:$0xff]  }
  0xf4   :  { %1065 = vmatprep.subr.bf16.mxu0 %v3244_v17  ;;  %1308 = vmatprep.subr.bf16.mxu1 %v3244_v17  ;;  %3989 = vst [vmem:[#allocation39_spill] sm:$0xff] %v3265_v44  ;;  %v3272_v17 = vld [vmem:[%s3834_s1 + $0x3f4] ss:$8 sps:$4 sm:$0xff]  }
  0xf5   :  { %3990 = vst [vmem:[#allocation40_spill] sm:$0xff] %v3272_v17 }
  0xf7   :  { %1066 = vmatpush1.bf16.msra.mxu0 %v3251_v40  ;;  %1309 = vmatpush1.bf16.msra.mxu1 %v3251_v40  ;;  %v3279_v40 = vld [vmem:[%s3834_s1 + $0x3f0] ss:$8 sps:$4 sm:$0xff]  }
  0xf8   :  { %1067 = vmatprep.subr.bf16.mxu0 %v3258_v11  ;;  %1310 = vmatprep.subr.bf16.mxu1 %v3258_v11  ;;  %3991 = vst [vmem:[#allocation41_spill] sm:$0xff] %v3279_v40  ;;  %v3286_v11 = vld [vmem:[%s3834_s1 + $0x404] ss:$8 sps:$4 sm:$0xff]  }
  0xf9   :  { %3992 = vst [vmem:[#allocation42_spill] sm:$0xff] %v3286_v11 }
  0xfb   :  { %1068 = vmatpush1.bf16.msra.mxu0 %v3265_v44  ;;  %1311 = vmatpush1.bf16.msra.mxu1 %v3265_v44  ;;  %v2049_v44 = vcombine.low %v3058_v18, %v3058_v18  ;;  %v3311_v18 = vld [vmem:[%s3834_s1 + $0x410] ss:$8 sps:$4 sm:$0xff]  }
  0xfc   :  { %1069 = vmatprep.subr.bf16.mxu0 %v3272_v17  ;;  %1312 = vmatprep.subr.bf16.mxu1 %v3272_v17  ;;  %3995 = vst [vmem:[#allocation45_spill] sm:$0xff] %v3311_v18 }
  0xff   :  { %1070 = vmatpush1.bf16.msra.mxu0 %v3279_v40  ;;  %1313 = vmatpush1.bf16.msra.mxu1 %v3279_v40 }
 0x100   :  { %1080 = vmatprep.subr.bf16.mxu0 %v3286_v11  ;;  %1323 = vmatprep.subr.bf16.mxu1 %v3286_v11  ;;  %v3318_v11 = vld [vmem:[%s3834_s1 + $0x424] ss:$8 sps:$4 sm:$0xff]  }
 0x101   :  { %3996 = vst [vmem:[#allocation46_spill] sm:$0xff] %v3318_v11 }
 0x102   :  { %1072 = vmatmul.mubr.bf16.vlgmr.msra.gmra.mrb[0].mxu0 %v1891_v39  ;;  %1315 = vmatmul.mubr.bf16.vlgmr.msra.gmra.mrb[0].mxu1 %v2049_v44  ;;  %v3916_v39 = vmov 0   ;;  %v3327_v44 = vld [vmem:[%s3834_s1 + $0x420] ss:$8 sps:$4 sm:$0xff]  }
 0x103   :  { %1081 = vmatpush1.bf16.msra.mxu0 %v3297_v12  ;;  %1324 = vmatpush1.bf16.msra.mxu1 %v3297_v12  ;;  %3997 = vst [vmem:[#allocation47_spill] sm:$0xff] %v3327_v44  ;;  %v3415_v12 = vld [vmem:[%s3835_s0 + $0x6c] sm:$0xff] }
 0x104   :  { %1082 = vmatprep.subr.bf16.mxu0 %v3304_v43  ;;  %1325 = vmatprep.subr.bf16.mxu1 %v3304_v43  ;;  %v3334_v43 = vld [vmem:[%s3834_s1 + $0x434] ss:$8 sps:$4 sm:$0xff]   ;;  %v2072_v17 = vcombine.high %v3415_v12, %v3415_v12 }
 0x105   :  { %1112 = vmatprep.mubr.bf16.mxu0 %v3916_v39  ;;  %1355 = vmatprep.mubr.bf16.mxu1 %v3916_v39  ;;  %3998 = vst [vmem:[#allocation48_spill] sm:$0xff] %v3334_v43  ;;  %v3341_v39 = vld [vmem:[%s3834_s1 + $0x430] ss:$8 sps:$4 sm:$0xff]  }
 0x106   :  { %3999 = vst [vmem:[#allocation49_spill] sm:$0xff] %v3341_v39 }
 0x107   :  { %1083 = vmatpush1.bf16.msra.mxu0 %v3311_v18  ;;  %1326 = vmatpush1.bf16.msra.mxu1 %v3311_v18  ;;  %v2380_v18 = vld [vmem:[%s3835_s0 + $0x44] ss:$0 sps:$4 sm:$0xff]  }
 0x108   :  { %1084 = vmatprep.subr.bf16.mxu0 %v3318_v11  ;;  %1327 = vmatprep.subr.bf16.mxu1 %v3318_v11  ;;  %v3348_v11 = vld [vmem:[%s3834_s1 + $0x444] ss:$8 sps:$4 sm:$0xff]  }
 0x109   :  { %4000 = vst [vmem:[#allocation50_spill] sm:$0xff] %v3348_v11 }
 0x10b   :  { %1085 = vmatpush1.bf16.msra.mxu0 %v3327_v44  ;;  %1328 = vmatpush1.bf16.msra.mxu1 %v3327_v44  ;;  %v3355_v44 = vld [vmem:[%s3834_s1 + $0x440] ss:$8 sps:$4 sm:$0xff]  }
 0x10c   :  { %1086 = vmatprep.subr.bf16.mxu0 %v3334_v43  ;;  %1329 = vmatprep.subr.bf16.mxu1 %v3334_v43  ;;  %4001 = vst [vmem:[#allocation51_spill] sm:$0xff] %v3355_v44  ;;  %v3362_v43 = vld [vmem:[%s3834_s1 + $0x454] ss:$8 sps:$4 sm:$0xff]  }
 0x10d   :  { %4002 = vst [vmem:[#allocation52_spill] sm:$0xff] %v3362_v43 }
 0x10f   :  { %1087 = vmatpush1.bf16.msra.mxu0 %v3341_v39  ;;  %1330 = vmatpush1.bf16.msra.mxu1 %v3341_v39  ;;  %v3369_v39 = vld [vmem:[%s3834_s1 + $0x450] ss:$8 sps:$4 sm:$0xff]  }
 0x110   :  { %1088 = vmatprep.subr.bf16.mxu0 %v3348_v11  ;;  %1331 = vmatprep.subr.bf16.mxu1 %v3348_v11  ;;  %4003 = vst [vmem:[#allocation53_spill] sm:$0xff] %v3369_v39  ;;  %v3376_v11 = vld [vmem:[%s3834_s1 + $0x464] ss:$8 sps:$4 sm:$0xff]  }
 0x111   :  { %4004 = vst [vmem:[#allocation54_spill] sm:$0xff] %v3376_v11 }
 0x113   :  { %1089 = vmatpush1.bf16.msra.mxu0 %v3355_v44  ;;  %1332 = vmatpush1.bf16.msra.mxu1 %v3355_v44  ;;  %v3383_v44 = vld [vmem:[%s3834_s1 + $0x460] ss:$8 sps:$4 sm:$0xff]  }
 0x114   :  { %1090 = vmatprep.subr.bf16.mxu0 %v3362_v43  ;;  %1333 = vmatprep.subr.bf16.mxu1 %v3362_v43  ;;  %4005 = vst [vmem:[#allocation55_spill] sm:$0xff] %v3383_v44  ;;  %v3390_v43 = vld [vmem:[%s3834_s1 + $0x474] ss:$8 sps:$4 sm:$0xff]  }
 0x115   :  { %4006 = vst [vmem:[#allocation56_spill] sm:$0xff] %v3390_v43 }
 0x117   :  { %1091 = vmatpush1.bf16.msra.mxu0 %v3369_v39  ;;  %1334 = vmatpush1.bf16.msra.mxu1 %v3369_v39  ;;  %v3397_v39 = vld [vmem:[%s3834_s1 + $0x470] ss:$8 sps:$4 sm:$0xff]  }
 0x118   :  { %1092 = vmatprep.subr.bf16.mxu0 %v3376_v11  ;;  %1335 = vmatprep.subr.bf16.mxu1 %v3376_v11  ;;  %4007 = vst [vmem:[#allocation57_spill] sm:$0xff] %v3397_v39  ;;  %v2379_v11 = vld [vmem:[%s3835_s0 + $0x20] ss:$0 sps:$4 sm:$0xff]  }
 0x11b   :  { %1093 = vmatpush1.bf16.msra.mxu0 %v3383_v44  ;;  %1336 = vmatpush1.bf16.msra.mxu1 %v3383_v44  ;;  %v3410_v44 = vld [vmem:[%s3835_s0 + $0x48] sm:$0xff] }
 0x11c   :  { %1094 = vmatprep.subr.bf16.mxu0 %v3390_v43  ;;  %1337 = vmatprep.subr.bf16.mxu1 %v3390_v43  ;;  %v2399_v43 = vld [vmem:[%s3834_s1 + $0x4] ss:$8 sps:$4 sm:$0xff]   ;;  %v2058_v40 = vcombine.high %v3410_v44, %v3410_v44 }
 0x11f   :  { %1095 = vmatpush1.bf16.msra.mxu0 %v3397_v39  ;;  %1338 = vmatpush1.bf16.msra.mxu1 %v3397_v39  ;;  %v2401_v39 = vld [vmem:[%s3834_s1 + $0x14] ss:$8 sps:$4 sm:$0xff]  }
 0x120   :  { %1402 = vmatprep.subr.bf16.mxu0 %v2399_v43  ;;  %1645 = vmatprep.subr.bf16.mxu1 %v2399_v43  ;;  %v2402_v43 = vld [vmem:[%s3834_s1 + $0x10] ss:$8 sps:$4 sm:$0xff]  }
 0x122   :  { %1113 = vmatmul.mubr.bf16.vlgmr.msra.gmra.mrb[0].mxu0 %v2379_v11  ;;  %1356 = vmatmul.mubr.bf16.vlgmr.msra.gmra.mrb[0].mxu1 %v2380_v18  ;;  %v2403_v11 = vld [vmem:[%s3834_s1 + $0x24] ss:$8 sps:$4 sm:$0xff]  }
 0x123   :  { %1403 = vmatpush1.bf16.msra.mxu0 %v2400_v14  ;;  %1646 = vmatpush1.bf16.msra.mxu1 %v2400_v14  ;;  %v2404_v14 = vld [vmem:[%s3834_s1 + $0x20] ss:$8 sps:$4 sm:$0xff]   ;;  %v2407_v18 = vld [vmem:[%s3834_s1 + $0x44] ss:$8 sps:$4 sm:$0xff]  }
 0x124   :  { %1404 = vmatprep.subr.bf16.mxu0 %v2401_v39  ;;  %1647 = vmatprep.subr.bf16.mxu1 %v2401_v39  ;;  %v2408_v39 = vld [vmem:[%s3834_s1 + $0x40] ss:$8 sps:$4 sm:$0xff]  }
 0x125   :  { %1434 = vmatprep.mubr.bf16.mxu0 %v2058_v40  ;;  %1677 = vmatprep.mubr.bf16.mxu1 %v2072_v17  ;;  %v2405_v17 = vld [vmem:[%s3834_s1 + $0x34] ss:$8 sps:$4 sm:$0xff]   ;;  %v2406_v40 = vld [vmem:[%s3834_s1 + $0x30] ss:$8 sps:$4 sm:$0xff]  }
 0x127   :  { %1405 = vmatpush1.bf16.msra.mxu0 %v2402_v43  ;;  %1648 = vmatpush1.bf16.msra.mxu1 %v2402_v43  ;;  %v2409_v43 = vld [vmem:[%s3834_s1 + $0x54] ss:$8 sps:$4 sm:$0xff]  }
 0x128   :  { %1406 = vmatprep.subr.bf16.mxu0 %v2403_v11  ;;  %1649 = vmatprep.subr.bf16.mxu1 %v2403_v11  ;;  %v2410_v11 = vld [vmem:[%s3834_s1 + $0x50] ss:$8 sps:$4 sm:$0xff]  }
 0x12b   :  { %1407 = vmatpush1.bf16.msra.mxu0 %v2404_v14  ;;  %1650 = vmatpush1.bf16.msra.mxu1 %v2404_v14  ;;  %v2411_v14 = vld [vmem:[%s3834_s1 + $0x64] ss:$8 sps:$4 sm:$0xff]  }
 0x12c   :  { %1408 = vmatprep.subr.bf16.mxu0 %v2405_v17  ;;  %1651 = vmatprep.subr.bf16.mxu1 %v2405_v17  ;;  %v2412_v17 = vld [vmem:[%s3834_s1 + $0x60] ss:$8 sps:$4 sm:$0xff]  }
 0x12f   :  { %1409 = vmatpush1.bf16.msra.mxu0 %v2406_v40  ;;  %1652 = vmatpush1.bf16.msra.mxu1 %v2406_v40  ;;  %v2413_v40 = vld [vmem:[%s3834_s1 + $0x74] ss:$8 sps:$4 sm:$0xff]  }
 0x130   :  { %1410 = vmatprep.subr.bf16.mxu0 %v2407_v18  ;;  %1653 = vmatprep.subr.bf16.mxu1 %v2407_v18  ;;  %v2414_v18 = vld [vmem:[%s3834_s1 + $0x70] ss:$8 sps:$4 sm:$0xff]  }
 0x133   :  { %1411 = vmatpush1.bf16.msra.mxu0 %v2408_v39  ;;  %1654 = vmatpush1.bf16.msra.mxu1 %v2408_v39  ;;  %v2415_v39 = vld [vmem:[%s3834_s1 + $0x84] ss:$8 sps:$4 sm:$0xff]  }
 0x134   :  { %1412 = vmatprep.subr.bf16.mxu0 %v2409_v43  ;;  %1655 = vmatprep.subr.bf16.mxu1 %v2409_v43  ;;  %v2416_v43 = vld [vmem:[%s3834_s1 + $0x80] ss:$8 sps:$4 sm:$0xff]  }
 0x137   :  { %1413 = vmatpush1.bf16.msra.mxu0 %v2410_v11  ;;  %1656 = vmatpush1.bf16.msra.mxu1 %v2410_v11  ;;  %v2417_v11 = vld [vmem:[%s3834_s1 + $0x94] ss:$8 sps:$4 sm:$0xff]  }
 0x138   :  { %1414 = vmatprep.subr.bf16.mxu0 %v2411_v14  ;;  %1657 = vmatprep.subr.bf16.mxu1 %v2411_v14  ;;  %v2418_v14 = vld [vmem:[%s3834_s1 + $0x90] ss:$8 sps:$4 sm:$0xff]  }
 0x13b   :  { %1415 = vmatpush1.bf16.msra.mxu0 %v2412_v17  ;;  %1658 = vmatpush1.bf16.msra.mxu1 %v2412_v17  ;;  %v2419_v17 = vld [vmem:[%s3834_s1 + $0xa4] ss:$8 sps:$4 sm:$0xff]  }
 0x13c   :  { %1416 = vmatprep.subr.bf16.mxu0 %v2413_v40  ;;  %1659 = vmatprep.subr.bf16.mxu1 %v2413_v40  ;;  %v2420_v40 = vld [vmem:[%s3834_s1 + $0xa0] ss:$8 sps:$4 sm:$0xff]  }
 0x13f   :  { %1417 = vmatpush1.bf16.msra.mxu0 %v2414_v18  ;;  %1660 = vmatpush1.bf16.msra.mxu1 %v2414_v18  ;;  %v2421_v18 = vld [vmem:[%s3834_s1 + $0xb4] ss:$8 sps:$4 sm:$0xff]  }
 0x140   :  { %1418 = vmatprep.subr.bf16.mxu0 %v2415_v39  ;;  %1661 = vmatprep.subr.bf16.mxu1 %v2415_v39  ;;  %v2422_v39 = vld [vmem:[%s3834_s1 + $0xb0] ss:$8 sps:$4 sm:$0xff]  }
 0x143   :  { %1419 = vmatpush1.bf16.msra.mxu0 %v2416_v43  ;;  %1662 = vmatpush1.bf16.msra.mxu1 %v2416_v43  ;;  %v2423_v43 = vld [vmem:[%s3834_s1 + $0xc4] ss:$8 sps:$4 sm:$0xff]  }
 0x144   :  { %1420 = vmatprep.subr.bf16.mxu0 %v2417_v11  ;;  %1663 = vmatprep.subr.bf16.mxu1 %v2417_v11  ;;  %v2424_v11 = vld [vmem:[%s3834_s1 + $0xc0] ss:$8 sps:$4 sm:$0xff]  }
 0x147   :  { %1421 = vmatpush1.bf16.msra.mxu0 %v2418_v14  ;;  %1664 = vmatpush1.bf16.msra.mxu1 %v2418_v14  ;;  %v2425_v14 = vld [vmem:[%s3834_s1 + $0xd4] ss:$8 sps:$4 sm:$0xff]  }
 0x148   :  { %1422 = vmatprep.subr.bf16.mxu0 %v2419_v17  ;;  %1665 = vmatprep.subr.bf16.mxu1 %v2419_v17  ;;  %v2426_v17 = vld [vmem:[%s3834_s1 + $0xd0] ss:$8 sps:$4 sm:$0xff]  }
 0x14b   :  { %1423 = vmatpush1.bf16.msra.mxu0 %v2420_v40  ;;  %1666 = vmatpush1.bf16.msra.mxu1 %v2420_v40  ;;  %v2427_v40 = vld [vmem:[%s3834_s1 + $0xe4] ss:$8 sps:$4 sm:$0xff]  }
 0x14c   :  { %1424 = vmatprep.subr.bf16.mxu0 %v2421_v18  ;;  %1667 = vmatprep.subr.bf16.mxu1 %v2421_v18  ;;  %v2428_v18 = vld [vmem:[%s3834_s1 + $0xe0] ss:$8 sps:$4 sm:$0xff]  }
 0x14f   :  { %1425 = vmatpush1.bf16.msra.mxu0 %v2422_v39  ;;  %1668 = vmatpush1.bf16.msra.mxu1 %v2422_v39  ;;  %v2429_v39 = vld [vmem:[%s3834_s1 + $0xf4] ss:$8 sps:$4 sm:$0xff]  }
 0x150   :  { %1426 = vmatprep.subr.bf16.mxu0 %v2423_v43  ;;  %1669 = vmatprep.subr.bf16.mxu1 %v2423_v43  ;;  %v2057_v43 = vcombine.low %v3410_v44, %v3410_v44 }
 0x153   :  { %1427 = vmatpush1.bf16.msra.mxu0 %v2424_v11  ;;  %1670 = vmatpush1.bf16.msra.mxu1 %v2424_v11  ;;  %v2071_v11 = vcombine.low %v3415_v12, %v3415_v12  ;;  %v2431_v12 = vld [vmem:[%s3834_s1 + $0x104] ss:$8 sps:$4 sm:$0xff]  }
 0x154   :  { %1428 = vmatprep.subr.bf16.mxu0 %v2425_v14  ;;  %1671 = vmatprep.subr.bf16.mxu1 %v2425_v14  ;;  %v3523_v14 = vld [vmem:[%s3835_s0 + $0x50] sm:$0xff] }
 0x155   :  { %v2060_v44 = vcombine.high %v3523_v14, %v3523_v14 }
 0x157   :  { %1429 = vmatpush1.bf16.msra.mxu0 %v2426_v17  ;;  %1672 = vmatpush1.bf16.msra.mxu1 %v2426_v17  ;;  %v3528_v17 = vld [vmem:[%s3835_s0 + $0x74] sm:$0xff] }
 0x158   :  { %1430 = vmatprep.subr.bf16.mxu0 %v2427_v40  ;;  %1673 = vmatprep.subr.bf16.mxu1 %v2427_v40  ;;  %v2430_v40 = vld [vmem:[%s3834_s1 + $0xf0] ss:$8 sps:$4 sm:$0xff]  }
 0x15b   :  { %1431 = vmatpush1.bf16.msra.mxu0 %v2428_v18  ;;  %1674 = vmatpush1.bf16.msra.mxu1 %v2428_v18  ;;  %v2074_v18 = vcombine.high %v3528_v17, %v3528_v17 }
 0x15c   :  { %1432 = vmatprep.subr.bf16.mxu0 %v2429_v39  ;;  %1675 = vmatprep.subr.bf16.mxu1 %v2429_v39  ;;  %v4041_v39 = vld [vmem:[#allocation35_spill] sm:$0xff] }
 0x15f   :  { %1433 = vmatpush1.bf16.msra.mxu0 %v2430_v40  ;;  %1676 = vmatpush1.bf16.msra.mxu1 %v2430_v40  ;;  %v4046_v40 = vld [vmem:[#allocation40_spill] sm:$0xff] }
 0x160   :  { %1443 = vmatprep.subr.bf16.mxu0 %v2431_v12  ;;  %1686 = vmatprep.subr.bf16.mxu1 %v2431_v12 }
 0x162   :  { %1435 = vmatmul.mubr.bf16.vlgmr.msra.gmra.mrb[4].mxu0 %v2057_v43  ;;  %1678 = vmatmul.mubr.bf16.vlgmr.msra.gmra.mrb[4].mxu1 %v2071_v11  ;;  %v4042_v43 = vld [vmem:[#allocation36_spill] sm:$0xff]  ;;  %v4043_v11 = vld [vmem:[#allocation37_spill] sm:$0xff] }
 0x163   :  { %1444 = vmatpush1.bf16.msra.mxu0 %v2583_v41  ;;  %1687 = vmatpush1.bf16.msra.mxu1 %v2583_v41  ;;  %v2059_v41 = vcombine.low %v3523_v14, %v3523_v14  ;;  %v4044_v14 = vld [vmem:[#allocation38_spill] sm:$0xff] }
 0x164   :  { %1445 = vmatprep.subr.bf16.mxu0 %v2588_v42  ;;  %1688 = vmatprep.subr.bf16.mxu1 %v2588_v42  ;;  %v2073_v42 = vcombine.low %v3528_v17, %v3528_v17  ;;  %v4045_v17 = vld [vmem:[#allocation39_spill] sm:$0xff] }
 0x165   :  { %1475 = vmatprep.mubr.bf16.mxu0 %v2060_v44  ;;  %1718 = vmatprep.mubr.bf16.mxu1 %v2074_v18  ;;  %v4047_v18 = vld [vmem:[#allocation41_spill] sm:$0xff] }
 0x167   :  { %1446 = vmatpush1.bf16.msra.mxu0 %v2599_v45  ;;  %1689 = vmatpush1.bf16.msra.mxu1 %v2599_v45  ;;  %v3607_v45 = vld [vmem:[%s3835_s0 + $0x58] sm:$0xff] }
 0x168   :  { %1447 = vmatprep.subr.bf16.mxu0 %v2606_v46  ;;  %1690 = vmatprep.subr.bf16.mxu1 %v2606_v46  ;;  %v3612_v46 = vld [vmem:[%s3835_s0 + $0x7c] sm:$0xff] }
 0x16b   :  { %1448 = vmatpush1.bf16.msra.mxu0 %v2613_v47  ;;  %1691 = vmatpush1.bf16.msra.mxu1 %v2613_v47  ;;  %v2062_v47 = vcombine.high %v3607_v45, %v3607_v45 }
 0x16c   :  { %1449 = vmatprep.subr.bf16.mxu0 %v2620_v48  ;;  %1692 = vmatprep.subr.bf16.mxu1 %v2620_v48  ;;  %v2076_v48 = vcombine.high %v3612_v46, %v3612_v46 }
 0x16f   :  { %1450 = vmatpush1.bf16.msra.mxu0 %v2627_v49  ;;  %1693 = vmatpush1.bf16.msra.mxu1 %v2627_v49  ;;  %v4008_v49 = vld [vmem:[#allocation2_spill] sm:$0xff] }
 0x170   :  { %1451 = vmatprep.subr.bf16.mxu0 %v2634_v50  ;;  %1694 = vmatprep.subr.bf16.mxu1 %v2634_v50  ;;  %v4009_v50 = vld [vmem:[#allocation3_spill] sm:$0xff] }
 0x173   :  { %1452 = vmatpush1.bf16.msra.mxu0 %v2641_v51  ;;  %1695 = vmatpush1.bf16.msra.mxu1 %v2641_v51  ;;  %v4010_v51 = vld [vmem:[#allocation4_spill] sm:$0xff] }
 0x174   :  { %1453 = vmatprep.subr.bf16.mxu0 %v2648_v52  ;;  %1696 = vmatprep.subr.bf16.mxu1 %v2648_v52  ;;  %v4011_v52 = vld [vmem:[#allocation5_spill] sm:$0xff] }
 0x177   :  { %1454 = vmatpush1.bf16.msra.mxu0 %v2655_v53  ;;  %1697 = vmatpush1.bf16.msra.mxu1 %v2655_v53  ;;  %v4012_v53 = vld [vmem:[#allocation6_spill] sm:$0xff] }
 0x178   :  { %1455 = vmatprep.subr.bf16.mxu0 %v2662_v54  ;;  %1698 = vmatprep.subr.bf16.mxu1 %v2662_v54  ;;  %v4013_v54 = vld [vmem:[#allocation7_spill] sm:$0xff] }
 0x17b   :  { %1456 = vmatpush1.bf16.msra.mxu0 %v2669_v55  ;;  %1699 = vmatpush1.bf16.msra.mxu1 %v2669_v55  ;;  %v4014_v55 = vld [vmem:[#allocation8_spill] sm:$0xff] }
 0x17c   :  { %1457 = vmatprep.subr.bf16.mxu0 %v2676_v56  ;;  %1700 = vmatprep.subr.bf16.mxu1 %v2676_v56  ;;  %v4015_v56 = vld [vmem:[#allocation9_spill] sm:$0xff] }
 0x17f   :  { %1458 = vmatpush1.bf16.msra.mxu0 %v2683_v57  ;;  %1701 = vmatpush1.bf16.msra.mxu1 %v2683_v57  ;;  %v2061_v57 = vcombine.low %v3607_v45, %v3607_v45  ;;  %v4050_v45 = vld [vmem:[#allocation44_spill] sm:$0xff] }
 0x180   :  { %1459 = vmatprep.subr.bf16.mxu0 %v2690_v58  ;;  %1702 = vmatprep.subr.bf16.mxu1 %v2690_v58  ;;  %v2075_v58 = vcombine.low %v3612_v46, %v3612_v46  ;;  %v4051_v46 = vmov 0  }
 0x183   :  { %1460 = vmatpush1.bf16.msra.mxu0 %v2697_v59  ;;  %1703 = vmatpush1.bf16.msra.mxu1 %v2697_v59  ;;  %v3689_v59 = vld [vmem:[%s3835_s0 + $0x60] sm:$0xff] }
 0x184   :  { %1461 = vmatprep.subr.bf16.mxu0 %v2704_v60  ;;  %1704 = vmatprep.subr.bf16.mxu1 %v2704_v60  ;;  %v3694_v60 = vld [vmem:[%s3835_s0 + $0x84] sm:$0xff]  ;;  %v2063_v12 = vcombine.low %v3689_v59, %v3689_v59 }
 0x185   :  { %v2077_v44 = vcombine.low %v3694_v60, %v3694_v60 }
 0x187   :  { %1462 = vmatpush1.bf16.msra.mxu0 %v2711_v61  ;;  %1705 = vmatpush1.bf16.msra.mxu1 %v2711_v61  ;;  %v4016_v61 = vld [vmem:[#allocation10_spill] sm:$0xff] }
 0x188   :  { %1463 = vmatprep.subr.bf16.mxu0 %v2718_v62  ;;  %1706 = vmatprep.subr.bf16.mxu1 %v2718_v62  ;;  %v4017_v62 = vld [vmem:[#allocation11_spill] sm:$0xff] }
 0x18b   :  { %1464 = vmatpush1.bf16.msra.mxu0 %v2725_v63  ;;  %1707 = vmatpush1.bf16.msra.mxu1 %v2725_v63  ;;  %v2064_v63 = vcombine.high %v3689_v59, %v3689_v59  ;;  %v2397_v59 = vld [vmem:[%s3835_s0 + $0x68] ss:$0 sps:$4 sm:$0xff]  }
 0x18c   :  { %1465 = vmatprep.subr.bf16.mxu0 %v2732_v0  ;;  %1708 = vmatprep.subr.bf16.mxu1 %v2732_v0  ;;  %v2078_v0 = vcombine.high %v3694_v60, %v3694_v60  ;;  %v2398_v60 = vld [vmem:[%s3835_s0 + $0x8c] ss:$0 sps:$4 sm:$0xff]  }
 0x18f   :  { %1466 = vmatpush1.bf16.msra.mxu0 %v2739_v1  ;;  %1709 = vmatpush1.bf16.msra.mxu1 %v2739_v1  ;;  %v4018_v1 = vld [vmem:[#allocation12_spill] sm:$0xff] }
 0x190   :  { %1467 = vmatprep.subr.bf16.mxu0 %v2746_v2  ;;  %1710 = vmatprep.subr.bf16.mxu1 %v2746_v2  ;;  %v4019_v2 = vld [vmem:[#allocation13_spill] sm:$0xff] }
 0x193   :  { %1468 = vmatpush1.bf16.msra.mxu0 %v2753_v3  ;;  %1711 = vmatpush1.bf16.msra.mxu1 %v2753_v3  ;;  %v4020_v3 = vld [vmem:[#allocation14_spill] sm:$0xff] }
 0x194   :  { %1469 = vmatprep.subr.bf16.mxu0 %v2760_v4  ;;  %1712 = vmatprep.subr.bf16.mxu1 %v2760_v4  ;;  %v4021_v4 = vld [vmem:[#allocation15_spill] sm:$0xff] }
 0x197   :  { %1470 = vmatpush1.bf16.msra.mxu0 %v2767_v5  ;;  %1713 = vmatpush1.bf16.msra.mxu1 %v2767_v5  ;;  %v4022_v5 = vld [vmem:[#allocation16_spill] sm:$0xff] }
 0x198   :  { %1471 = vmatprep.subr.bf16.mxu0 %v2774_v6  ;;  %1714 = vmatprep.subr.bf16.mxu1 %v2774_v6  ;;  %v4023_v6 = vld [vmem:[#allocation17_spill] sm:$0xff] }
 0x19b   :  { %1472 = vmatpush1.bf16.msra.mxu0 %v2781_v7  ;;  %1715 = vmatpush1.bf16.msra.mxu1 %v2781_v7  ;;  %v4024_v7 = vld [vmem:[#allocation18_spill] sm:$0xff] }
 0x19c   :  { %1473 = vmatprep.subr.bf16.mxu0 %v2788_v8  ;;  %1716 = vmatprep.subr.bf16.mxu1 %v2788_v8  ;;  %v4025_v8 = vld [vmem:[#allocation19_spill] sm:$0xff] }
 0x19f   :  { %1474 = vmatpush1.bf16.msra.mxu0 %v2795_v9  ;;  %1717 = vmatpush1.bf16.msra.mxu1 %v2795_v9  ;;  %v4026_v9 = vld [vmem:[#allocation20_spill] sm:$0xff] }
 0x1a0   :  { %1484 = vmatprep.subr.bf16.mxu0 %v2802_v10  ;;  %1727 = vmatprep.subr.bf16.mxu1 %v2802_v10 }
 0x1a2   :  { %1476 = vmatmul.mubr.bf16.vlgmr.msra.gmra.mrb[4].mxu0 %v2059_v41  ;;  %1719 = vmatmul.mubr.bf16.vlgmr.msra.gmra.mrb[4].mxu1 %v2073_v42  ;;  %v4048_v41 = vld [vmem:[#allocation42_spill] sm:$0xff]  ;;  %v4049_v42 = vld [vmem:[#allocation43_spill] sm:$0xff] }
 0x1a3   :  { %1485 = vmatpush1.bf16.msra.mxu0 %v2823_v15  ;;  %1728 = vmatpush1.bf16.msra.mxu1 %v2823_v15 }
 0x1a4   :  { %1486 = vmatprep.subr.bf16.mxu0 %v2830_v16  ;;  %1729 = vmatprep.subr.bf16.mxu1 %v2830_v16 }
 0x1a5   :  { %1516 = vmatprep.mubr.bf16.mxu0 %v2062_v47  ;;  %1759 = vmatprep.mubr.bf16.mxu1 %v2076_v48  ;;  %v4052_v47 = vld [vmem:[#allocation45_spill] sm:$0xff]  ;;  %v4053_v48 = vld [vmem:[#allocation46_spill] sm:$0xff] }
 0x1a7   :  { %1487 = vmatpush1.bf16.msra.mxu0 %v2841_v19  ;;  %1730 = vmatpush1.bf16.msra.mxu1 %v2841_v19 }
 0x1a8   :  { %1488 = vmatprep.subr.bf16.mxu0 %v2848_v20  ;;  %1731 = vmatprep.subr.bf16.mxu1 %v2848_v20 }
 0x1ab   :  { %1489 = vmatpush1.bf16.msra.mxu0 %v2855_v21  ;;  %1732 = vmatpush1.bf16.msra.mxu1 %v2855_v21 }
 0x1ac   :  { %1490 = vmatprep.subr.bf16.mxu0 %v2862_v22  ;;  %1733 = vmatprep.subr.bf16.mxu1 %v2862_v22 }
 0x1af   :  { %1491 = vmatpush1.bf16.msra.mxu0 %v2869_v23  ;;  %1734 = vmatpush1.bf16.msra.mxu1 %v2869_v23 }
 0x1b0   :  { %1492 = vmatprep.subr.bf16.mxu0 %v2876_v24  ;;  %1735 = vmatprep.subr.bf16.mxu1 %v2876_v24  ;;  %v4027_v24 = vld [vmem:[#allocation21_spill] sm:$0xff] }
 0x1b3   :  { %1493 = vmatpush1.bf16.msra.mxu0 %v2883_v25  ;;  %1736 = vmatpush1.bf16.msra.mxu1 %v2883_v25 }
 0x1b4   :  { %1494 = vmatprep.subr.bf16.mxu0 %v2890_v26  ;;  %1737 = vmatprep.subr.bf16.mxu1 %v2890_v26 }
 0x1b7   :  { %1495 = vmatpush1.bf16.msra.mxu0 %v2897_v27  ;;  %1738 = vmatpush1.bf16.msra.mxu1 %v2897_v27  ;;  %v4028_v27 = vld [vmem:[#allocation22_spill] sm:$0xff] }
 0x1b8   :  { %1496 = vmatprep.subr.bf16.mxu0 %v2904_v28  ;;  %1739 = vmatprep.subr.bf16.mxu1 %v2904_v28  ;;  %v4029_v28 = vld [vmem:[#allocation23_spill] sm:$0xff] }
 0x1bb   :  { %1497 = vmatpush1.bf16.msra.mxu0 %v2911_v29  ;;  %1740 = vmatpush1.bf16.msra.mxu1 %v2911_v29  ;;  %v4030_v29 = vld [vmem:[#allocation24_spill] sm:$0xff] }
 0x1bc   :  { %1498 = vmatprep.subr.bf16.mxu0 %v2918_v30  ;;  %1741 = vmatprep.subr.bf16.mxu1 %v2918_v30  ;;  %v4031_v30 = vld [vmem:[#allocation25_spill] sm:$0xff] }
 0x1bf   :  { %1499 = vmatpush1.bf16.msra.mxu0 %v2925_v31  ;;  %1742 = vmatpush1.bf16.msra.mxu1 %v2925_v31  ;;  %v4032_v31 = vld [vmem:[#allocation26_spill] sm:$0xff] }
 0x1c0   :  { %1500 = vmatprep.subr.bf16.mxu0 %v2932_v32  ;;  %1743 = vmatprep.subr.bf16.mxu1 %v2932_v32  ;;  %v4033_v32 = vld [vmem:[#allocation27_spill] sm:$0xff] }
 0x1c3   :  { %1501 = vmatpush1.bf16.msra.mxu0 %v2939_v33  ;;  %1744 = vmatpush1.bf16.msra.mxu1 %v2939_v33  ;;  %v4034_v33 = vld [vmem:[#allocation28_spill] sm:$0xff] }
 0x1c4   :  { %1502 = vmatprep.subr.bf16.mxu0 %v2946_v34  ;;  %1745 = vmatprep.subr.bf16.mxu1 %v2946_v34  ;;  %v4035_v34 = vld [vmem:[#allocation29_spill] sm:$0xff] }
 0x1c7   :  { %1503 = vmatpush1.bf16.msra.mxu0 %v2953_v35  ;;  %1746 = vmatpush1.bf16.msra.mxu1 %v2953_v35  ;;  %v4036_v35 = vld [vmem:[#allocation30_spill] sm:$0xff] }
 0x1c8   :  { %1504 = vmatprep.subr.bf16.mxu0 %v2960_v36  ;;  %1747 = vmatprep.subr.bf16.mxu1 %v2960_v36  ;;  %v4037_v36 = vld [vmem:[#allocation31_spill] sm:$0xff] }
 0x1cb   :  { %1505 = vmatpush1.bf16.msra.mxu0 %v2967_v37  ;;  %1748 = vmatpush1.bf16.msra.mxu1 %v2967_v37  ;;  %v4038_v37 = vld [vmem:[#allocation32_spill] sm:$0xff] }
 0x1cc   :  { %1506 = vmatprep.subr.bf16.mxu0 %v2974_v38  ;;  %1749 = vmatprep.subr.bf16.mxu1 %v2974_v38  ;;  %v4039_v38 = vld [vmem:[#allocation33_spill] sm:$0xff] }
 0x1cf   :  { %1507 = vmatpush1.bf16.msra.mxu0 %v4008_v49  ;;  %1750 = vmatpush1.bf16.msra.mxu1 %v4008_v49  ;;  %v4054_v49 = vld [vmem:[#allocation47_spill] sm:$0xff] }
 0x1d0   :  { %1508 = vmatprep.subr.bf16.mxu0 %v4009_v50  ;;  %1751 = vmatprep.subr.bf16.mxu1 %v4009_v50  ;;  %v4055_v50 = vld [vmem:[#allocation48_spill] sm:$0xff] }
 0x1d3   :  { %1509 = vmatpush1.bf16.msra.mxu0 %v4010_v51  ;;  %1752 = vmatpush1.bf16.msra.mxu1 %v4010_v51  ;;  %v4056_v51 = vld [vmem:[#allocation49_spill] sm:$0xff] }
 0x1d4   :  { %1510 = vmatprep.subr.bf16.mxu0 %v4011_v52  ;;  %1753 = vmatprep.subr.bf16.mxu1 %v4011_v52  ;;  %v4057_v52 = vld [vmem:[#allocation50_spill] sm:$0xff] }
 0x1d7   :  { %1511 = vmatpush1.bf16.msra.mxu0 %v4012_v53  ;;  %1754 = vmatpush1.bf16.msra.mxu1 %v4012_v53  ;;  %v4058_v53 = vld [vmem:[#allocation51_spill] sm:$0xff] }
 0x1d8   :  { %1512 = vmatprep.subr.bf16.mxu0 %v4013_v54  ;;  %1755 = vmatprep.subr.bf16.mxu1 %v4013_v54  ;;  %v4059_v54 = vld [vmem:[#allocation52_spill] sm:$0xff] }
 0x1db   :  { %1513 = vmatpush1.bf16.msra.mxu0 %v4014_v55  ;;  %1756 = vmatpush1.bf16.msra.mxu1 %v4014_v55  ;;  %v4060_v55 = vld [vmem:[#allocation53_spill] sm:$0xff] }
 0x1dc   :  { %1514 = vmatprep.subr.bf16.mxu0 %v4015_v56  ;;  %1757 = vmatprep.subr.bf16.mxu1 %v4015_v56  ;;  %v4061_v56 = vld [vmem:[#allocation54_spill] sm:$0xff] }
 0x1df   :  { %1515 = vmatpush1.bf16.msra.mxu0 %v4016_v61  ;;  %1758 = vmatpush1.bf16.msra.mxu1 %v4016_v61  ;;  %v4064_v61 = vld [vmem:[#allocation57_spill] sm:$0xff] }
 0x1e0   :  { %1525 = vmatprep.subr.bf16.mxu0 %v4017_v62  ;;  %1768 = vmatprep.subr.bf16.mxu1 %v4017_v62  ;;  %v1858_v62 = vlaneseq }
 0x1e2   :  { %1517 = vmatmul.mubr.bf16.vlgmr.msra.gmra.mrb[4].mxu0 %v2061_v57  ;;  %1760 = vmatmul.mubr.bf16.vlgmr.msra.gmra.mrb[4].mxu1 %v2075_v58  ;;  %v4062_v57 = vld [vmem:[#allocation55_spill] sm:$0xff]  ;;  %v4063_v58 = vld [vmem:[#allocation56_spill] sm:$0xff] }
 0x1e3   :  { %1526 = vmatpush1.bf16.msra.mxu0 %v3065_v13  ;;  %1769 = vmatpush1.bf16.msra.mxu1 %v3065_v13  ;;  %v4040_v13 = vld [vmem:[#allocation34_spill] sm:$0xff] }
 0x1e4   :  { %1527 = vmatprep.subr.bf16.mxu0 %v4018_v1  ;;  %1770 = vmatprep.subr.bf16.mxu1 %v4018_v1  ;;  %v1856_v1 = vld [vmem:[%s3836_s2] sm:$0x3] }
 0x1e5   :  { %1557 = vmatprep.mubr.bf16.mxu0 %v2064_v63  ;;  %1800 = vmatprep.mubr.bf16.mxu1 %v2078_v0  ;;  %v1859_v63 = vshrl.u32 %v1858_v62, 7 }
 0x1e7   :  { %1528 = vmatpush1.bf16.msra.mxu0 %v4019_v2  ;;  %1771 = vmatpush1.bf16.msra.mxu1 %v4019_v2  ;;  %v1860_v0 = vsub.s32 0, %v1859_v63  ;;  %v1864_v2 = vsub.s32 1, %v1859_v63 }
 0x1e8   :  { %1529 = vmatprep.subr.bf16.mxu0 %v4020_v3  ;;  %1772 = vmatprep.subr.bf16.mxu1 %v4020_v3 }
 0x1eb   :  { %1530 = vmatpush1.bf16.msra.mxu0 %v4021_v4  ;;  %1773 = vmatpush1.bf16.msra.mxu1 %v4021_v4 }
 0x1ec   :  { %1531 = vmatprep.subr.bf16.mxu0 %v4022_v5  ;;  %1774 = vmatprep.subr.bf16.mxu1 %v4022_v5 }
 0x1ef   :  { %1532 = vmatpush1.bf16.msra.mxu0 %v4023_v6  ;;  %1775 = vmatpush1.bf16.msra.mxu1 %v4023_v6  ;;  %v1861_v6 = vrot.slane %v1856_v1, %v1860_v0 }
 0x1f0   :  { %1533 = vmatprep.subr.bf16.mxu0 %v4024_v7  ;;  %1776 = vmatprep.subr.bf16.mxu1 %v4024_v7 }
 0x1f3   :  { %1534 = vmatpush1.bf16.msra.mxu0 %v4025_v8  ;;  %1777 = vmatpush1.bf16.msra.mxu1 %v4025_v8 }
 0x1f4   :  { %1535 = vmatprep.subr.bf16.mxu0 %v4026_v9  ;;  %1778 = vmatprep.subr.bf16.mxu1 %v4026_v9 }
 0x1f5   :  { %v3724_v10 = vpop.f32.mrb[0].mxu0  ;;  %v3726_v15 = vpop.f32.mrb[0].mxu1 }
 0x1f6   :  { %v1850_v16 = vmax.f32 %v3724_v10, %v3726_v15  ;;  %v3730_v19 = vpop.f32.mrb[1].mxu0  ;;  %v3732_v20 = vpop.f32.mrb[1].mxu1 }
 0x1f7   :  { %v1851_v21 = vmax.f32 %v3730_v19, %v3732_v20  ;;  %v1118_v22 = vpop.f32.mrb[2].mxu0  ;;  %v1361_v23 = vpop.f32.mrb[2].mxu1  ;;  %1536 = vmatpush1.bf16.msra.mxu0 %v4027_v24  ;;  %1779 = vmatpush1.bf16.msra.mxu1 %v4027_v24 }
 0x1f8   :  { %v1119_v25 = vpop.f32.mrb[3].mxu0  ;;  %v1362_v26 = vpop.f32.mrb[3].mxu1  ;;  %1537 = vmatprep.subr.bf16.mxu0 %v4028_v27  ;;  %1780 = vmatprep.subr.bf16.mxu1 %v4028_v27  ;;  %v1865_v22 = vrot.slane %v1856_v1, %v1864_v2 }
 0x1fb   :  { %1538 = vmatpush1.bf16.msra.mxu0 %v4029_v28  ;;  %1781 = vmatpush1.bf16.msra.mxu1 %v4029_v28 }
 0x1fc   :  { %1539 = vmatprep.subr.bf16.mxu0 %v4030_v29  ;;  %1782 = vmatprep.subr.bf16.mxu1 %v4030_v29 }
 0x1ff   :  { %1540 = vmatpush1.bf16.msra.mxu0 %v4031_v30  ;;  %1783 = vmatpush1.bf16.msra.mxu1 %v4031_v30 }
 0x200   :  { %1541 = vmatprep.subr.bf16.mxu0 %v4032_v31  ;;  %1784 = vmatprep.subr.bf16.mxu1 %v4032_v31 }
 0x203   :  { %1542 = vmatpush1.bf16.msra.mxu0 %v4033_v32  ;;  %1785 = vmatpush1.bf16.msra.mxu1 %v4033_v32 }
 0x204   :  { %1543 = vmatprep.subr.bf16.mxu0 %v4034_v33  ;;  %1786 = vmatprep.subr.bf16.mxu1 %v4034_v33 }
 0x207   :  { %1544 = vmatpush1.bf16.msra.mxu0 %v4035_v34  ;;  %1787 = vmatpush1.bf16.msra.mxu1 %v4035_v34 }
 0x208   :  { %1545 = vmatprep.subr.bf16.mxu0 %v4036_v35  ;;  %1788 = vmatprep.subr.bf16.mxu1 %v4036_v35 }
 0x20b   :  { %1546 = vmatpush1.bf16.msra.mxu0 %v4037_v36  ;;  %1789 = vmatpush1.bf16.msra.mxu1 %v4037_v36 }
 0x20c   :  { %1547 = vmatprep.subr.bf16.mxu0 %v4038_v37  ;;  %1790 = vmatprep.subr.bf16.mxu1 %v4038_v37 }
 0x20f   :  { %1548 = vmatpush1.bf16.msra.mxu0 %v4039_v38  ;;  %1791 = vmatpush1.bf16.msra.mxu1 %v4039_v38 }
 0x210   :  { %1549 = vmatprep.subr.bf16.mxu0 %v4040_v13  ;;  %1792 = vmatprep.subr.bf16.mxu1 %v4040_v13 }
 0x213   :  { %1550 = vmatpush1.bf16.msra.mxu0 %v4041_v39  ;;  %1793 = vmatpush1.bf16.msra.mxu1 %v4041_v39 }
 0x214   :  { %1551 = vmatprep.subr.bf16.mxu0 %v4042_v43  ;;  %1794 = vmatprep.subr.bf16.mxu1 %v4042_v43 }
 0x217   :  { %1552 = vmatpush1.bf16.msra.mxu0 %v4043_v11  ;;  %1795 = vmatpush1.bf16.msra.mxu1 %v4043_v11 }
 0x218   :  { %1553 = vmatprep.subr.bf16.mxu0 %v4044_v14  ;;  %1796 = vmatprep.subr.bf16.mxu1 %v4044_v14 }
 0x21b   :  { %1554 = vmatpush1.bf16.msra.mxu0 %v4045_v17  ;;  %1797 = vmatpush1.bf16.msra.mxu1 %v4045_v17 }
 0x21c   :  { %1555 = vmatprep.subr.bf16.mxu0 %v4046_v40  ;;  %1798 = vmatprep.subr.bf16.mxu1 %v4046_v40 }
 0x21f   :  { %1556 = vmatpush1.bf16.msra.mxu0 %v4047_v18  ;;  %1799 = vmatpush1.bf16.msra.mxu1 %v4047_v18 }
 0x220   :  { %1566 = vmatprep.subr.bf16.mxu0 %v4048_v41  ;;  %1809 = vmatprep.subr.bf16.mxu1 %v4048_v41 }
 0x222   :  { %1558 = vmatmul.mubr.bf16.vlgmr.msra.gmra.mrb[4].mxu0 %v2063_v12  ;;  %1801 = vmatmul.mubr.bf16.vlgmr.msra.gmra.mrb[4].mxu1 %v2077_v44 }
 0x223   :  { %1567 = vmatpush1.bf16.msra.mxu0 %v4049_v42  ;;  %1810 = vmatpush1.bf16.msra.mxu1 %v4049_v42 }
 0x224   :  { %1568 = vmatprep.subr.bf16.mxu0 %v4050_v45  ;;  %1811 = vmatprep.subr.bf16.mxu1 %v4050_v45 }
 0x225   :  { %1598 = vmatprep.mubr.bf16.mxu0 %v4051_v46  ;;  %1841 = vmatprep.mubr.bf16.mxu1 %v4051_v46 }
 0x227   :  { %1569 = vmatpush1.bf16.msra.mxu0 %v4052_v47  ;;  %1812 = vmatpush1.bf16.msra.mxu1 %v4052_v47 }
 0x228   :  { %1570 = vmatprep.subr.bf16.mxu0 %v4053_v48  ;;  %1813 = vmatprep.subr.bf16.mxu1 %v4053_v48 }
 0x22b   :  { %1571 = vmatpush1.bf16.msra.mxu0 %v4054_v49  ;;  %1814 = vmatpush1.bf16.msra.mxu1 %v4054_v49 }
 0x22c   :  { %1572 = vmatprep.subr.bf16.mxu0 %v4055_v50  ;;  %1815 = vmatprep.subr.bf16.mxu1 %v4055_v50 }
 0x22f   :  { %1573 = vmatpush1.bf16.msra.mxu0 %v4056_v51  ;;  %1816 = vmatpush1.bf16.msra.mxu1 %v4056_v51 }
 0x230   :  { %1574 = vmatprep.subr.bf16.mxu0 %v4057_v52  ;;  %1817 = vmatprep.subr.bf16.mxu1 %v4057_v52 }
 0x233   :  { %1575 = vmatpush1.bf16.msra.mxu0 %v4058_v53  ;;  %1818 = vmatpush1.bf16.msra.mxu1 %v4058_v53 }
 0x234   :  { %1576 = vmatprep.subr.bf16.mxu0 %v4059_v54  ;;  %1819 = vmatprep.subr.bf16.mxu1 %v4059_v54 }
 0x237   :  { %1577 = vmatpush1.bf16.msra.mxu0 %v4060_v55  ;;  %1820 = vmatpush1.bf16.msra.mxu1 %v4060_v55 }
 0x238   :  { %1578 = vmatprep.subr.bf16.mxu0 %v4061_v56  ;;  %1821 = vmatprep.subr.bf16.mxu1 %v4061_v56 }
 0x23b   :  { %1579 = vmatpush1.bf16.msra.mxu0 %v4062_v57  ;;  %1822 = vmatpush1.bf16.msra.mxu1 %v4062_v57 }
 0x23c   :  { %1580 = vmatprep.subr.bf16.mxu0 %v4063_v58  ;;  %1823 = vmatprep.subr.bf16.mxu1 %v4063_v58 }
 0x23f   :  { %1581 = vmatpush1.bf16.msra.mxu0 %v4064_v61  ;;  %1824 = vmatpush1.bf16.msra.mxu1 %v4064_v61 }
 0x242   :  { %1599 = vmatmul.mubr.bf16.vlgmr.msra.gmra.mrb[4].mxu0 %v2397_v59  ;;  %1842 = vmatmul.mubr.bf16.vlgmr.msra.gmra.mrb[4].mxu1 %v2398_v60 }
 0x315   :  { %v1600_v3 = vpop.f32.mrb[4].mxu0  ;;  %v1843_v4 = vpop.f32.mrb[4].mxu1 }
 0x316   :  { %v1852_v5 = vmax.f32 %v1600_v3, %v1843_v4  ;;  %v1602_v7 = vpop.f32.mrb[5].mxu0  ;;  %v1845_v8 = vpop.f32.mrb[5].mxu1 }
 0x317   :  { %v1853_v9 = vmax.f32 %v1602_v7, %v1845_v8  ;;  %v1604_v23 = vpop.f32.mrb[6].mxu0  ;;  %v1847_v24 = vpop.f32.mrb[6].mxu1 }
 0x318   :  { %v1854_v25 = vmax.f32 %v1850_v16, %v1852_v5  ;;  %v1605_v26 = vpop.f32.mrb[7].mxu0  ;;  %v1848_v27 = vpop.f32.mrb[7].mxu1 }
 0x319   :  { %v1855_v28 = vmax.f32 %v1851_v21, %v1853_v9 }
 0x31a   :  { %v1868_v29 = vadd.f32 %v1861_v6, %v1854_v25 }
 0x31b   :  { %v1869_v30 = vadd.f32 %v1865_v22, %v1855_v28 }
 0x31c   :  { %v1870_v31 = vmax.f32 %v1868_v29, 0.0 }
 0x31d   :  { %v1871_v32 = vmax.f32 %v1869_v30, 0.0 }
 0x31f   :  { %v2081_v33 = vpack.c.bf16 %v1871_v32, %v1870_v31 }
 0x321   :  { %1880 = vst [vmem:[%s3837_s3] sm:$0xff] %v2081_v33 }

// kernel: localization_network.7
= control target key start
LH: loop header
LB: loop body
LE: loop exit
PB: predicated region body
PF: predicated region fallthrough
CT: control target
= control target key end

     0   :  { %vm4323_vm0 = vcmask 64512   ;;  %vm5130_vm1 = vcmask 320512   ;;  %s9094_s2 = inlined_call_operand.vmem [shape: bf16[2304,512], index: 2, kind: input, shape index: {}]   ;;  %s9095_s0 = inlined_call_operand.vmem [shape: bf16[8,2304], index: 0, kind: input, shape index: {}]   ;;  %s9096_s3 = inlined_call_operand.vmem [shape: f32[1,512], index: 3, kind: input, shape index: {}]   ;;  %s9097_s1 = inlined_call_operand.vmem [shape: f32[2,8], index: 1, kind: input, shape index: {}]   ;;  %s9098_s4 = inlined_call_operand.vmem [shape: bf16[512,256], index: 4, kind: input, shape index: {}]   ;;  %s9099_s6 = inlined_call_operand.vmem [shape: bf16[256,40], index: 6, kind: input, shape index: {}]   ;;  %s9100_s5 = inlined_call_operand.vmem [shape: f32[1,256], index: 5, kind: input, shape index: {}]   ;;  %s9101_s7 = inlined_call_operand.vmem [shape: f32[1,40], index: 7, kind: input, shape index: {}]   ;;  %s9102_s8 = inlined_call_operand.vmem [shape: f32[2,40], index: 8, kind: output, shape index: {}]  }
   0x1   :  { %v5908_v0 = vld [vmem:[%s9094_s2 + $0x4] ss:$16 sps:$4 sm:$0xff]   ;;  %v5912_v2 = vld [vmem:[%s9094_s2] ss:$16 sps:$4 sm:$0xff]   ;;  %v31_v48 = vld [vmem:[%s9095_s0 + $0x8] sm:$0xff] }
   0x2   :  { %v5910_v1 = vld [vmem:[%s9094_s2 + $0x204] ss:$16 sps:$4 sm:$0xff]   ;;  %3580 = vmatprep.subr.bf16.mxu1 %v5908_v0  ;;  %v5913_v3 = vld [vmem:[%s9094_s2 + $0x200] ss:$16 sps:$4 sm:$0xff]   ;;  %v7100_v51 = vcombine.high %v31_v48, %v31_v48 }
   0x3   :  { %3621 = vmatprep.subr.bf16.mxu0 %v5910_v1  ;;  %v5914_v4 = vld [vmem:[%s9094_s2 + $0x24] ss:$16 sps:$4 sm:$0xff]   ;;  %3581 = vmatpush1.bf16.msra.mxu1 %v5912_v2  ;;  %v5918_v6 = vld [vmem:[%s9094_s2 + $0x20] ss:$16 sps:$4 sm:$0xff]  }
   0x4   :  { %3622 = vmatpush1.bf16.msra.mxu0 %v5913_v3  ;;  %v5916_v5 = vld [vmem:[%s9094_s2 + $0x224] ss:$16 sps:$4 sm:$0xff]   ;;  %3582 = vmatprep.subr.bf16.mxu1 %v5914_v4  ;;  %v5919_v7 = vld [vmem:[%s9094_s2 + $0x220] ss:$16 sps:$4 sm:$0xff]  }
   0x5   :  { %3623 = vmatprep.subr.bf16.mxu0 %v5916_v5  ;;  %v5920_v8 = vld [vmem:[%s9094_s2 + $0x44] ss:$16 sps:$4 sm:$0xff]   ;;  %v5924_v10 = vld [vmem:[%s9094_s2 + $0x40] ss:$16 sps:$4 sm:$0xff]   ;;  %3653 = vmatprep.mubr.bf16.mxu0 %v7100_v51  ;;  %v6013_v5 = vld [vmem:[%s9094_s2 + $0xc] ss:$16 sps:$4 sm:$0xff]  }
   0x6   :  { %v5922_v9 = vld [vmem:[%s9094_s2 + $0x244] ss:$16 sps:$4 sm:$0xff]   ;;  %v5925_v11 = vld [vmem:[%s9094_s2 + $0x240] ss:$16 sps:$4 sm:$0xff]  }
   0x7   :  { %3583 = vmatpush1.bf16.msra.mxu1 %v5918_v6  ;;  %v5926_v12 = vld [vmem:[%s9094_s2 + $0x64] ss:$16 sps:$4 sm:$0xff]   ;;  %v5930_v14 = vld [vmem:[%s9094_s2 + $0x60] ss:$16 sps:$4 sm:$0xff]  }
   0x8   :  { %3624 = vmatpush1.bf16.msra.mxu0 %v5919_v7  ;;  %3584 = vmatprep.subr.bf16.mxu1 %v5920_v8  ;;  %v5928_v13 = vld [vmem:[%s9094_s2 + $0x264] ss:$16 sps:$4 sm:$0xff]   ;;  %v5931_v15 = vld [vmem:[%s9094_s2 + $0x260] ss:$16 sps:$4 sm:$0xff]   ;;  %v7160_v7 = vcombine.low %v31_v48, %v31_v48 }
   0x9   :  { %3625 = vmatprep.subr.bf16.mxu0 %v5922_v9  ;;  %v5932_v16 = vld [vmem:[%s9094_s2 + $0x84] ss:$16 sps:$4 sm:$0xff]   ;;  %v5936_v18 = vld [vmem:[%s9094_s2 + $0x80] ss:$16 sps:$4 sm:$0xff]   ;;  %v6011_v9 = vld [vmem:[%s9094_s2 + $0x8] ss:$16 sps:$4 sm:$0xff]  }
   0xa   :  { %v5934_v17 = vld [vmem:[%s9094_s2 + $0x284] ss:$16 sps:$4 sm:$0xff]   ;;  %v5937_v19 = vld [vmem:[%s9094_s2 + $0x280] ss:$16 sps:$4 sm:$0xff]  }
   0xb   :  { %3585 = vmatpush1.bf16.msra.mxu1 %v5924_v10  ;;  %v5938_v20 = vld [vmem:[%s9094_s2 + $0xa4] ss:$16 sps:$4 sm:$0xff]   ;;  %v5942_v22 = vld [vmem:[%s9094_s2 + $0xa0] ss:$16 sps:$4 sm:$0xff]  }
   0xc   :  { %3626 = vmatpush1.bf16.msra.mxu0 %v5925_v11  ;;  %3586 = vmatprep.subr.bf16.mxu1 %v5926_v12  ;;  %v5940_v21 = vld [vmem:[%s9094_s2 + $0x2a4] ss:$16 sps:$4 sm:$0xff]   ;;  %v5943_v23 = vld [vmem:[%s9094_s2 + $0x2a0] ss:$16 sps:$4 sm:$0xff]   ;;  %v6019_v11 = vld [vmem:[%s9094_s2 + $0x2c] ss:$16 sps:$4 sm:$0xff]  }
   0xd   :  { %3627 = vmatprep.subr.bf16.mxu0 %v5928_v13  ;;  %v5944_v24 = vld [vmem:[%s9094_s2 + $0xc4] ss:$16 sps:$4 sm:$0xff]   ;;  %v5948_v26 = vld [vmem:[%s9094_s2 + $0xc0] ss:$16 sps:$4 sm:$0xff]   ;;  %v6017_v13 = vld [vmem:[%s9094_s2 + $0x28] ss:$16 sps:$4 sm:$0xff]  }
   0xe   :  { %v5946_v25 = vld [vmem:[%s9094_s2 + $0x2c4] ss:$16 sps:$4 sm:$0xff]   ;;  %v5949_v27 = vld [vmem:[%s9094_s2 + $0x2c0] ss:$16 sps:$4 sm:$0xff]  }
   0xf   :  { %3587 = vmatpush1.bf16.msra.mxu1 %v5930_v14  ;;  %v5950_v28 = vld [vmem:[%s9094_s2 + $0xe4] ss:$16 sps:$4 sm:$0xff]   ;;  %v5954_v30 = vld [vmem:[%s9094_s2 + $0xe0] ss:$16 sps:$4 sm:$0xff]  }
  0x10   :  { %3628 = vmatpush1.bf16.msra.mxu0 %v5931_v15  ;;  %3588 = vmatprep.subr.bf16.mxu1 %v5932_v16  ;;  %v5952_v29 = vld [vmem:[%s9094_s2 + $0x2e4] ss:$16 sps:$4 sm:$0xff]   ;;  %v5955_v31 = vld [vmem:[%s9094_s2 + $0x2e0] ss:$16 sps:$4 sm:$0xff]   ;;  %v6025_v15 = vld [vmem:[%s9094_s2 + $0x4c] ss:$16 sps:$4 sm:$0xff]  }
  0x11   :  { %3629 = vmatprep.subr.bf16.mxu0 %v5934_v17  ;;  %v5956_v32 = vld [vmem:[%s9094_s2 + $0x104] ss:$16 sps:$4 sm:$0xff]   ;;  %v5960_v34 = vld [vmem:[%s9094_s2 + $0x100] ss:$16 sps:$4 sm:$0xff]   ;;  %v6023_v17 = vld [vmem:[%s9094_s2 + $0x48] ss:$16 sps:$4 sm:$0xff]  }
  0x12   :  { %v5958_v33 = vld [vmem:[%s9094_s2 + $0x304] ss:$16 sps:$4 sm:$0xff]   ;;  %v5961_v35 = vld [vmem:[%s9094_s2 + $0x300] ss:$16 sps:$4 sm:$0xff]  }
  0x13   :  { %3589 = vmatpush1.bf16.msra.mxu1 %v5936_v18  ;;  %v5962_v36 = vld [vmem:[%s9094_s2 + $0x124] ss:$16 sps:$4 sm:$0xff]   ;;  %v5966_v38 = vld [vmem:[%s9094_s2 + $0x120] ss:$16 sps:$4 sm:$0xff]  }
  0x14   :  { %3630 = vmatpush1.bf16.msra.mxu0 %v5937_v19  ;;  %3590 = vmatprep.subr.bf16.mxu1 %v5938_v20  ;;  %v5964_v37 = vld [vmem:[%s9094_s2 + $0x324] ss:$16 sps:$4 sm:$0xff]   ;;  %v5967_v39 = vld [vmem:[%s9094_s2 + $0x320] ss:$16 sps:$4 sm:$0xff]   ;;  %v6031_v19 = vld [vmem:[%s9094_s2 + $0x6c] ss:$16 sps:$4 sm:$0xff]  }
  0x15   :  { %3631 = vmatprep.subr.bf16.mxu0 %v5940_v21  ;;  %v5968_v40 = vld [vmem:[%s9094_s2 + $0x144] ss:$16 sps:$4 sm:$0xff]   ;;  %v5972_v42 = vld [vmem:[%s9094_s2 + $0x140] ss:$16 sps:$4 sm:$0xff]   ;;  %v6029_v21 = vld [vmem:[%s9094_s2 + $0x68] ss:$16 sps:$4 sm:$0xff]  }
  0x16   :  { %v5970_v41 = vld [vmem:[%s9094_s2 + $0x344] ss:$16 sps:$4 sm:$0xff]   ;;  %v5973_v43 = vld [vmem:[%s9094_s2 + $0x340] ss:$16 sps:$4 sm:$0xff]  }
  0x17   :  { %3591 = vmatpush1.bf16.msra.mxu1 %v5942_v22  ;;  %v5974_v44 = vld [vmem:[%s9094_s2 + $0x164] ss:$16 sps:$4 sm:$0xff]   ;;  %v5978_v49 = vld [vmem:[%s9094_s2 + $0x160] ss:$16 sps:$4 sm:$0xff]  }
  0x18   :  { %3632 = vmatpush1.bf16.msra.mxu0 %v5943_v23  ;;  %3592 = vmatprep.subr.bf16.mxu1 %v5944_v24  ;;  %v5976_v45 = vld [vmem:[%s9094_s2 + $0x364] ss:$16 sps:$4 sm:$0xff]   ;;  %v5979_v50 = vld [vmem:[%s9094_s2 + $0x360] ss:$16 sps:$4 sm:$0xff]   ;;  %v6037_v23 = vld [vmem:[%s9094_s2 + $0x8c] ss:$16 sps:$4 sm:$0xff]  }
  0x19   :  { %3633 = vmatprep.subr.bf16.mxu0 %v5946_v25  ;;  %v30_v46 = vld [vmem:[%s9095_s0] sm:$0xff]  ;;  %v6035_v25 = vld [vmem:[%s9094_s2 + $0x88] ss:$16 sps:$4 sm:$0xff]  }
  0x1a   :  { %v7089_v47 = vcombine.high %v30_v46, %v30_v46  ;;  %v5980_v52 = vld [vmem:[%s9094_s2 + $0x184] ss:$16 sps:$4 sm:$0xff]   ;;  %v5984_v54 = vld [vmem:[%s9094_s2 + $0x180] ss:$16 sps:$4 sm:$0xff]   ;;  %v7158_v6 = vcombine.low %v30_v46, %v30_v46 }
  0x1b   :  { %3593 = vmatpush1.bf16.msra.mxu1 %v5948_v26  ;;  %v5982_v53 = vld [vmem:[%s9094_s2 + $0x384] ss:$16 sps:$4 sm:$0xff]   ;;  %v5985_v55 = vld [vmem:[%s9094_s2 + $0x380] ss:$16 sps:$4 sm:$0xff]  }
  0x1c   :  { %3634 = vmatpush1.bf16.msra.mxu0 %v5949_v27  ;;  %3594 = vmatprep.subr.bf16.mxu1 %v5950_v28  ;;  %v5986_v56 = vld [vmem:[%s9094_s2 + $0x1a4] ss:$16 sps:$4 sm:$0xff]   ;;  %v5990_v58 = vld [vmem:[%s9094_s2 + $0x1a0] ss:$16 sps:$4 sm:$0xff]   ;;  %v6043_v27 = vld [vmem:[%s9094_s2 + $0xac] ss:$16 sps:$4 sm:$0xff]  }
  0x1d   :  { %3635 = vmatprep.subr.bf16.mxu0 %v5952_v29  ;;  %3612 = vmatprep.mubr.bf16.mxu1 %v7089_v47  ;;  %v5988_v57 = vld [vmem:[%s9094_s2 + $0x3a4] ss:$16 sps:$4 sm:$0xff]   ;;  %v5991_v59 = vld [vmem:[%s9094_s2 + $0x3a0] ss:$16 sps:$4 sm:$0xff]   ;;  %v6041_v29 = vld [vmem:[%s9094_s2 + $0xa8] ss:$16 sps:$4 sm:$0xff]  }
  0x1e   :  { %v5992_v60 = vld [vmem:[%s9094_s2 + $0x1c4] ss:$16 sps:$4 sm:$0xff]   ;;  %v5996_v62 = vld [vmem:[%s9094_s2 + $0x1c0] ss:$16 sps:$4 sm:$0xff]  }
  0x1f   :  { %3595 = vmatpush1.bf16.msra.mxu1 %v5954_v30  ;;  %v5994_v61 = vld [vmem:[%s9094_s2 + $0x3c4] ss:$16 sps:$4 sm:$0xff]   ;;  %v5997_v63 = vld [vmem:[%s9094_s2 + $0x3c0] ss:$16 sps:$4 sm:$0xff]  }
  0x20   :  { %3636 = vmatpush1.bf16.msra.mxu0 %v5955_v31  ;;  %3596 = vmatprep.subr.bf16.mxu1 %v5956_v32  ;;  %v5998_v0 = vld [vmem:[%s9094_s2 + $0x1e4] ss:$16 sps:$4 sm:$0xff]   ;;  %v6002_v2 = vld [vmem:[%s9094_s2 + $0x1e0] ss:$16 sps:$4 sm:$0xff]   ;;  %v6049_v31 = vld [vmem:[%s9094_s2 + $0xcc] ss:$16 sps:$4 sm:$0xff]  }
  0x21   :  { %3637 = vmatprep.subr.bf16.mxu0 %v5958_v33  ;;  %v6000_v1 = vld [vmem:[%s9094_s2 + $0x3e4] ss:$16 sps:$4 sm:$0xff]   ;;  %v6003_v3 = vld [vmem:[%s9094_s2 + $0x3e0] ss:$16 sps:$4 sm:$0xff]  }
  0x22   :  { %v6010_v4 = vld [vmem:[%s9094_s2 + $0x404] ss:$16 sps:$4 sm:$0xff]   ;;  %v6008_v8 = vld [vmem:[%s9094_s2 + $0x400] ss:$16 sps:$4 sm:$0xff]  }
  0x23   :  { %3597 = vmatpush1.bf16.msra.mxu1 %v5960_v34  ;;  %v6016_v10 = vld [vmem:[%s9094_s2 + $0x424] ss:$16 sps:$4 sm:$0xff]   ;;  %v6014_v12 = vld [vmem:[%s9094_s2 + $0x420] ss:$16 sps:$4 sm:$0xff]  }
  0x24   :  { %3638 = vmatpush1.bf16.msra.mxu0 %v5961_v35  ;;  %3598 = vmatprep.subr.bf16.mxu1 %v5962_v36  ;;  %v6022_v14 = vld [vmem:[%s9094_s2 + $0x444] ss:$16 sps:$4 sm:$0xff]   ;;  %v6020_v16 = vld [vmem:[%s9094_s2 + $0x440] ss:$16 sps:$4 sm:$0xff]   ;;  %v6047_v35 = vld [vmem:[%s9094_s2 + $0xc8] ss:$16 sps:$4 sm:$0xff]  }
  0x25   :  { %3639 = vmatprep.subr.bf16.mxu0 %v5964_v37  ;;  %v6028_v18 = vld [vmem:[%s9094_s2 + $0x464] ss:$16 sps:$4 sm:$0xff]   ;;  %v6026_v20 = vld [vmem:[%s9094_s2 + $0x460] ss:$16 sps:$4 sm:$0xff]   ;;  %v6055_v37 = vld [vmem:[%s9094_s2 + $0xec] ss:$16 sps:$4 sm:$0xff]  }
  0x26   :  { %v6034_v22 = vld [vmem:[%s9094_s2 + $0x484] ss:$16 sps:$4 sm:$0xff]   ;;  %v6032_v24 = vld [vmem:[%s9094_s2 + $0x480] ss:$16 sps:$4 sm:$0xff]  }
  0x27   :  { %3599 = vmatpush1.bf16.msra.mxu1 %v5966_v38  ;;  %v6040_v26 = vld [vmem:[%s9094_s2 + $0x4a4] ss:$16 sps:$4 sm:$0xff]   ;;  %v6038_v28 = vld [vmem:[%s9094_s2 + $0x4a0] ss:$16 sps:$4 sm:$0xff]  }
  0x28   :  { %3640 = vmatpush1.bf16.msra.mxu0 %v5967_v39  ;;  %3600 = vmatprep.subr.bf16.mxu1 %v5968_v40  ;;  %v6046_v30 = vld [vmem:[%s9094_s2 + $0x4c4] ss:$16 sps:$4 sm:$0xff]   ;;  %v6044_v33 = vld [vmem:[%s9094_s2 + $0x4c0] ss:$16 sps:$4 sm:$0xff]   ;;  %v6053_v39 = vld [vmem:[%s9094_s2 + $0xe8] ss:$16 sps:$4 sm:$0xff]  }
  0x29   :  { %3641 = vmatprep.subr.bf16.mxu0 %v5970_v41  ;;  %v7240_v32 = vld [vmem:[%s9095_s0 + $0x10] sm:$0xff]  ;;  %v6061_v41 = vld [vmem:[%s9094_s2 + $0x10c] ss:$16 sps:$4 sm:$0xff]  }
  0x2a   :  { %v7247_v34 = vcombine.high %v7240_v32, %v7240_v32  ;;  %v6052_v36 = vld [vmem:[%s9094_s2 + $0x4e4] ss:$16 sps:$4 sm:$0xff]   ;;  %v6050_v38 = vld [vmem:[%s9094_s2 + $0x4e0] ss:$16 sps:$4 sm:$0xff]  }
  0x2b   :  { %3601 = vmatpush1.bf16.msra.mxu1 %v5972_v42  ;;  %v6058_v40 = vld [vmem:[%s9094_s2 + $0x504] ss:$16 sps:$4 sm:$0xff]   ;;  %v6056_v42 = vld [vmem:[%s9094_s2 + $0x500] ss:$16 sps:$4 sm:$0xff]  }
  0x2c   :  { %3642 = vmatpush1.bf16.msra.mxu0 %v5973_v43  ;;  %3602 = vmatprep.subr.bf16.mxu1 %v5974_v44  ;;  %v6059_v43 = vld [vmem:[%s9094_s2 + $0x108] ss:$16 sps:$4 sm:$0xff]   ;;  %v6064_v44 = vld [vmem:[%s9094_s2 + $0x524] ss:$16 sps:$4 sm:$0xff]   ;;  %v6062_v46 = vld [vmem:[%s9094_s2 + $0x520] ss:$16 sps:$4 sm:$0xff]  }
  0x2d   :  { %3643 = vmatprep.subr.bf16.mxu0 %v5976_v45  ;;  %v6067_v45 = vld [vmem:[%s9094_s2 + $0x12c] ss:$16 sps:$4 sm:$0xff]   ;;  %v6070_v48 = vld [vmem:[%s9094_s2 + $0x544] ss:$16 sps:$4 sm:$0xff]  }
  0x2f   :  { %3603 = vmatpush1.bf16.msra.mxu1 %v5978_v49  ;;  %v6073_v49 = vld [vmem:[%s9094_s2 + $0x14c] ss:$16 sps:$4 sm:$0xff]  }
  0x30   :  { %3644 = vmatpush1.bf16.msra.mxu0 %v5979_v50  ;;  %3604 = vmatprep.subr.bf16.mxu1 %v5980_v52  ;;  %v6068_v50 = vld [vmem:[%s9094_s2 + $0x540] ss:$16 sps:$4 sm:$0xff]   ;;  %v6071_v52 = vld [vmem:[%s9094_s2 + $0x148] ss:$16 sps:$4 sm:$0xff]  }
  0x31   :  { %3645 = vmatprep.subr.bf16.mxu0 %v5982_v53  ;;  %v6076_v53 = vld [vmem:[%s9094_s2 + $0x564] ss:$16 sps:$4 sm:$0xff]  }
  0x33   :  { %3605 = vmatpush1.bf16.msra.mxu1 %v5984_v54  ;;  %v6079_v54 = vld [vmem:[%s9094_s2 + $0x16c] ss:$16 sps:$4 sm:$0xff]  }
  0x34   :  { %3646 = vmatpush1.bf16.msra.mxu0 %v5985_v55  ;;  %3606 = vmatprep.subr.bf16.mxu1 %v5986_v56  ;;  %v6074_v55 = vld [vmem:[%s9094_s2 + $0x560] ss:$16 sps:$4 sm:$0xff]   ;;  %v6077_v56 = vld [vmem:[%s9094_s2 + $0x168] ss:$16 sps:$4 sm:$0xff]  }
  0x35   :  { %3647 = vmatprep.subr.bf16.mxu0 %v5988_v57  ;;  %v6082_v57 = vld [vmem:[%s9094_s2 + $0x584] ss:$16 sps:$4 sm:$0xff]  }
  0x37   :  { %3607 = vmatpush1.bf16.msra.mxu1 %v5990_v58  ;;  %v6085_v58 = vld [vmem:[%s9094_s2 + $0x18c] ss:$16 sps:$4 sm:$0xff]  }
  0x38   :  { %3648 = vmatpush1.bf16.msra.mxu0 %v5991_v59  ;;  %3608 = vmatprep.subr.bf16.mxu1 %v5992_v60  ;;  %v6080_v59 = vld [vmem:[%s9094_s2 + $0x580] ss:$16 sps:$4 sm:$0xff]   ;;  %v6083_v60 = vld [vmem:[%s9094_s2 + $0x188] ss:$16 sps:$4 sm:$0xff]  }
  0x39   :  { %3649 = vmatprep.subr.bf16.mxu0 %v5994_v61  ;;  %v6088_v61 = vld [vmem:[%s9094_s2 + $0x5a4] ss:$16 sps:$4 sm:$0xff]  }
  0x3b   :  { %3609 = vmatpush1.bf16.msra.mxu1 %v5996_v62  ;;  %v6091_v62 = vld [vmem:[%s9094_s2 + $0x1ac] ss:$16 sps:$4 sm:$0xff]  }
  0x3c   :  { %3650 = vmatpush1.bf16.msra.mxu0 %v5997_v63  ;;  %3610 = vmatprep.subr.bf16.mxu1 %v5998_v0  ;;  %v6086_v63 = vld [vmem:[%s9094_s2 + $0x5a0] ss:$16 sps:$4 sm:$0xff]   ;;  %v6089_v0 = vld [vmem:[%s9094_s2 + $0x1a8] ss:$16 sps:$4 sm:$0xff]  }
  0x3d   :  { %3651 = vmatprep.subr.bf16.mxu0 %v6000_v1  ;;  %v6094_v1 = vld [vmem:[%s9094_s2 + $0x5c4] ss:$16 sps:$4 sm:$0xff]  }
  0x3f   :  { %3611 = vmatpush1.bf16.msra.mxu1 %v6002_v2  ;;  %v6097_v2 = vld [vmem:[%s9094_s2 + $0x1cc] ss:$16 sps:$4 sm:$0xff]  }
  0x40   :  { %3652 = vmatpush1.bf16.msra.mxu0 %v6003_v3  ;;  %3949 = vmatprep.subr.bf16.mxu1 %v6013_v5  ;;  %v6092_v3 = vld [vmem:[%s9094_s2 + $0x5c0] ss:$16 sps:$4 sm:$0xff]   ;;  %v6100_v5 = vld [vmem:[%s9094_s2 + $0x5e4] ss:$16 sps:$4 sm:$0xff]  }
  0x41   :  { %3662 = vmatprep.subr.bf16.mxu0 %v6010_v4  ;;  %v6095_v4 = vld [vmem:[%s9094_s2 + $0x1c8] ss:$16 sps:$4 sm:$0xff]  }
  0x42   :  { %3613 = vmatmul.mubr.bf16.vlgmr.msra.gmra.mrb[0].mxu1 %v7158_v6 }
  0x43   :  { %3654 = vmatmul.mubr.bf16.vlgmr.msra.gmra.mrb[0].mxu0 %v7160_v7  ;;  %3950 = vmatpush1.bf16.msra.mxu1 %v6011_v9  ;;  %v6098_v9 = vld [vmem:[%s9094_s2 + $0x5e0] ss:$16 sps:$4 sm:$0xff]  }
  0x44   :  { %3663 = vmatpush1.bf16.msra.mxu0 %v6008_v8  ;;  %3951 = vmatprep.subr.bf16.mxu1 %v6019_v11  ;;  %v6103_v8 = vld [vmem:[%s9094_s2 + $0x1ec] ss:$16 sps:$4 sm:$0xff]   ;;  %v6108_v11 = vld [vmem:[%s9094_s2 + $0x604] ss:$16 sps:$4 sm:$0xff]  }
  0x45   :  { %3664 = vmatprep.subr.bf16.mxu0 %v6016_v10  ;;  %3981 = vmatprep.mubr.bf16.mxu1 %v7089_v47  ;;  %v6065_v47 = vld [vmem:[%s9094_s2 + $0x128] ss:$16 sps:$4 sm:$0xff]  }
  0x46   :  { %3694 = vmatprep.mubr.bf16.mxu0 %v7247_v34  ;;  %v6101_v10 = vld [vmem:[%s9094_s2 + $0x1e8] ss:$16 sps:$4 sm:$0xff]  }
  0x47   :  { %3952 = vmatpush1.bf16.msra.mxu1 %v6017_v13  ;;  %v7369_v13 = vcombine.low %v7240_v32, %v7240_v32  ;;  %v6138_v32 = vld [vmem:[%s9094_s2 + $0x6a4] ss:$16 sps:$4 sm:$0xff]  }
  0x48   :  { %3665 = vmatpush1.bf16.msra.mxu0 %v6014_v12  ;;  %3953 = vmatprep.subr.bf16.mxu1 %v6025_v15  ;;  %v6111_v12 = vld [vmem:[%s9094_s2 + $0x20c] ss:$16 sps:$4 sm:$0xff]   ;;  %v6109_v15 = vld [vmem:[%s9094_s2 + $0x208] ss:$16 sps:$4 sm:$0xff]  }
  0x49   :  { %3666 = vmatprep.subr.bf16.mxu0 %v6022_v14  ;;  %v6106_v14 = vld [vmem:[%s9094_s2 + $0x600] ss:$16 sps:$4 sm:$0xff]  }
  0x4b   :  { %3954 = vmatpush1.bf16.msra.mxu1 %v6023_v17  ;;  %v6117_v17 = vld [vmem:[%s9094_s2 + $0x22c] ss:$16 sps:$4 sm:$0xff]  }
  0x4c   :  { %3667 = vmatpush1.bf16.msra.mxu0 %v6020_v16  ;;  %3955 = vmatprep.subr.bf16.mxu1 %v6031_v19  ;;  %v6114_v16 = vld [vmem:[%s9094_s2 + $0x624] ss:$16 sps:$4 sm:$0xff]  }
  0x4d   :  { %3668 = vmatprep.subr.bf16.mxu0 %v6028_v18  ;;  %v7386_v18 = vld [vmem:[%s9095_s0 + $0x18] sm:$0xff] }
  0x4e   :  { %v7390_v19 = vcombine.high %v7386_v18, %v7386_v18 }
  0x4f   :  { %3956 = vmatpush1.bf16.msra.mxu1 %v6029_v21  ;;  %v6115_v21 = vld [vmem:[%s9094_s2 + $0x228] ss:$16 sps:$4 sm:$0xff]  }
  0x50   :  { %3669 = vmatpush1.bf16.msra.mxu0 %v6026_v20  ;;  %3957 = vmatprep.subr.bf16.mxu1 %v6037_v23  ;;  %v6112_v20 = vld [vmem:[%s9094_s2 + $0x620] ss:$16 sps:$4 sm:$0xff]  }
  0x51   :  { %3670 = vmatprep.subr.bf16.mxu0 %v6034_v22  ;;  %v6120_v22 = vld [vmem:[%s9094_s2 + $0x644] ss:$16 sps:$4 sm:$0xff]   ;;  %v6118_v23 = vld [vmem:[%s9094_s2 + $0x640] ss:$16 sps:$4 sm:$0xff]  }
  0x53   :  { %3958 = vmatpush1.bf16.msra.mxu1 %v6035_v25  ;;  %v6126_v25 = vld [vmem:[%s9094_s2 + $0x664] ss:$16 sps:$4 sm:$0xff]  }
  0x54   :  { %3671 = vmatpush1.bf16.msra.mxu0 %v6032_v24  ;;  %3959 = vmatprep.subr.bf16.mxu1 %v6043_v27  ;;  %v6121_v24 = vld [vmem:[%s9094_s2 + $0x248] ss:$16 sps:$4 sm:$0xff]  }
  0x55   :  { %3672 = vmatprep.subr.bf16.mxu0 %v6040_v26  ;;  %v6124_v26 = vld [vmem:[%s9094_s2 + $0x660] ss:$16 sps:$4 sm:$0xff]   ;;  %v6127_v27 = vld [vmem:[%s9094_s2 + $0x268] ss:$16 sps:$4 sm:$0xff]  }
  0x57   :  { %3960 = vmatpush1.bf16.msra.mxu1 %v6041_v29  ;;  %v6135_v29 = vld [vmem:[%s9094_s2 + $0x28c] ss:$16 sps:$4 sm:$0xff]  }
  0x58   :  { %3673 = vmatpush1.bf16.msra.mxu0 %v6038_v28  ;;  %3961 = vmatprep.subr.bf16.mxu1 %v6049_v31  ;;  %v6132_v28 = vld [vmem:[%s9094_s2 + $0x684] ss:$16 sps:$4 sm:$0xff]   ;;  %v6133_v31 = vld [vmem:[%s9094_s2 + $0x288] ss:$16 sps:$4 sm:$0xff]  }
  0x59   :  { %3674 = vmatprep.subr.bf16.mxu0 %v6046_v30  ;;  %v6130_v30 = vld [vmem:[%s9094_s2 + $0x680] ss:$16 sps:$4 sm:$0xff]  }
  0x5b   :  { %3962 = vmatpush1.bf16.msra.mxu1 %v6047_v35  ;;  %v6136_v35 = vld [vmem:[%s9094_s2 + $0x6a0] ss:$16 sps:$4 sm:$0xff]  }
  0x5c   :  { %3675 = vmatpush1.bf16.msra.mxu0 %v6044_v33  ;;  %3963 = vmatprep.subr.bf16.mxu1 %v6055_v37  ;;  %v6141_v33 = vld [vmem:[%s9094_s2 + $0x2ac] ss:$16 sps:$4 sm:$0xff]   ;;  %v6144_v37 = vld [vmem:[%s9094_s2 + $0x6c4] ss:$16 sps:$4 sm:$0xff]  }
  0x5d   :  { %3676 = vmatprep.subr.bf16.mxu0 %v6052_v36  ;;  %v6139_v36 = vld [vmem:[%s9094_s2 + $0x2a8] ss:$16 sps:$4 sm:$0xff]  }
  0x5f   :  { %3964 = vmatpush1.bf16.msra.mxu1 %v6053_v39  ;;  %v6142_v39 = vld [vmem:[%s9094_s2 + $0x6c0] ss:$16 sps:$4 sm:$0xff]  }
  0x60   :  { %3677 = vmatpush1.bf16.msra.mxu0 %v6050_v38  ;;  %3965 = vmatprep.subr.bf16.mxu1 %v6061_v41  ;;  %v6147_v38 = vld [vmem:[%s9094_s2 + $0x2cc] ss:$16 sps:$4 sm:$0xff]   ;;  %v6150_v41 = vld [vmem:[%s9094_s2 + $0x6e4] ss:$16 sps:$4 sm:$0xff]  }
  0x61   :  { %3678 = vmatprep.subr.bf16.mxu0 %v6058_v40  ;;  %v6145_v40 = vld [vmem:[%s9094_s2 + $0x2c8] ss:$16 sps:$4 sm:$0xff]  }
  0x63   :  { %3966 = vmatpush1.bf16.msra.mxu1 %v6059_v43  ;;  %v6148_v43 = vld [vmem:[%s9094_s2 + $0x6e0] ss:$16 sps:$4 sm:$0xff]  }
  0x64   :  { %3679 = vmatpush1.bf16.msra.mxu0 %v6056_v42  ;;  %3967 = vmatprep.subr.bf16.mxu1 %v6067_v45  ;;  %v6153_v42 = vld [vmem:[%s9094_s2 + $0x2ec] ss:$16 sps:$4 sm:$0xff]   ;;  %v6156_v45 = vld [vmem:[%s9094_s2 + $0x704] ss:$16 sps:$4 sm:$0xff]  }
  0x65   :  { %3680 = vmatprep.subr.bf16.mxu0 %v6064_v44  ;;  %v6151_v44 = vld [vmem:[%s9094_s2 + $0x2e8] ss:$16 sps:$4 sm:$0xff]  }
  0x67   :  { %3968 = vmatpush1.bf16.msra.mxu1 %v6065_v47  ;;  %v6154_v47 = vld [vmem:[%s9094_s2 + $0x700] ss:$16 sps:$4 sm:$0xff]  }
  0x68   :  { %3681 = vmatpush1.bf16.msra.mxu0 %v6062_v46  ;;  %3969 = vmatprep.subr.bf16.mxu1 %v6073_v49  ;;  %v6159_v46 = vld [vmem:[%s9094_s2 + $0x30c] ss:$16 sps:$4 sm:$0xff]   ;;  %v6162_v49 = vld [vmem:[%s9094_s2 + $0x724] ss:$16 sps:$4 sm:$0xff]  }
  0x69   :  { %3682 = vmatprep.subr.bf16.mxu0 %v6070_v48  ;;  %v6157_v48 = vld [vmem:[%s9094_s2 + $0x308] ss:$16 sps:$4 sm:$0xff]  }
  0x6b   :  { %3970 = vmatpush1.bf16.msra.mxu1 %v6071_v52  ;;  %v6160_v52 = vld [vmem:[%s9094_s2 + $0x720] ss:$16 sps:$4 sm:$0xff]  }
  0x6c   :  { %3683 = vmatpush1.bf16.msra.mxu0 %v6068_v50  ;;  %3971 = vmatprep.subr.bf16.mxu1 %v6079_v54  ;;  %v6165_v50 = vld [vmem:[%s9094_s2 + $0x32c] ss:$16 sps:$4 sm:$0xff]   ;;  %v6168_v54 = vld [vmem:[%s9094_s2 + $0x744] ss:$16 sps:$4 sm:$0xff]  }
  0x6d   :  { %3684 = vmatprep.subr.bf16.mxu0 %v6076_v53  ;;  %v6163_v53 = vld [vmem:[%s9094_s2 + $0x328] ss:$16 sps:$4 sm:$0xff]  }
  0x6f   :  { %3972 = vmatpush1.bf16.msra.mxu1 %v6077_v56  ;;  %v6166_v56 = vld [vmem:[%s9094_s2 + $0x740] ss:$16 sps:$4 sm:$0xff]  }
  0x70   :  { %3685 = vmatpush1.bf16.msra.mxu0 %v6074_v55  ;;  %3973 = vmatprep.subr.bf16.mxu1 %v6085_v58  ;;  %v6171_v55 = vld [vmem:[%s9094_s2 + $0x34c] ss:$16 sps:$4 sm:$0xff]   ;;  %v6174_v58 = vld [vmem:[%s9094_s2 + $0x764] ss:$16 sps:$4 sm:$0xff]  }
  0x71   :  { %3686 = vmatprep.subr.bf16.mxu0 %v6082_v57  ;;  %v6169_v57 = vld [vmem:[%s9094_s2 + $0x348] ss:$16 sps:$4 sm:$0xff]  }
  0x73   :  { %3974 = vmatpush1.bf16.msra.mxu1 %v6083_v60  ;;  %v6172_v60 = vld [vmem:[%s9094_s2 + $0x760] ss:$16 sps:$4 sm:$0xff]  }
  0x74   :  { %3687 = vmatpush1.bf16.msra.mxu0 %v6080_v59  ;;  %3975 = vmatprep.subr.bf16.mxu1 %v6091_v62  ;;  %v6177_v59 = vld [vmem:[%s9094_s2 + $0x36c] ss:$16 sps:$4 sm:$0xff]   ;;  %v6180_v62 = vld [vmem:[%s9094_s2 + $0x784] ss:$16 sps:$4 sm:$0xff]  }
  0x75   :  { %3688 = vmatprep.subr.bf16.mxu0 %v6088_v61  ;;  %v6175_v61 = vld [vmem:[%s9094_s2 + $0x368] ss:$16 sps:$4 sm:$0xff]  }
  0x77   :  { %3976 = vmatpush1.bf16.msra.mxu1 %v6089_v0  ;;  %v6178_v0 = vld [vmem:[%s9094_s2 + $0x780] ss:$16 sps:$4 sm:$0xff]  }
  0x78   :  { %3689 = vmatpush1.bf16.msra.mxu0 %v6086_v63  ;;  %3977 = vmatprep.subr.bf16.mxu1 %v6097_v2  ;;  %v6183_v63 = vld [vmem:[%s9094_s2 + $0x38c] ss:$16 sps:$4 sm:$0xff]   ;;  %v6186_v2 = vld [vmem:[%s9094_s2 + $0x7a4] ss:$16 sps:$4 sm:$0xff]  }
  0x79   :  { %3690 = vmatprep.subr.bf16.mxu0 %v6094_v1  ;;  %v6181_v1 = vld [vmem:[%s9094_s2 + $0x388] ss:$16 sps:$4 sm:$0xff]  }
  0x7b   :  { %3978 = vmatpush1.bf16.msra.mxu1 %v6095_v4  ;;  %v6184_v4 = vld [vmem:[%s9094_s2 + $0x7a0] ss:$16 sps:$4 sm:$0xff]  }
  0x7c   :  { %3691 = vmatpush1.bf16.msra.mxu0 %v6092_v3  ;;  %3979 = vmatprep.subr.bf16.mxu1 %v6103_v8  ;;  %v6189_v3 = vld [vmem:[%s9094_s2 + $0x3ac] ss:$16 sps:$4 sm:$0xff]   ;;  %v6192_v8 = vld [vmem:[%s9094_s2 + $0x7c4] ss:$16 sps:$4 sm:$0xff]  }
  0x7d   :  { %3692 = vmatprep.subr.bf16.mxu0 %v6100_v5  ;;  %v6187_v5 = vld [vmem:[%s9094_s2 + $0x3a8] ss:$16 sps:$4 sm:$0xff]  }
  0x7f   :  { %3980 = vmatpush1.bf16.msra.mxu1 %v6101_v10  ;;  %v6190_v10 = vld [vmem:[%s9094_s2 + $0x7c0] ss:$16 sps:$4 sm:$0xff]  }
  0x80   :  { %3693 = vmatpush1.bf16.msra.mxu0 %v6098_v9  ;;  %3990 = vmatprep.subr.bf16.mxu1 %v6111_v12  ;;  %v6195_v9 = vld [vmem:[%s9094_s2 + $0x3cc] ss:$16 sps:$4 sm:$0xff]   ;;  %v6198_v12 = vld [vmem:[%s9094_s2 + $0x7e4] ss:$16 sps:$4 sm:$0xff]  }
  0x81   :  { %3703 = vmatprep.subr.bf16.mxu0 %v6108_v11  ;;  %v6193_v11 = vld [vmem:[%s9094_s2 + $0x3c8] ss:$16 sps:$4 sm:$0xff]  }
  0x82   :  { %3982 = vmatmul.mubr.bf16.vlgmr.msra.gmra.mrb[4].mxu1 %v7158_v6  ;;  %v6123_v6 = vld [vmem:[%s9094_s2 + $0x24c] ss:$16 sps:$4 sm:$0xff]  }
  0x83   :  { %3695 = vmatmul.mubr.bf16.vlgmr.msra.gmra.mrb[0].mxu0 %v7369_v13  ;;  %3991 = vmatpush1.bf16.msra.mxu1 %v6109_v15  ;;  %v6196_v15 = vld [vmem:[%s9094_s2 + $0x7e0] ss:$16 sps:$4 sm:$0xff]  }
  0x84   :  { %3704 = vmatpush1.bf16.msra.mxu0 %v6106_v14  ;;  %3992 = vmatprep.subr.bf16.mxu1 %v6117_v17  ;;  %v6201_v14 = vld [vmem:[%s9094_s2 + $0x3ec] ss:$16 sps:$4 sm:$0xff]   ;;  %v6206_v17 = vld [vmem:[%s9094_s2 + $0x804] ss:$16 sps:$4 sm:$0xff]  }
  0x85   :  { %3705 = vmatprep.subr.bf16.mxu0 %v6114_v16  ;;  %3735 = vmatprep.mubr.bf16.mxu0 %v7390_v19  ;;  %v6199_v16 = vld [vmem:[%s9094_s2 + $0x3e8] ss:$16 sps:$4 sm:$0xff]  }
  0x86   :  { %4022 = vmatprep.mubr.bf16.mxu1 %v7100_v51  ;;  %v6129_v51 = vld [vmem:[%s9094_s2 + $0x26c] ss:$16 sps:$4 sm:$0xff]  }
  0x87   :  { %3993 = vmatpush1.bf16.msra.mxu1 %v6115_v21  ;;  %v7578_v21 = vcombine.low %v7386_v18, %v7386_v18  ;;  %v6212_v18 = vld [vmem:[%s9094_s2 + $0x824] ss:$16 sps:$4 sm:$0xff]  }
  0x88   :  { %3706 = vmatpush1.bf16.msra.mxu0 %v6112_v20  ;;  %3994 = vmatprep.subr.bf16.mxu1 %v6123_v6  ;;  %v6209_v20 = vld [vmem:[%s9094_s2 + $0x40c] ss:$16 sps:$4 sm:$0xff]   ;;  %v6204_v6 = vld [vmem:[%s9094_s2 + $0x800] ss:$16 sps:$4 sm:$0xff]  }
  0x89   :  { %3707 = vmatprep.subr.bf16.mxu0 %v6120_v22  ;;  %v7583_v22 = vld [vmem:[%s9095_s0 + $0x20] sm:$0xff] }
  0x8b   :  { %3995 = vmatpush1.bf16.msra.mxu1 %v6121_v24  ;;  %v6215_v24 = vld [vmem:[%s9094_s2 + $0x42c] ss:$16 sps:$4 sm:$0xff]  }
  0x8c   :  { %3708 = vmatpush1.bf16.msra.mxu0 %v6118_v23  ;;  %3996 = vmatprep.subr.bf16.mxu1 %v6129_v51  ;;  %v6207_v23 = vld [vmem:[%s9094_s2 + $0x408] ss:$16 sps:$4 sm:$0xff]   ;;  %v6210_v51 = vld [vmem:[%s9094_s2 + $0x820] ss:$16 sps:$4 sm:$0xff]  }
  0x8d   :  { %3709 = vmatprep.subr.bf16.mxu0 %v6126_v25  ;;  %v7599_v25 = vcombine.high %v7583_v22, %v7583_v22 }
  0x8f   :  { %3997 = vmatpush1.bf16.msra.mxu1 %v6127_v27  ;;  %v6218_v27 = vld [vmem:[%s9094_s2 + $0x844] ss:$16 sps:$4 sm:$0xff]  }
  0x90   :  { %3710 = vmatpush1.bf16.msra.mxu0 %v6124_v26  ;;  %3998 = vmatprep.subr.bf16.mxu1 %v6135_v29  ;;  %v6213_v26 = vld [vmem:[%s9094_s2 + $0x428] ss:$16 sps:$4 sm:$0xff]  }
  0x91   :  { %3711 = vmatprep.subr.bf16.mxu0 %v6132_v28  ;;  %v6216_v28 = vld [vmem:[%s9094_s2 + $0x840] ss:$16 sps:$4 sm:$0xff]   ;;  %v6219_v29 = vld [vmem:[%s9094_s2 + $0x448] ss:$16 sps:$4 sm:$0xff]  }
  0x93   :  { %3999 = vmatpush1.bf16.msra.mxu1 %v6133_v31  ;;  %v6222_v31 = vld [vmem:[%s9094_s2 + $0x860] ss:$16 sps:$4 sm:$0xff]  }
  0x94   :  { %3712 = vmatpush1.bf16.msra.mxu0 %v6130_v30  ;;  %4000 = vmatprep.subr.bf16.mxu1 %v6141_v33  ;;  %v6224_v30 = vld [vmem:[%s9094_s2 + $0x864] ss:$16 sps:$4 sm:$0xff]  }
  0x95   :  { %3713 = vmatprep.subr.bf16.mxu0 %v6138_v32  ;;  %v6225_v32 = vld [vmem:[%s9094_s2 + $0x468] ss:$16 sps:$4 sm:$0xff]   ;;  %v6230_v33 = vld [vmem:[%s9094_s2 + $0x884] ss:$16 sps:$4 sm:$0xff]  }
  0x97   :  { %4001 = vmatpush1.bf16.msra.mxu1 %v6139_v36  ;;  %v6228_v36 = vld [vmem:[%s9094_s2 + $0x880] ss:$16 sps:$4 sm:$0xff]  }
  0x98   :  { %3714 = vmatpush1.bf16.msra.mxu0 %v6136_v35  ;;  %4002 = vmatprep.subr.bf16.mxu1 %v6147_v38  ;;  %v6233_v35 = vld [vmem:[%s9094_s2 + $0x48c] ss:$16 sps:$4 sm:$0xff]   ;;  %v6236_v38 = vld [vmem:[%s9094_s2 + $0x8a4] ss:$16 sps:$4 sm:$0xff]  }
  0x99   :  { %3715 = vmatprep.subr.bf16.mxu0 %v6144_v37  ;;  %v6231_v37 = vld [vmem:[%s9094_s2 + $0x488] ss:$16 sps:$4 sm:$0xff]  }
  0x9b   :  { %4003 = vmatpush1.bf16.msra.mxu1 %v6145_v40  ;;  %v6234_v40 = vld [vmem:[%s9094_s2 + $0x8a0] ss:$16 sps:$4 sm:$0xff]  }
  0x9c   :  { %3716 = vmatpush1.bf16.msra.mxu0 %v6142_v39  ;;  %4004 = vmatprep.subr.bf16.mxu1 %v6153_v42  ;;  %v6239_v39 = vld [vmem:[%s9094_s2 + $0x4ac] ss:$16 sps:$4 sm:$0xff]   ;;  %v6242_v42 = vld [vmem:[%s9094_s2 + $0x8c4] ss:$16 sps:$4 sm:$0xff]  }
  0x9d   :  { %3717 = vmatprep.subr.bf16.mxu0 %v6150_v41  ;;  %v6237_v41 = vld [vmem:[%s9094_s2 + $0x4a8] ss:$16 sps:$4 sm:$0xff]  }
  0x9f   :  { %4005 = vmatpush1.bf16.msra.mxu1 %v6151_v44  ;;  %v6240_v44 = vld [vmem:[%s9094_s2 + $0x8c0] ss:$16 sps:$4 sm:$0xff]  }
  0xa0   :  { %3718 = vmatpush1.bf16.msra.mxu0 %v6148_v43  ;;  %4006 = vmatprep.subr.bf16.mxu1 %v6159_v46  ;;  %v6245_v43 = vld [vmem:[%s9094_s2 + $0x4cc] ss:$16 sps:$4 sm:$0xff]   ;;  %v6248_v46 = vld [vmem:[%s9094_s2 + $0x8e4] ss:$16 sps:$4 sm:$0xff]  }
  0xa1   :  { %3719 = vmatprep.subr.bf16.mxu0 %v6156_v45  ;;  %v6243_v45 = vld [vmem:[%s9094_s2 + $0x4c8] ss:$16 sps:$4 sm:$0xff]  }
  0xa3   :  { %4007 = vmatpush1.bf16.msra.mxu1 %v6157_v48  ;;  %v6246_v48 = vld [vmem:[%s9094_s2 + $0x8e0] ss:$16 sps:$4 sm:$0xff]  }
  0xa4   :  { %3720 = vmatpush1.bf16.msra.mxu0 %v6154_v47  ;;  %4008 = vmatprep.subr.bf16.mxu1 %v6165_v50  ;;  %v6251_v47 = vld [vmem:[%s9094_s2 + $0x4ec] ss:$16 sps:$4 sm:$0xff]   ;;  %v6254_v50 = vld [vmem:[%s9094_s2 + $0x904] ss:$16 sps:$4 sm:$0xff]  }
  0xa5   :  { %3721 = vmatprep.subr.bf16.mxu0 %v6162_v49  ;;  %v6249_v49 = vld [vmem:[%s9094_s2 + $0x4e8] ss:$16 sps:$4 sm:$0xff]  }
  0xa7   :  { %4009 = vmatpush1.bf16.msra.mxu1 %v6163_v53  ;;  %v6252_v53 = vld [vmem:[%s9094_s2 + $0x900] ss:$16 sps:$4 sm:$0xff]  }
  0xa8   :  { %3722 = vmatpush1.bf16.msra.mxu0 %v6160_v52  ;;  %4010 = vmatprep.subr.bf16.mxu1 %v6171_v55  ;;  %v6257_v52 = vld [vmem:[%s9094_s2 + $0x50c] ss:$16 sps:$4 sm:$0xff]   ;;  %v6260_v55 = vld [vmem:[%s9094_s2 + $0x924] ss:$16 sps:$4 sm:$0xff]  }
  0xa9   :  { %3723 = vmatprep.subr.bf16.mxu0 %v6168_v54  ;;  %v6255_v54 = vld [vmem:[%s9094_s2 + $0x508] ss:$16 sps:$4 sm:$0xff]  }
  0xab   :  { %4011 = vmatpush1.bf16.msra.mxu1 %v6169_v57  ;;  %v6258_v57 = vld [vmem:[%s9094_s2 + $0x920] ss:$16 sps:$4 sm:$0xff]  }
  0xac   :  { %3724 = vmatpush1.bf16.msra.mxu0 %v6166_v56  ;;  %4012 = vmatprep.subr.bf16.mxu1 %v6177_v59  ;;  %v6263_v56 = vld [vmem:[%s9094_s2 + $0x52c] ss:$16 sps:$4 sm:$0xff]   ;;  %v6266_v59 = vld [vmem:[%s9094_s2 + $0x944] ss:$16 sps:$4 sm:$0xff]  }
  0xad   :  { %3725 = vmatprep.subr.bf16.mxu0 %v6174_v58  ;;  %v6261_v58 = vld [vmem:[%s9094_s2 + $0x528] ss:$16 sps:$4 sm:$0xff]  }
  0xaf   :  { %4013 = vmatpush1.bf16.msra.mxu1 %v6175_v61  ;;  %v6264_v61 = vld [vmem:[%s9094_s2 + $0x940] ss:$16 sps:$4 sm:$0xff]  }
  0xb0   :  { %3726 = vmatpush1.bf16.msra.mxu0 %v6172_v60  ;;  %4014 = vmatprep.subr.bf16.mxu1 %v6183_v63  ;;  %v6269_v60 = vld [vmem:[%s9094_s2 + $0x54c] ss:$16 sps:$4 sm:$0xff]   ;;  %v6272_v63 = vld [vmem:[%s9094_s2 + $0x964] ss:$16 sps:$4 sm:$0xff]  }
  0xb1   :  { %3727 = vmatprep.subr.bf16.mxu0 %v6180_v62  ;;  %v6267_v62 = vld [vmem:[%s9094_s2 + $0x548] ss:$16 sps:$4 sm:$0xff]  }
  0xb3   :  { %4015 = vmatpush1.bf16.msra.mxu1 %v6181_v1  ;;  %v6270_v1 = vld [vmem:[%s9094_s2 + $0x960] ss:$16 sps:$4 sm:$0xff]  }
  0xb4   :  { %3728 = vmatpush1.bf16.msra.mxu0 %v6178_v0  ;;  %4016 = vmatprep.subr.bf16.mxu1 %v6189_v3  ;;  %v6275_v0 = vld [vmem:[%s9094_s2 + $0x56c] ss:$16 sps:$4 sm:$0xff]   ;;  %v6278_v3 = vld [vmem:[%s9094_s2 + $0x984] ss:$16 sps:$4 sm:$0xff]  }
  0xb5   :  { %3729 = vmatprep.subr.bf16.mxu0 %v6186_v2  ;;  %v6273_v2 = vld [vmem:[%s9094_s2 + $0x568] ss:$16 sps:$4 sm:$0xff]  }
  0xb7   :  { %4017 = vmatpush1.bf16.msra.mxu1 %v6187_v5  ;;  %v6276_v5 = vld [vmem:[%s9094_s2 + $0x980] ss:$16 sps:$4 sm:$0xff]  }
  0xb8   :  { %3730 = vmatpush1.bf16.msra.mxu0 %v6184_v4  ;;  %4018 = vmatprep.subr.bf16.mxu1 %v6195_v9  ;;  %v6281_v4 = vld [vmem:[%s9094_s2 + $0x58c] ss:$16 sps:$4 sm:$0xff]   ;;  %v6284_v9 = vld [vmem:[%s9094_s2 + $0x9a4] ss:$16 sps:$4 sm:$0xff]  }
  0xb9   :  { %3731 = vmatprep.subr.bf16.mxu0 %v6192_v8  ;;  %v6279_v8 = vld [vmem:[%s9094_s2 + $0x588] ss:$16 sps:$4 sm:$0xff]  }
  0xbb   :  { %4019 = vmatpush1.bf16.msra.mxu1 %v6193_v11  ;;  %v6282_v11 = vld [vmem:[%s9094_s2 + $0x9a0] ss:$16 sps:$4 sm:$0xff]  }
  0xbc   :  { %3732 = vmatpush1.bf16.msra.mxu0 %v6190_v10  ;;  %4020 = vmatprep.subr.bf16.mxu1 %v6201_v14  ;;  %v6287_v10 = vld [vmem:[%s9094_s2 + $0x5ac] ss:$16 sps:$4 sm:$0xff]   ;;  %v6290_v14 = vld [vmem:[%s9094_s2 + $0x9c4] ss:$16 sps:$4 sm:$0xff]  }
  0xbd   :  { %3733 = vmatprep.subr.bf16.mxu0 %v6198_v12  ;;  %v6285_v12 = vld [vmem:[%s9094_s2 + $0x5a8] ss:$16 sps:$4 sm:$0xff]  }
  0xbf   :  { %4021 = vmatpush1.bf16.msra.mxu1 %v6199_v16  ;;  %v6288_v16 = vld [vmem:[%s9094_s2 + $0x9c0] ss:$16 sps:$4 sm:$0xff]  }
  0xc0   :  { %3734 = vmatpush1.bf16.msra.mxu0 %v6196_v15  ;;  %4031 = vmatprep.subr.bf16.mxu1 %v6209_v20  ;;  %v6293_v15 = vld [vmem:[%s9094_s2 + $0x5cc] ss:$16 sps:$4 sm:$0xff]   ;;  %v6296_v20 = vld [vmem:[%s9094_s2 + $0x9e4] ss:$16 sps:$4 sm:$0xff]  }
  0xc1   :  { %3744 = vmatprep.subr.bf16.mxu0 %v6206_v17  ;;  %v6291_v17 = vld [vmem:[%s9094_s2 + $0x5c8] ss:$16 sps:$4 sm:$0xff]  }
  0xc2   :  { %4023 = vmatmul.mubr.bf16.vlgmr.msra.gmra.mrb[4].mxu1 %v7160_v7  ;;  %v6221_v7 = vld [vmem:[%s9094_s2 + $0x44c] ss:$16 sps:$4 sm:$0xff]  }
  0xc3   :  { %3736 = vmatmul.mubr.bf16.vlgmr.msra.gmra.mrb[0].mxu0 %v7578_v21  ;;  %4032 = vmatpush1.bf16.msra.mxu1 %v6207_v23  ;;  %v6294_v23 = vld [vmem:[%s9094_s2 + $0x9e0] ss:$16 sps:$4 sm:$0xff]  }
  0xc4   :  { %3745 = vmatpush1.bf16.msra.mxu0 %v6204_v6  ;;  %4033 = vmatprep.subr.bf16.mxu1 %v6215_v24  ;;  %v6299_v6 = vld [vmem:[%s9094_s2 + $0x5ec] ss:$16 sps:$4 sm:$0xff]   ;;  %v6304_v24 = vld [vmem:[%s9094_s2 + $0xa04] ss:$16 sps:$4 sm:$0xff]  }
  0xc5   :  { %3746 = vmatprep.subr.bf16.mxu0 %v6212_v18  ;;  %3776 = vmatprep.mubr.bf16.mxu0 %v7599_v25  ;;  %v6297_v18 = vld [vmem:[%s9094_s2 + $0x5e8] ss:$16 sps:$4 sm:$0xff]  }
  0xc6   :  { %4063 = vmatprep.mubr.bf16.mxu1 %v7247_v34  ;;  %v6227_v34 = vld [vmem:[%s9094_s2 + $0x46c] ss:$16 sps:$4 sm:$0xff]  }
  0xc7   :  { %4034 = vmatpush1.bf16.msra.mxu1 %v6213_v26  ;;  %v7787_v26 = vcombine.low %v7583_v22, %v7583_v22  ;;  %v6310_v22 = vld [vmem:[%s9094_s2 + $0xa24] ss:$16 sps:$4 sm:$0xff]  }
  0xc8   :  { %3747 = vmatpush1.bf16.msra.mxu0 %v6210_v51  ;;  %4035 = vmatprep.subr.bf16.mxu1 %v6221_v7  ;;  %v6307_v51 = vld [vmem:[%s9094_s2 + $0x60c] ss:$16 sps:$4 sm:$0xff]  }
  0xc9   :  { %3748 = vmatprep.subr.bf16.mxu0 %v6218_v27  ;;  %v6302_v27 = vld [vmem:[%s9094_s2 + $0xa00] ss:$16 sps:$4 sm:$0xff]   ;;  %v7795_v7 = vld [vmem:[%s9095_s0 + $0x28] sm:$0xff] }
  0xcb   :  { %4036 = vmatpush1.bf16.msra.mxu1 %v6219_v29  ;;  %v6313_v29 = vld [vmem:[%s9094_s2 + $0x62c] ss:$16 sps:$4 sm:$0xff]  }
  0xcc   :  { %3749 = vmatpush1.bf16.msra.mxu0 %v6216_v28  ;;  %4037 = vmatprep.subr.bf16.mxu1 %v6227_v34  ;;  %v6305_v28 = vld [vmem:[%s9094_s2 + $0x608] ss:$16 sps:$4 sm:$0xff]   ;;  %v6308_v34 = vld [vmem:[%s9094_s2 + $0xa20] ss:$16 sps:$4 sm:$0xff]  }
  0xcd   :  { %3750 = vmatprep.subr.bf16.mxu0 %v6224_v30  ;;  %v7808_v30 = vcombine.high %v7795_v7, %v7795_v7 }
  0xcf   :  { %4038 = vmatpush1.bf16.msra.mxu1 %v6225_v32  ;;  %v6316_v32 = vld [vmem:[%s9094_s2 + $0xa44] ss:$16 sps:$4 sm:$0xff]  }
  0xd0   :  { %3751 = vmatpush1.bf16.msra.mxu0 %v6222_v31  ;;  %4039 = vmatprep.subr.bf16.mxu1 %v6233_v35  ;;  %v6311_v31 = vld [vmem:[%s9094_s2 + $0x628] ss:$16 sps:$4 sm:$0xff]  }
  0xd1   :  { %3752 = vmatprep.subr.bf16.mxu0 %v6230_v33  ;;  %v6314_v33 = vld [vmem:[%s9094_s2 + $0xa40] ss:$16 sps:$4 sm:$0xff]   ;;  %v6317_v35 = vld [vmem:[%s9094_s2 + $0x648] ss:$16 sps:$4 sm:$0xff]  }
  0xd3   :  { %4040 = vmatpush1.bf16.msra.mxu1 %v6231_v37  ;;  %v6320_v37 = vld [vmem:[%s9094_s2 + $0xa60] ss:$16 sps:$4 sm:$0xff]  }
  0xd4   :  { %3753 = vmatpush1.bf16.msra.mxu0 %v6228_v36  ;;  %4041 = vmatprep.subr.bf16.mxu1 %v6239_v39  ;;  %v6322_v36 = vld [vmem:[%s9094_s2 + $0xa64] ss:$16 sps:$4 sm:$0xff]  }
  0xd5   :  { %3754 = vmatprep.subr.bf16.mxu0 %v6236_v38  ;;  %v6323_v38 = vld [vmem:[%s9094_s2 + $0x668] ss:$16 sps:$4 sm:$0xff]   ;;  %v6328_v39 = vld [vmem:[%s9094_s2 + $0xa84] ss:$16 sps:$4 sm:$0xff]  }
  0xd7   :  { %4042 = vmatpush1.bf16.msra.mxu1 %v6237_v41  ;;  %v6326_v41 = vld [vmem:[%s9094_s2 + $0xa80] ss:$16 sps:$4 sm:$0xff]  }
  0xd8   :  { %3755 = vmatpush1.bf16.msra.mxu0 %v6234_v40  ;;  %4043 = vmatprep.subr.bf16.mxu1 %v6245_v43  ;;  %v6331_v40 = vld [vmem:[%s9094_s2 + $0x68c] ss:$16 sps:$4 sm:$0xff]   ;;  %v6334_v43 = vld [vmem:[%s9094_s2 + $0xaa4] ss:$16 sps:$4 sm:$0xff]  }
  0xd9   :  { %3756 = vmatprep.subr.bf16.mxu0 %v6242_v42  ;;  %v6329_v42 = vld [vmem:[%s9094_s2 + $0x688] ss:$16 sps:$4 sm:$0xff]  }
  0xdb   :  { %4044 = vmatpush1.bf16.msra.mxu1 %v6243_v45  ;;  %v6332_v45 = vld [vmem:[%s9094_s2 + $0xaa0] ss:$16 sps:$4 sm:$0xff]  }
  0xdc   :  { %3757 = vmatpush1.bf16.msra.mxu0 %v6240_v44  ;;  %4045 = vmatprep.subr.bf16.mxu1 %v6251_v47  ;;  %v6337_v44 = vld [vmem:[%s9094_s2 + $0x6ac] ss:$16 sps:$4 sm:$0xff]   ;;  %v6340_v47 = vld [vmem:[%s9094_s2 + $0xac4] ss:$16 sps:$4 sm:$0xff]  }
  0xdd   :  { %3758 = vmatprep.subr.bf16.mxu0 %v6248_v46  ;;  %v6335_v46 = vld [vmem:[%s9094_s2 + $0x6a8] ss:$16 sps:$4 sm:$0xff]  }
  0xdf   :  { %4046 = vmatpush1.bf16.msra.mxu1 %v6249_v49 }
  0xe0   :  { %3759 = vmatpush1.bf16.msra.mxu0 %v6246_v48  ;;  %4047 = vmatprep.subr.bf16.mxu1 %v6257_v52  ;;  %v6343_v48 = vld [vmem:[%s9094_s2 + $0x6cc] ss:$16 sps:$4 sm:$0xff]  }
  0xe1   :  { %3760 = vmatprep.subr.bf16.mxu0 %v6254_v50 }
  0xe3   :  { %4048 = vmatpush1.bf16.msra.mxu1 %v6255_v54  ;;  %v6341_v54 = vld [vmem:[%s9094_s2 + $0x6c8] ss:$16 sps:$4 sm:$0xff]  }
  0xe4   :  { %3761 = vmatpush1.bf16.msra.mxu0 %v6252_v53  ;;  %4049 = vmatprep.subr.bf16.mxu1 %v6263_v56  ;;  %v6338_v53 = vld [vmem:[%s9094_s2 + $0xac0] ss:$16 sps:$4 sm:$0xff]   ;;  %v6346_v56 = vld [vmem:[%s9094_s2 + $0xae4] ss:$16 sps:$4 sm:$0xff]  }
  0xe5   :  { %3762 = vmatprep.subr.bf16.mxu0 %v6260_v55 }
  0xe7   :  { %4050 = vmatpush1.bf16.msra.mxu1 %v6261_v58  ;;  %v6344_v58 = vld [vmem:[%s9094_s2 + $0xae0] ss:$16 sps:$4 sm:$0xff]  }
  0xe8   :  { %3763 = vmatpush1.bf16.msra.mxu0 %v6258_v57  ;;  %4051 = vmatprep.subr.bf16.mxu1 %v6269_v60  ;;  %v6349_v57 = vld [vmem:[%s9094_s2 + $0x6ec] ss:$16 sps:$4 sm:$0xff]   ;;  %v6352_v60 = vld [vmem:[%s9094_s2 + $0xb04] ss:$16 sps:$4 sm:$0xff]  }
  0xe9   :  { %3764 = vmatprep.subr.bf16.mxu0 %v6266_v59  ;;  %v6347_v59 = vld [vmem:[%s9094_s2 + $0x6e8] ss:$16 sps:$4 sm:$0xff]  }
  0xeb   :  { %4052 = vmatpush1.bf16.msra.mxu1 %v6267_v62  ;;  %v6350_v62 = vld [vmem:[%s9094_s2 + $0xb00] ss:$16 sps:$4 sm:$0xff]  }
  0xec   :  { %3765 = vmatpush1.bf16.msra.mxu0 %v6264_v61  ;;  %4053 = vmatprep.subr.bf16.mxu1 %v6275_v0  ;;  %v6355_v61 = vld [vmem:[%s9094_s2 + $0x70c] ss:$16 sps:$4 sm:$0xff]   ;;  %v6358_v0 = vld [vmem:[%s9094_s2 + $0xb24] ss:$16 sps:$4 sm:$0xff]  }
  0xed   :  { %3766 = vmatprep.subr.bf16.mxu0 %v6272_v63  ;;  %v6353_v63 = vld [vmem:[%s9094_s2 + $0x708] ss:$16 sps:$4 sm:$0xff]  }
  0xef   :  { %4054 = vmatpush1.bf16.msra.mxu1 %v6273_v2  ;;  %v6356_v2 = vld [vmem:[%s9094_s2 + $0xb20] ss:$16 sps:$4 sm:$0xff]  }
  0xf0   :  { %3767 = vmatpush1.bf16.msra.mxu0 %v6270_v1  ;;  %4055 = vmatprep.subr.bf16.mxu1 %v6281_v4  ;;  %v6361_v1 = vld [vmem:[%s9094_s2 + $0x72c] ss:$16 sps:$4 sm:$0xff]   ;;  %v6364_v4 = vld [vmem:[%s9094_s2 + $0xb44] ss:$16 sps:$4 sm:$0xff]  }
  0xf1   :  { %3768 = vmatprep.subr.bf16.mxu0 %v6278_v3  ;;  %v6359_v3 = vld [vmem:[%s9094_s2 + $0x728] ss:$16 sps:$4 sm:$0xff]  }
  0xf3   :  { %4056 = vmatpush1.bf16.msra.mxu1 %v6279_v8  ;;  %v6362_v8 = vld [vmem:[%s9094_s2 + $0xb40] ss:$16 sps:$4 sm:$0xff]  }
  0xf4   :  { %3769 = vmatpush1.bf16.msra.mxu0 %v6276_v5  ;;  %4057 = vmatprep.subr.bf16.mxu1 %v6287_v10  ;;  %v6367_v5 = vld [vmem:[%s9094_s2 + $0x74c] ss:$16 sps:$4 sm:$0xff]   ;;  %v6370_v10 = vld [vmem:[%s9094_s2 + $0xb64] ss:$16 sps:$4 sm:$0xff]  }
  0xf5   :  { %3770 = vmatprep.subr.bf16.mxu0 %v6284_v9  ;;  %v6365_v9 = vld [vmem:[%s9094_s2 + $0x748] ss:$16 sps:$4 sm:$0xff]  }
  0xf7   :  { %4058 = vmatpush1.bf16.msra.mxu1 %v6285_v12  ;;  %v6368_v12 = vld [vmem:[%s9094_s2 + $0xb60] ss:$16 sps:$4 sm:$0xff]  }
  0xf8   :  { %3771 = vmatpush1.bf16.msra.mxu0 %v6282_v11  ;;  %4059 = vmatprep.subr.bf16.mxu1 %v6293_v15  ;;  %v6373_v11 = vld [vmem:[%s9094_s2 + $0x76c] ss:$16 sps:$4 sm:$0xff]   ;;  %v6376_v15 = vld [vmem:[%s9094_s2 + $0xb84] ss:$16 sps:$4 sm:$0xff]  }
  0xf9   :  { %3772 = vmatprep.subr.bf16.mxu0 %v6290_v14  ;;  %v6371_v14 = vld [vmem:[%s9094_s2 + $0x768] ss:$16 sps:$4 sm:$0xff]  }
  0xfb   :  { %4060 = vmatpush1.bf16.msra.mxu1 %v6291_v17  ;;  %v6374_v17 = vld [vmem:[%s9094_s2 + $0xb80] ss:$16 sps:$4 sm:$0xff]  }
  0xfc   :  { %3773 = vmatpush1.bf16.msra.mxu0 %v6288_v16  ;;  %4061 = vmatprep.subr.bf16.mxu1 %v6299_v6  ;;  %v6379_v16 = vld [vmem:[%s9094_s2 + $0x78c] ss:$16 sps:$4 sm:$0xff]   ;;  %v6382_v6 = vld [vmem:[%s9094_s2 + $0xba4] ss:$16 sps:$4 sm:$0xff]  }
  0xfd   :  { %3774 = vmatprep.subr.bf16.mxu0 %v6296_v20  ;;  %v6377_v20 = vld [vmem:[%s9094_s2 + $0x788] ss:$16 sps:$4 sm:$0xff]  }
  0xff   :  { %4062 = vmatpush1.bf16.msra.mxu1 %v6297_v18  ;;  %v6380_v18 = vld [vmem:[%s9094_s2 + $0xba0] ss:$16 sps:$4 sm:$0xff]  }
 0x100   :  { %3775 = vmatpush1.bf16.msra.mxu0 %v6294_v23  ;;  %4072 = vmatprep.subr.bf16.mxu1 %v6307_v51  ;;  %v6385_v23 = vld [vmem:[%s9094_s2 + $0x7ac] ss:$16 sps:$4 sm:$0xff]   ;;  %v6388_v51 = vld [vmem:[%s9094_s2 + $0xbc4] ss:$16 sps:$4 sm:$0xff]  }
 0x101   :  { %3785 = vmatprep.subr.bf16.mxu0 %v6304_v24  ;;  %v6383_v24 = vld [vmem:[%s9094_s2 + $0x7a8] ss:$16 sps:$4 sm:$0xff]  }
 0x102   :  { %4064 = vmatmul.mubr.bf16.vlgmr.msra.gmra.mrb[4].mxu1 %v7369_v13  ;;  %v6319_v13 = vld [vmem:[%s9094_s2 + $0x64c] ss:$16 sps:$4 sm:$0xff]  }
 0x103   :  { %3777 = vmatmul.mubr.bf16.vlgmr.msra.gmra.mrb[0].mxu0 %v7787_v26  ;;  %4073 = vmatpush1.bf16.msra.mxu1 %v6305_v28  ;;  %v6386_v28 = vld [vmem:[%s9094_s2 + $0xbc0] ss:$16 sps:$4 sm:$0xff]  }
 0x104   :  { %3786 = vmatpush1.bf16.msra.mxu0 %v6302_v27  ;;  %4074 = vmatprep.subr.bf16.mxu1 %v6313_v29  ;;  %v6391_v27 = vld [vmem:[%s9094_s2 + $0x7cc] ss:$16 sps:$4 sm:$0xff]   ;;  %v6394_v29 = vld [vmem:[%s9094_s2 + $0xbe4] ss:$16 sps:$4 sm:$0xff]  }
 0x105   :  { %3787 = vmatprep.subr.bf16.mxu0 %v6310_v22  ;;  %3817 = vmatprep.mubr.bf16.mxu0 %v7808_v30  ;;  %v6389_v22 = vld [vmem:[%s9094_s2 + $0x7c8] ss:$16 sps:$4 sm:$0xff]  }
 0x106   :  { %4104 = vmatprep.mubr.bf16.mxu1 %v7390_v19  ;;  %v6325_v19 = vld [vmem:[%s9094_s2 + $0x66c] ss:$16 sps:$4 sm:$0xff]  }
 0x107   :  { %4075 = vmatpush1.bf16.msra.mxu1 %v6311_v31  ;;  %v6392_v31 = vld [vmem:[%s9094_s2 + $0xbe0] ss:$16 sps:$4 sm:$0xff]  }
 0x108   :  { %3788 = vmatpush1.bf16.msra.mxu0 %v6308_v34  ;;  %4076 = vmatprep.subr.bf16.mxu1 %v6319_v13  ;;  %v6397_v34 = vld [vmem:[%s9094_s2 + $0x7ec] ss:$16 sps:$4 sm:$0xff]   ;;  %v6402_v13 = vld [vmem:[%s9094_s2 + $0xc04] ss:$16 sps:$4 sm:$0xff]  }
 0x109   :  { %3789 = vmatprep.subr.bf16.mxu0 %v6316_v32  ;;  %v6395_v32 = vld [vmem:[%s9094_s2 + $0x7e8] ss:$16 sps:$4 sm:$0xff]  }
 0x10b   :  { %4077 = vmatpush1.bf16.msra.mxu1 %v6317_v35  ;;  %v8001_v35 = vld [vmem:[%s9095_s0 + $0x30] sm:$0xff] }
 0x10c   :  { %3790 = vmatpush1.bf16.msra.mxu0 %v6314_v33  ;;  %4078 = vmatprep.subr.bf16.mxu1 %v6325_v19  ;;  %v6405_v33 = vld [vmem:[%s9094_s2 + $0x80c] ss:$16 sps:$4 sm:$0xff]   ;;  %v6400_v19 = vld [vmem:[%s9094_s2 + $0xc00] ss:$16 sps:$4 sm:$0xff]  }
 0x10d   :  { %3791 = vmatprep.subr.bf16.mxu0 %v6322_v36  ;;  %v8005_v36 = vcombine.low %v7795_v7, %v7795_v7  ;;  %v6411_v7 = vld [vmem:[%s9094_s2 + $0x82c] ss:$16 sps:$4 sm:$0xff]  }
 0x10f   :  { %4079 = vmatpush1.bf16.msra.mxu1 %v6323_v38  ;;  %v6408_v38 = vld [vmem:[%s9094_s2 + $0xc24] ss:$16 sps:$4 sm:$0xff]  }
 0x110   :  { %3792 = vmatpush1.bf16.msra.mxu0 %v6320_v37  ;;  %4080 = vmatprep.subr.bf16.mxu1 %v6331_v40  ;;  %v6403_v37 = vld [vmem:[%s9094_s2 + $0x808] ss:$16 sps:$4 sm:$0xff]   ;;  %v6406_v40 = vld [vmem:[%s9094_s2 + $0xc20] ss:$16 sps:$4 sm:$0xff]  }
 0x111   :  { %3793 = vmatprep.subr.bf16.mxu0 %v6328_v39  ;;  %v8021_v39 = vcombine.high %v8001_v35, %v8001_v35 }
 0x113   :  { %4081 = vmatpush1.bf16.msra.mxu1 %v6329_v42  ;;  %v6414_v42 = vld [vmem:[%s9094_s2 + $0xc44] ss:$16 sps:$4 sm:$0xff]  }
 0x114   :  { %3794 = vmatpush1.bf16.msra.mxu0 %v6326_v41  ;;  %4082 = vmatprep.subr.bf16.mxu1 %v6337_v44  ;;  %v6409_v41 = vld [vmem:[%s9094_s2 + $0x828] ss:$16 sps:$4 sm:$0xff]  }
 0x115   :  { %3795 = vmatprep.subr.bf16.mxu0 %v6334_v43  ;;  %v7874_v49 = vpop.f32.mrb[0].mxu1  ;;  %v6412_v43 = vld [vmem:[%s9094_s2 + $0xc40] ss:$16 sps:$4 sm:$0xff]   ;;  %v6415_v44 = vld [vmem:[%s9094_s2 + $0x848] ss:$16 sps:$4 sm:$0xff]  }
 0x116   :  { %v7876_v50 = vpop.f32.mrb[1].mxu1 }
 0x117   :  { %v3618_v52 = vpop.f32.mrb[2].mxu1  ;;  %4083 = vmatpush1.bf16.msra.mxu1 %v6335_v46  ;;  %v6418_v46 = vld [vmem:[%s9094_s2 + $0xc60] ss:$16 sps:$4 sm:$0xff]  }
 0x118   :  { %3796 = vmatpush1.bf16.msra.mxu0 %v6332_v45  ;;  %v3619_v55 = vpop.f32.mrb[3].mxu1  ;;  %4084 = vmatprep.subr.bf16.mxu1 %v6343_v48  ;;  %v6420_v45 = vld [vmem:[%s9094_s2 + $0xc64] ss:$16 sps:$4 sm:$0xff]   ;;  %v6429_v52 = vld [vmem:[%s9094_s2 + $0x88c] ss:$16 sps:$4 sm:$0xff]  }
 0x119   :  { %3797 = vmatprep.subr.bf16.mxu0 %v6340_v47  ;;  %v6421_v47 = vld [vmem:[%s9094_s2 + $0x868] ss:$16 sps:$4 sm:$0xff]   ;;  %v6426_v48 = vld [vmem:[%s9094_s2 + $0xc84] ss:$16 sps:$4 sm:$0xff]  }
 0x11a   :  { %v6432_v55 = vld [vmem:[%s9094_s2 + $0xca4] ss:$16 sps:$4 sm:$0xff]  }
 0x11b   :  { %4085 = vmatpush1.bf16.msra.mxu1 %v6341_v54  ;;  %v6427_v54 = vld [vmem:[%s9094_s2 + $0x888] ss:$16 sps:$4 sm:$0xff]  }
 0x11c   :  { %3798 = vmatpush1.bf16.msra.mxu0 %v6338_v53  ;;  %4086 = vmatprep.subr.bf16.mxu1 %v6349_v57  ;;  %v6424_v53 = vld [vmem:[%s9094_s2 + $0xc80] ss:$16 sps:$4 sm:$0xff]  }
 0x11d   :  { %3799 = vmatprep.subr.bf16.mxu0 %v6346_v56  ;;  %v6435_v56 = vld [vmem:[%s9094_s2 + $0x8ac] ss:$16 sps:$4 sm:$0xff]   ;;  %v6430_v57 = vld [vmem:[%s9094_s2 + $0xca0] ss:$16 sps:$4 sm:$0xff]  }
 0x11f   :  { %4087 = vmatpush1.bf16.msra.mxu1 %v6347_v59  ;;  %v6438_v59 = vld [vmem:[%s9094_s2 + $0xcc4] ss:$16 sps:$4 sm:$0xff]  }
 0x120   :  { %3800 = vmatpush1.bf16.msra.mxu0 %v6344_v58  ;;  %4088 = vmatprep.subr.bf16.mxu1 %v6355_v61  ;;  %v6433_v58 = vld [vmem:[%s9094_s2 + $0x8a8] ss:$16 sps:$4 sm:$0xff]   ;;  %v6436_v61 = vld [vmem:[%s9094_s2 + $0xcc0] ss:$16 sps:$4 sm:$0xff]  }
 0x121   :  { %3801 = vmatprep.subr.bf16.mxu0 %v6352_v60  ;;  %v6441_v60 = vld [vmem:[%s9094_s2 + $0x8cc] ss:$16 sps:$4 sm:$0xff]  }
 0x123   :  { %4089 = vmatpush1.bf16.msra.mxu1 %v6353_v63  ;;  %v6444_v63 = vld [vmem:[%s9094_s2 + $0xce4] ss:$16 sps:$4 sm:$0xff]  }
 0x124   :  { %3802 = vmatpush1.bf16.msra.mxu0 %v6350_v62  ;;  %4090 = vmatprep.subr.bf16.mxu1 %v6361_v1  ;;  %v6439_v62 = vld [vmem:[%s9094_s2 + $0x8c8] ss:$16 sps:$4 sm:$0xff]   ;;  %v6442_v1 = vld [vmem:[%s9094_s2 + $0xce0] ss:$16 sps:$4 sm:$0xff]  }
 0x125   :  { %3803 = vmatprep.subr.bf16.mxu0 %v6358_v0  ;;  %v6447_v0 = vld [vmem:[%s9094_s2 + $0x8ec] ss:$16 sps:$4 sm:$0xff]  }
 0x127   :  { %4091 = vmatpush1.bf16.msra.mxu1 %v6359_v3  ;;  %v6450_v3 = vld [vmem:[%s9094_s2 + $0xd04] ss:$16 sps:$4 sm:$0xff]  }
 0x128   :  { %3804 = vmatpush1.bf16.msra.mxu0 %v6356_v2  ;;  %4092 = vmatprep.subr.bf16.mxu1 %v6367_v5  ;;  %v6445_v2 = vld [vmem:[%s9094_s2 + $0x8e8] ss:$16 sps:$4 sm:$0xff]   ;;  %v6448_v5 = vld [vmem:[%s9094_s2 + $0xd00] ss:$16 sps:$4 sm:$0xff]  }
 0x129   :  { %3805 = vmatprep.subr.bf16.mxu0 %v6364_v4  ;;  %v6453_v4 = vld [vmem:[%s9094_s2 + $0x90c] ss:$16 sps:$4 sm:$0xff]  }
 0x12b   :  { %4093 = vmatpush1.bf16.msra.mxu1 %v6365_v9  ;;  %v6456_v9 = vld [vmem:[%s9094_s2 + $0xd24] ss:$16 sps:$4 sm:$0xff]  }
 0x12c   :  { %3806 = vmatpush1.bf16.msra.mxu0 %v6362_v8  ;;  %4094 = vmatprep.subr.bf16.mxu1 %v6373_v11  ;;  %v6451_v8 = vld [vmem:[%s9094_s2 + $0x908] ss:$16 sps:$4 sm:$0xff]   ;;  %v6454_v11 = vld [vmem:[%s9094_s2 + $0xd20] ss:$16 sps:$4 sm:$0xff]  }
 0x12d   :  { %3807 = vmatprep.subr.bf16.mxu0 %v6370_v10  ;;  %v6459_v10 = vld [vmem:[%s9094_s2 + $0x92c] ss:$16 sps:$4 sm:$0xff]  }
 0x12f   :  { %4095 = vmatpush1.bf16.msra.mxu1 %v6371_v14  ;;  %v6462_v14 = vld [vmem:[%s9094_s2 + $0xd44] ss:$16 sps:$4 sm:$0xff]  }
 0x130   :  { %3808 = vmatpush1.bf16.msra.mxu0 %v6368_v12  ;;  %4096 = vmatprep.subr.bf16.mxu1 %v6379_v16  ;;  %v6457_v12 = vld [vmem:[%s9094_s2 + $0x928] ss:$16 sps:$4 sm:$0xff]   ;;  %v6460_v16 = vld [vmem:[%s9094_s2 + $0xd40] ss:$16 sps:$4 sm:$0xff]  }
 0x131   :  { %3809 = vmatprep.subr.bf16.mxu0 %v6376_v15  ;;  %v6465_v15 = vld [vmem:[%s9094_s2 + $0x94c] ss:$16 sps:$4 sm:$0xff]  }
 0x133   :  { %4097 = vmatpush1.bf16.msra.mxu1 %v6377_v20  ;;  %v6468_v20 = vld [vmem:[%s9094_s2 + $0xd64] ss:$16 sps:$4 sm:$0xff]  }
 0x134   :  { %3810 = vmatpush1.bf16.msra.mxu0 %v6374_v17  ;;  %4098 = vmatprep.subr.bf16.mxu1 %v6385_v23  ;;  %v6463_v17 = vld [vmem:[%s9094_s2 + $0x948] ss:$16 sps:$4 sm:$0xff]   ;;  %v6466_v23 = vld [vmem:[%s9094_s2 + $0xd60] ss:$16 sps:$4 sm:$0xff]  }
 0x135   :  { %3811 = vmatprep.subr.bf16.mxu0 %v6382_v6  ;;  %v6471_v6 = vld [vmem:[%s9094_s2 + $0x96c] ss:$16 sps:$4 sm:$0xff]  }
 0x137   :  { %4099 = vmatpush1.bf16.msra.mxu1 %v6383_v24  ;;  %v6474_v24 = vld [vmem:[%s9094_s2 + $0xd84] ss:$16 sps:$4 sm:$0xff]  }
 0x138   :  { %3812 = vmatpush1.bf16.msra.mxu0 %v6380_v18  ;;  %4100 = vmatprep.subr.bf16.mxu1 %v6391_v27  ;;  %v6469_v18 = vld [vmem:[%s9094_s2 + $0x968] ss:$16 sps:$4 sm:$0xff]   ;;  %v6472_v27 = vld [vmem:[%s9094_s2 + $0xd80] ss:$16 sps:$4 sm:$0xff]  }
 0x139   :  { %3813 = vmatprep.subr.bf16.mxu0 %v6388_v51  ;;  %v6477_v51 = vld [vmem:[%s9094_s2 + $0x98c] ss:$16 sps:$4 sm:$0xff]  }
 0x13b   :  { %4101 = vmatpush1.bf16.msra.mxu1 %v6389_v22  ;;  %v6480_v22 = vld [vmem:[%s9094_s2 + $0xda4] ss:$16 sps:$4 sm:$0xff]  }
 0x13c   :  { %3814 = vmatpush1.bf16.msra.mxu0 %v6386_v28  ;;  %4102 = vmatprep.subr.bf16.mxu1 %v6397_v34  ;;  %v6475_v28 = vld [vmem:[%s9094_s2 + $0x988] ss:$16 sps:$4 sm:$0xff]   ;;  %v6478_v34 = vld [vmem:[%s9094_s2 + $0xda0] ss:$16 sps:$4 sm:$0xff]  }
 0x13d   :  { %3815 = vmatprep.subr.bf16.mxu0 %v6394_v29  ;;  %v6483_v29 = vld [vmem:[%s9094_s2 + $0x9ac] ss:$16 sps:$4 sm:$0xff]  }
 0x13f   :  { %4103 = vmatpush1.bf16.msra.mxu1 %v6395_v32  ;;  %v6486_v32 = vld [vmem:[%s9094_s2 + $0xdc4] ss:$16 sps:$4 sm:$0xff]  }
 0x140   :  { %3816 = vmatpush1.bf16.msra.mxu0 %v6392_v31  ;;  %4113 = vmatprep.subr.bf16.mxu1 %v6405_v33  ;;  %v6481_v31 = vld [vmem:[%s9094_s2 + $0x9a8] ss:$16 sps:$4 sm:$0xff]   ;;  %v6484_v33 = vld [vmem:[%s9094_s2 + $0xdc0] ss:$16 sps:$4 sm:$0xff]  }
 0x141   :  { %3826 = vmatprep.subr.bf16.mxu0 %v6402_v13  ;;  %v6489_v13 = vld [vmem:[%s9094_s2 + $0x9cc] ss:$16 sps:$4 sm:$0xff]  }
 0x142   :  { %4105 = vmatmul.mubr.bf16.vlgmr.msra.gmra.mrb[4].mxu1 %v7578_v21  ;;  %v6417_v21 = vld [vmem:[%s9094_s2 + $0x84c] ss:$16 sps:$4 sm:$0xff]  }
 0x143   :  { %3818 = vmatmul.mubr.bf16.vlgmr.msra.gmra.mrb[0].mxu0 %v8005_v36  ;;  %4114 = vmatpush1.bf16.msra.mxu1 %v6403_v37  ;;  %v6492_v37 = vld [vmem:[%s9094_s2 + $0xde4] ss:$16 sps:$4 sm:$0xff]  }
 0x144   :  { %3827 = vmatpush1.bf16.msra.mxu0 %v6400_v19  ;;  %4115 = vmatprep.subr.bf16.mxu1 %v6411_v7  ;;  %v6487_v19 = vld [vmem:[%s9094_s2 + $0x9c8] ss:$16 sps:$4 sm:$0xff]   ;;  %v6490_v7 = vld [vmem:[%s9094_s2 + $0xde0] ss:$16 sps:$4 sm:$0xff]  }
 0x145   :  { %3828 = vmatprep.subr.bf16.mxu0 %v6408_v38  ;;  %3858 = vmatprep.mubr.bf16.mxu0 %v8021_v39  ;;  %v6495_v38 = vld [vmem:[%s9094_s2 + $0x9ec] ss:$16 sps:$4 sm:$0xff]  }
 0x146   :  { %4145 = vmatprep.mubr.bf16.mxu1 %v7599_v25  ;;  %v6423_v25 = vld [vmem:[%s9094_s2 + $0x86c] ss:$16 sps:$4 sm:$0xff]  }
 0x147   :  { %4116 = vmatpush1.bf16.msra.mxu1 %v6409_v41  ;;  %v6500_v41 = vld [vmem:[%s9094_s2 + $0xe04] ss:$16 sps:$4 sm:$0xff]  }
 0x148   :  { %3829 = vmatpush1.bf16.msra.mxu0 %v6406_v40  ;;  %4117 = vmatprep.subr.bf16.mxu1 %v6417_v21  ;;  %v6493_v40 = vld [vmem:[%s9094_s2 + $0x9e8] ss:$16 sps:$4 sm:$0xff]   ;;  %v8209_v21 = vcombine.low %v8001_v35, %v8001_v35  ;;  %v6506_v35 = vld [vmem:[%s9094_s2 + $0xe24] ss:$16 sps:$4 sm:$0xff]  }
 0x149   :  { %3830 = vmatprep.subr.bf16.mxu0 %v6414_v42  ;;  %v6503_v42 = vld [vmem:[%s9094_s2 + $0xa0c] ss:$16 sps:$4 sm:$0xff]  }
 0x14b   :  { %4118 = vmatpush1.bf16.msra.mxu1 %v6415_v44  ;;  %v6498_v44 = vld [vmem:[%s9094_s2 + $0xe00] ss:$16 sps:$4 sm:$0xff]  }
 0x14c   :  { %3831 = vmatpush1.bf16.msra.mxu0 %v6412_v43  ;;  %4119 = vmatprep.subr.bf16.mxu1 %v6423_v25  ;;  %v8214_v43 = vld [vmem:[%s9095_s0 + $0x38] sm:$0xff] }
 0x14d   :  { %3832 = vmatprep.subr.bf16.mxu0 %v6420_v45  ;;  %v6501_v45 = vld [vmem:[%s9094_s2 + $0xa08] ss:$16 sps:$4 sm:$0xff]   ;;  %v6509_v25 = vld [vmem:[%s9094_s2 + $0xa2c] ss:$16 sps:$4 sm:$0xff]  }
 0x14f   :  { %4120 = vmatpush1.bf16.msra.mxu1 %v6421_v47  ;;  %v6504_v47 = vld [vmem:[%s9094_s2 + $0xe20] ss:$16 sps:$4 sm:$0xff]  }
 0x150   :  { %3833 = vmatpush1.bf16.msra.mxu0 %v6418_v46  ;;  %4121 = vmatprep.subr.bf16.mxu1 %v6429_v52  ;;  %v8230_v46 = vcombine.high %v8214_v43, %v8214_v43  ;;  %v6512_v52 = vld [vmem:[%s9094_s2 + $0xe44] ss:$16 sps:$4 sm:$0xff]  }
 0x151   :  { %3834 = vmatprep.subr.bf16.mxu0 %v6426_v48  ;;  %v6507_v48 = vld [vmem:[%s9094_s2 + $0xa28] ss:$16 sps:$4 sm:$0xff]  }
 0x153   :  { %4122 = vmatpush1.bf16.msra.mxu1 %v6427_v54  ;;  %v6513_v54 = vld [vmem:[%s9094_s2 + $0xa48] ss:$16 sps:$4 sm:$0xff]  }
 0x154   :  { %3835 = vmatpush1.bf16.msra.mxu0 %v6424_v53  ;;  %4123 = vmatprep.subr.bf16.mxu1 %v6435_v56  ;;  %v6510_v53 = vld [vmem:[%s9094_s2 + $0xe40] ss:$16 sps:$4 sm:$0xff]  }
 0x155   :  { %3836 = vmatprep.subr.bf16.mxu0 %v6432_v55  ;;  %v6518_v55 = vld [vmem:[%s9094_s2 + $0xe64] ss:$16 sps:$4 sm:$0xff]   ;;  %v6516_v56 = vld [vmem:[%s9094_s2 + $0xe60] ss:$16 sps:$4 sm:$0xff]  }
 0x157   :  { %4124 = vmatpush1.bf16.msra.mxu1 %v6433_v58  ;;  %v6524_v58 = vld [vmem:[%s9094_s2 + $0xe84] ss:$16 sps:$4 sm:$0xff]  }
 0x158   :  { %3837 = vmatpush1.bf16.msra.mxu0 %v6430_v57  ;;  %4125 = vmatprep.subr.bf16.mxu1 %v6441_v60  ;;  %v6519_v57 = vld [vmem:[%s9094_s2 + $0xa68] ss:$16 sps:$4 sm:$0xff]   ;;  %v6522_v60 = vld [vmem:[%s9094_s2 + $0xe80] ss:$16 sps:$4 sm:$0xff]  }
 0x159   :  { %3838 = vmatprep.subr.bf16.mxu0 %v6438_v59  ;;  %v6527_v59 = vld [vmem:[%s9094_s2 + $0xa8c] ss:$16 sps:$4 sm:$0xff]  }
 0x15b   :  { %4126 = vmatpush1.bf16.msra.mxu1 %v6439_v62  ;;  %v6530_v62 = vld [vmem:[%s9094_s2 + $0xea4] ss:$16 sps:$4 sm:$0xff]  }
 0x15c   :  { %3839 = vmatpush1.bf16.msra.mxu0 %v6436_v61  ;;  %4127 = vmatprep.subr.bf16.mxu1 %v6447_v0  ;;  %v6525_v61 = vld [vmem:[%s9094_s2 + $0xa88] ss:$16 sps:$4 sm:$0xff]   ;;  %v6528_v0 = vld [vmem:[%s9094_s2 + $0xea0] ss:$16 sps:$4 sm:$0xff]  }
 0x15d   :  { %3840 = vmatprep.subr.bf16.mxu0 %v6444_v63  ;;  %v6533_v63 = vld [vmem:[%s9094_s2 + $0xaac] ss:$16 sps:$4 sm:$0xff]  }
 0x15f   :  { %4128 = vmatpush1.bf16.msra.mxu1 %v6445_v2  ;;  %v6536_v2 = vld [vmem:[%s9094_s2 + $0xec4] ss:$16 sps:$4 sm:$0xff]  }
 0x160   :  { %3841 = vmatpush1.bf16.msra.mxu0 %v6442_v1  ;;  %4129 = vmatprep.subr.bf16.mxu1 %v6453_v4  ;;  %v6531_v1 = vld [vmem:[%s9094_s2 + $0xaa8] ss:$16 sps:$4 sm:$0xff]   ;;  %v6534_v4 = vld [vmem:[%s9094_s2 + $0xec0] ss:$16 sps:$4 sm:$0xff]  }
 0x161   :  { %3842 = vmatprep.subr.bf16.mxu0 %v6450_v3  ;;  %v6539_v3 = vld [vmem:[%s9094_s2 + $0xacc] ss:$16 sps:$4 sm:$0xff]  }
 0x163   :  { %4130 = vmatpush1.bf16.msra.mxu1 %v6451_v8  ;;  %v6542_v8 = vld [vmem:[%s9094_s2 + $0xee4] ss:$16 sps:$4 sm:$0xff]  }
 0x164   :  { %3843 = vmatpush1.bf16.msra.mxu0 %v6448_v5  ;;  %4131 = vmatprep.subr.bf16.mxu1 %v6459_v10  ;;  %v6537_v5 = vld [vmem:[%s9094_s2 + $0xac8] ss:$16 sps:$4 sm:$0xff]   ;;  %v6540_v10 = vld [vmem:[%s9094_s2 + $0xee0] ss:$16 sps:$4 sm:$0xff]  }
 0x165   :  { %3844 = vmatprep.subr.bf16.mxu0 %v6456_v9  ;;  %v6545_v9 = vld [vmem:[%s9094_s2 + $0xaec] ss:$16 sps:$4 sm:$0xff]  }
 0x167   :  { %4132 = vmatpush1.bf16.msra.mxu1 %v6457_v12  ;;  %v6548_v12 = vld [vmem:[%s9094_s2 + $0xf04] ss:$16 sps:$4 sm:$0xff]  }
 0x168   :  { %3845 = vmatpush1.bf16.msra.mxu0 %v6454_v11  ;;  %4133 = vmatprep.subr.bf16.mxu1 %v6465_v15  ;;  %v6543_v11 = vld [vmem:[%s9094_s2 + $0xae8] ss:$16 sps:$4 sm:$0xff]   ;;  %v6546_v15 = vld [vmem:[%s9094_s2 + $0xf00] ss:$16 sps:$4 sm:$0xff]  }
 0x169   :  { %3846 = vmatprep.subr.bf16.mxu0 %v6462_v14  ;;  %v6551_v14 = vld [vmem:[%s9094_s2 + $0xb0c] ss:$16 sps:$4 sm:$0xff]  }
 0x16b   :  { %4134 = vmatpush1.bf16.msra.mxu1 %v6463_v17  ;;  %v6554_v17 = vld [vmem:[%s9094_s2 + $0xf24] ss:$16 sps:$4 sm:$0xff]  }
 0x16c   :  { %3847 = vmatpush1.bf16.msra.mxu0 %v6460_v16  ;;  %4135 = vmatprep.subr.bf16.mxu1 %v6471_v6  ;;  %v6549_v16 = vld [vmem:[%s9094_s2 + $0xb08] ss:$16 sps:$4 sm:$0xff]   ;;  %v6552_v6 = vld [vmem:[%s9094_s2 + $0xf20] ss:$16 sps:$4 sm:$0xff]  }
 0x16d   :  { %3848 = vmatprep.subr.bf16.mxu0 %v6468_v20  ;;  %v6557_v20 = vld [vmem:[%s9094_s2 + $0xb2c] ss:$16 sps:$4 sm:$0xff]  }
 0x16f   :  { %4136 = vmatpush1.bf16.msra.mxu1 %v6469_v18  ;;  %v6560_v18 = vld [vmem:[%s9094_s2 + $0xf44] ss:$16 sps:$4 sm:$0xff]  }
 0x170   :  { %3849 = vmatpush1.bf16.msra.mxu0 %v6466_v23  ;;  %4137 = vmatprep.subr.bf16.mxu1 %v6477_v51  ;;  %v6555_v23 = vld [vmem:[%s9094_s2 + $0xb28] ss:$16 sps:$4 sm:$0xff]   ;;  %v6558_v51 = vld [vmem:[%s9094_s2 + $0xf40] ss:$16 sps:$4 sm:$0xff]  }
 0x171   :  { %3850 = vmatprep.subr.bf16.mxu0 %v6474_v24  ;;  %v6563_v24 = vld [vmem:[%s9094_s2 + $0xb4c] ss:$16 sps:$4 sm:$0xff]  }
 0x173   :  { %4138 = vmatpush1.bf16.msra.mxu1 %v6475_v28  ;;  %v6566_v28 = vld [vmem:[%s9094_s2 + $0xf64] ss:$16 sps:$4 sm:$0xff]  }
 0x174   :  { %3851 = vmatpush1.bf16.msra.mxu0 %v6472_v27  ;;  %4139 = vmatprep.subr.bf16.mxu1 %v6483_v29  ;;  %v6561_v27 = vld [vmem:[%s9094_s2 + $0xb48] ss:$16 sps:$4 sm:$0xff]   ;;  %v6564_v29 = vld [vmem:[%s9094_s2 + $0xf60] ss:$16 sps:$4 sm:$0xff]  }
 0x175   :  { %3852 = vmatprep.subr.bf16.mxu0 %v6480_v22  ;;  %v6569_v22 = vld [vmem:[%s9094_s2 + $0xb6c] ss:$16 sps:$4 sm:$0xff]  }
 0x177   :  { %4140 = vmatpush1.bf16.msra.mxu1 %v6481_v31  ;;  %v6572_v31 = vld [vmem:[%s9094_s2 + $0xf84] ss:$16 sps:$4 sm:$0xff]  }
 0x178   :  { %3853 = vmatpush1.bf16.msra.mxu0 %v6478_v34  ;;  %4141 = vmatprep.subr.bf16.mxu1 %v6489_v13  ;;  %v6567_v34 = vld [vmem:[%s9094_s2 + $0xb68] ss:$16 sps:$4 sm:$0xff]   ;;  %v6570_v13 = vld [vmem:[%s9094_s2 + $0xf80] ss:$16 sps:$4 sm:$0xff]  }
 0x179   :  { %3854 = vmatprep.subr.bf16.mxu0 %v6486_v32  ;;  %v6575_v32 = vld [vmem:[%s9094_s2 + $0xb8c] ss:$16 sps:$4 sm:$0xff]  }
 0x17b   :  { %4142 = vmatpush1.bf16.msra.mxu1 %v6487_v19  ;;  %v6578_v19 = vld [vmem:[%s9094_s2 + $0xfa4] ss:$16 sps:$4 sm:$0xff]  }
 0x17c   :  { %3855 = vmatpush1.bf16.msra.mxu0 %v6484_v33  ;;  %4143 = vmatprep.subr.bf16.mxu1 %v6495_v38  ;;  %v6573_v33 = vld [vmem:[%s9094_s2 + $0xb88] ss:$16 sps:$4 sm:$0xff]   ;;  %v6576_v38 = vld [vmem:[%s9094_s2 + $0xfa0] ss:$16 sps:$4 sm:$0xff]  }
 0x17d   :  { %3856 = vmatprep.subr.bf16.mxu0 %v6492_v37  ;;  %v6581_v37 = vld [vmem:[%s9094_s2 + $0xbac] ss:$16 sps:$4 sm:$0xff]  }
 0x17f   :  { %4144 = vmatpush1.bf16.msra.mxu1 %v6493_v40  ;;  %v6584_v40 = vld [vmem:[%s9094_s2 + $0xfc4] ss:$16 sps:$4 sm:$0xff]  }
 0x180   :  { %3857 = vmatpush1.bf16.msra.mxu0 %v6490_v7  ;;  %4154 = vmatprep.subr.bf16.mxu1 %v6503_v42  ;;  %v6579_v7 = vld [vmem:[%s9094_s2 + $0xba8] ss:$16 sps:$4 sm:$0xff]   ;;  %v6582_v42 = vld [vmem:[%s9094_s2 + $0xfc0] ss:$16 sps:$4 sm:$0xff]  }
 0x181   :  { %3867 = vmatprep.subr.bf16.mxu0 %v6500_v41  ;;  %v6587_v41 = vld [vmem:[%s9094_s2 + $0xbcc] ss:$16 sps:$4 sm:$0xff]  }
 0x182   :  { %4146 = vmatmul.mubr.bf16.vlgmr.msra.gmra.mrb[4].mxu1 %v7787_v26  ;;  %v6515_v26 = vld [vmem:[%s9094_s2 + $0xa4c] ss:$16 sps:$4 sm:$0xff]  }
 0x183   :  { %3859 = vmatmul.mubr.bf16.vlgmr.msra.gmra.mrb[0].mxu0 %v8209_v21  ;;  %4155 = vmatpush1.bf16.msra.mxu1 %v6501_v45  ;;  %v6590_v45 = vld [vmem:[%s9094_s2 + $0xfe4] ss:$16 sps:$4 sm:$0xff]  }
 0x184   :  { %3868 = vmatpush1.bf16.msra.mxu0 %v6498_v44  ;;  %4156 = vmatprep.subr.bf16.mxu1 %v6509_v25  ;;  %v6585_v44 = vld [vmem:[%s9094_s2 + $0xbc8] ss:$16 sps:$4 sm:$0xff]   ;;  %v6588_v25 = vld [vmem:[%s9094_s2 + $0xfe0] ss:$16 sps:$4 sm:$0xff]  }
 0x185   :  { %3869 = vmatprep.subr.bf16.mxu0 %v6506_v35  ;;  %3899 = vmatprep.mubr.bf16.mxu0 %v8230_v46  ;;  %v6593_v35 = vld [vmem:[%s9094_s2 + $0xbec] ss:$16 sps:$4 sm:$0xff]  }
 0x186   :  { %4186 = vmatprep.mubr.bf16.mxu1 %v7808_v30  ;;  %v6521_v30 = vld [vmem:[%s9094_s2 + $0xa6c] ss:$16 sps:$4 sm:$0xff]  }
 0x187   :  { %4157 = vmatpush1.bf16.msra.mxu1 %v6507_v48  ;;  %v6598_v48 = vld [vmem:[%s9094_s2 + $0x1004] ss:$16 sps:$4 sm:$0xff]  }
 0x188   :  { %3870 = vmatpush1.bf16.msra.mxu0 %v6504_v47  ;;  %4158 = vmatprep.subr.bf16.mxu1 %v6515_v26  ;;  %v6591_v47 = vld [vmem:[%s9094_s2 + $0xbe8] ss:$16 sps:$4 sm:$0xff]   ;;  %v8418_v26 = vcombine.low %v8214_v43, %v8214_v43  ;;  %v6604_v43 = vld [vmem:[%s9094_s2 + $0x1024] ss:$16 sps:$4 sm:$0xff]  }
 0x189   :  { %3871 = vmatprep.subr.bf16.mxu0 %v6512_v52  ;;  %v6601_v52 = vld [vmem:[%s9094_s2 + $0xc0c] ss:$16 sps:$4 sm:$0xff]  }
 0x18b   :  { %4159 = vmatpush1.bf16.msra.mxu1 %v6513_v54  ;;  %v6596_v54 = vld [vmem:[%s9094_s2 + $0x1000] ss:$16 sps:$4 sm:$0xff]  }
 0x18c   :  { %3872 = vmatpush1.bf16.msra.mxu0 %v6510_v53  ;;  %4160 = vmatprep.subr.bf16.mxu1 %v6521_v30  ;;  %v8423_v53 = vld [vmem:[%s9095_s0 + $0x40] sm:$0xff]  ;;  %v6607_v30 = vld [vmem:[%s9094_s2 + $0xc2c] ss:$16 sps:$4 sm:$0xff]  }
 0x18d   :  { %3873 = vmatprep.subr.bf16.mxu0 %v6518_v55  ;;  %v6599_v55 = vld [vmem:[%s9094_s2 + $0xc08] ss:$16 sps:$4 sm:$0xff]  }
 0x18f   :  { %4161 = vmatpush1.bf16.msra.mxu1 %v6519_v57  ;;  %v6602_v57 = vld [vmem:[%s9094_s2 + $0x1020] ss:$16 sps:$4 sm:$0xff]  }
 0x190   :  { %3874 = vmatpush1.bf16.msra.mxu0 %v6516_v56  ;;  %4162 = vmatprep.subr.bf16.mxu1 %v6527_v59  ;;  %v8439_v56 = vcombine.high %v8423_v53, %v8423_v53  ;;  %v6610_v59 = vld [vmem:[%s9094_s2 + $0x1044] ss:$16 sps:$4 sm:$0xff]  }
 0x191   :  { %3875 = vmatprep.subr.bf16.mxu0 %v6524_v58  ;;  %v6605_v58 = vld [vmem:[%s9094_s2 + $0xc28] ss:$16 sps:$4 sm:$0xff]  }
 0x193   :  { %4163 = vmatpush1.bf16.msra.mxu1 %v6525_v61  ;;  %v6611_v61 = vld [vmem:[%s9094_s2 + $0xc48] ss:$16 sps:$4 sm:$0xff]  }
 0x194   :  { %3876 = vmatpush1.bf16.msra.mxu0 %v6522_v60  ;;  %4164 = vmatprep.subr.bf16.mxu1 %v6533_v63  ;;  %v6608_v60 = vld [vmem:[%s9094_s2 + $0x1040] ss:$16 sps:$4 sm:$0xff]  }
 0x195   :  { %3877 = vmatprep.subr.bf16.mxu0 %v6530_v62  ;;  %v6616_v62 = vld [vmem:[%s9094_s2 + $0x1064] ss:$16 sps:$4 sm:$0xff]   ;;  %v6614_v63 = vld [vmem:[%s9094_s2 + $0x1060] ss:$16 sps:$4 sm:$0xff]  }
 0x197   :  { %4165 = vmatpush1.bf16.msra.mxu1 %v6531_v1  ;;  %v6622_v1 = vld [vmem:[%s9094_s2 + $0x1084] ss:$16 sps:$4 sm:$0xff]  }
 0x198   :  { %3878 = vmatpush1.bf16.msra.mxu0 %v6528_v0  ;;  %4166 = vmatprep.subr.bf16.mxu1 %v6539_v3  ;;  %v6617_v0 = vld [vmem:[%s9094_s2 + $0xc68] ss:$16 sps:$4 sm:$0xff]   ;;  %v6620_v3 = vld [vmem:[%s9094_s2 + $0x1080] ss:$16 sps:$4 sm:$0xff]  }
 0x199   :  { %3879 = vmatprep.subr.bf16.mxu0 %v6536_v2  ;;  %v6625_v2 = vld [vmem:[%s9094_s2 + $0xc8c] ss:$16 sps:$4 sm:$0xff]  }
 0x19b   :  { %4167 = vmatpush1.bf16.msra.mxu1 %v6537_v5  ;;  %v6628_v5 = vld [vmem:[%s9094_s2 + $0x10a4] ss:$16 sps:$4 sm:$0xff]  }
 0x19c   :  { %3880 = vmatpush1.bf16.msra.mxu0 %v6534_v4  ;;  %4168 = vmatprep.subr.bf16.mxu1 %v6545_v9  ;;  %v6623_v4 = vld [vmem:[%s9094_s2 + $0xc88] ss:$16 sps:$4 sm:$0xff]   ;;  %v6626_v9 = vld [vmem:[%s9094_s2 + $0x10a0] ss:$16 sps:$4 sm:$0xff]  }
 0x19d   :  { %3881 = vmatprep.subr.bf16.mxu0 %v6542_v8  ;;  %v6631_v8 = vld [vmem:[%s9094_s2 + $0xcac] ss:$16 sps:$4 sm:$0xff]  }
 0x19f   :  { %4169 = vmatpush1.bf16.msra.mxu1 %v6543_v11  ;;  %v6634_v11 = vld [vmem:[%s9094_s2 + $0x10c4] ss:$16 sps:$4 sm:$0xff]  }
 0x1a0   :  { %3882 = vmatpush1.bf16.msra.mxu0 %v6540_v10  ;;  %4170 = vmatprep.subr.bf16.mxu1 %v6551_v14  ;;  %v6629_v10 = vld [vmem:[%s9094_s2 + $0xca8] ss:$16 sps:$4 sm:$0xff]   ;;  %v6632_v14 = vld [vmem:[%s9094_s2 + $0x10c0] ss:$16 sps:$4 sm:$0xff]  }
 0x1a1   :  { %3883 = vmatprep.subr.bf16.mxu0 %v6548_v12  ;;  %v6637_v12 = vld [vmem:[%s9094_s2 + $0xccc] ss:$16 sps:$4 sm:$0xff]  }
 0x1a3   :  { %4171 = vmatpush1.bf16.msra.mxu1 %v6549_v16  ;;  %v6640_v16 = vld [vmem:[%s9094_s2 + $0x10e4] ss:$16 sps:$4 sm:$0xff]  }
 0x1a4   :  { %3884 = vmatpush1.bf16.msra.mxu0 %v6546_v15  ;;  %4172 = vmatprep.subr.bf16.mxu1 %v6557_v20  ;;  %v6635_v15 = vld [vmem:[%s9094_s2 + $0xcc8] ss:$16 sps:$4 sm:$0xff]   ;;  %v6638_v20 = vld [vmem:[%s9094_s2 + $0x10e0] ss:$16 sps:$4 sm:$0xff]  }
 0x1a5   :  { %3885 = vmatprep.subr.bf16.mxu0 %v6554_v17  ;;  %v6643_v17 = vld [vmem:[%s9094_s2 + $0xcec] ss:$16 sps:$4 sm:$0xff]  }
 0x1a7   :  { %4173 = vmatpush1.bf16.msra.mxu1 %v6555_v23  ;;  %v6646_v23 = vld [vmem:[%s9094_s2 + $0x1104] ss:$16 sps:$4 sm:$0xff]  }
 0x1a8   :  { %3886 = vmatpush1.bf16.msra.mxu0 %v6552_v6  ;;  %4174 = vmatprep.subr.bf16.mxu1 %v6563_v24  ;;  %v6641_v6 = vld [vmem:[%s9094_s2 + $0xce8] ss:$16 sps:$4 sm:$0xff]   ;;  %v6644_v24 = vld [vmem:[%s9094_s2 + $0x1100] ss:$16 sps:$4 sm:$0xff]  }
 0x1a9   :  { %3887 = vmatprep.subr.bf16.mxu0 %v6560_v18  ;;  %v6649_v18 = vld [vmem:[%s9094_s2 + $0xd0c] ss:$16 sps:$4 sm:$0xff]  }
 0x1ab   :  { %4175 = vmatpush1.bf16.msra.mxu1 %v6561_v27  ;;  %v6652_v27 = vld [vmem:[%s9094_s2 + $0x1124] ss:$16 sps:$4 sm:$0xff]  }
 0x1ac   :  { %3888 = vmatpush1.bf16.msra.mxu0 %v6558_v51  ;;  %4176 = vmatprep.subr.bf16.mxu1 %v6569_v22  ;;  %v6647_v51 = vld [vmem:[%s9094_s2 + $0xd08] ss:$16 sps:$4 sm:$0xff]   ;;  %v6650_v22 = vld [vmem:[%s9094_s2 + $0x1120] ss:$16 sps:$4 sm:$0xff]  }
 0x1ad   :  { %3889 = vmatprep.subr.bf16.mxu0 %v6566_v28  ;;  %v6655_v28 = vld [vmem:[%s9094_s2 + $0xd2c] ss:$16 sps:$4 sm:$0xff]  }
 0x1af   :  { %4177 = vmatpush1.bf16.msra.mxu1 %v6567_v34  ;;  %v6658_v34 = vld [vmem:[%s9094_s2 + $0x1144] ss:$16 sps:$4 sm:$0xff]  }
 0x1b0   :  { %3890 = vmatpush1.bf16.msra.mxu0 %v6564_v29  ;;  %4178 = vmatprep.subr.bf16.mxu1 %v6575_v32  ;;  %v6653_v29 = vld [vmem:[%s9094_s2 + $0xd28] ss:$16 sps:$4 sm:$0xff]   ;;  %v6656_v32 = vld [vmem:[%s9094_s2 + $0x1140] ss:$16 sps:$4 sm:$0xff]  }
 0x1b1   :  { %3891 = vmatprep.subr.bf16.mxu0 %v6572_v31  ;;  %v6661_v31 = vld [vmem:[%s9094_s2 + $0xd4c] ss:$16 sps:$4 sm:$0xff]  }
 0x1b3   :  { %4179 = vmatpush1.bf16.msra.mxu1 %v6573_v33  ;;  %v6664_v33 = vld [vmem:[%s9094_s2 + $0x1164] ss:$16 sps:$4 sm:$0xff]  }
 0x1b4   :  { %3892 = vmatpush1.bf16.msra.mxu0 %v6570_v13  ;;  %4180 = vmatprep.subr.bf16.mxu1 %v6581_v37  ;;  %v6659_v13 = vld [vmem:[%s9094_s2 + $0xd48] ss:$16 sps:$4 sm:$0xff]   ;;  %v6662_v37 = vld [vmem:[%s9094_s2 + $0x1160] ss:$16 sps:$4 sm:$0xff]  }
 0x1b5   :  { %3893 = vmatprep.subr.bf16.mxu0 %v6578_v19  ;;  %v6667_v19 = vld [vmem:[%s9094_s2 + $0xd6c] ss:$16 sps:$4 sm:$0xff]  }
 0x1b7   :  { %4181 = vmatpush1.bf16.msra.mxu1 %v6579_v7  ;;  %v6670_v7 = vld [vmem:[%s9094_s2 + $0x1184] ss:$16 sps:$4 sm:$0xff]  }
 0x1b8   :  { %3894 = vmatpush1.bf16.msra.mxu0 %v6576_v38  ;;  %4182 = vmatprep.subr.bf16.mxu1 %v6587_v41  ;;  %v6665_v38 = vld [vmem:[%s9094_s2 + $0xd68] ss:$16 sps:$4 sm:$0xff]   ;;  %v6668_v41 = vld [vmem:[%s9094_s2 + $0x1180] ss:$16 sps:$4 sm:$0xff]  }
 0x1b9   :  { %3895 = vmatprep.subr.bf16.mxu0 %v6584_v40  ;;  %v6673_v40 = vld [vmem:[%s9094_s2 + $0xd8c] ss:$16 sps:$4 sm:$0xff]  }
 0x1bb   :  { %4183 = vmatpush1.bf16.msra.mxu1 %v6585_v44  ;;  %v6676_v44 = vld [vmem:[%s9094_s2 + $0x11a4] ss:$16 sps:$4 sm:$0xff]  }
 0x1bc   :  { %3896 = vmatpush1.bf16.msra.mxu0 %v6582_v42  ;;  %4184 = vmatprep.subr.bf16.mxu1 %v6593_v35  ;;  %v6671_v42 = vld [vmem:[%s9094_s2 + $0xd88] ss:$16 sps:$4 sm:$0xff]   ;;  %v6674_v35 = vld [vmem:[%s9094_s2 + $0x11a0] ss:$16 sps:$4 sm:$0xff]  }
 0x1bd   :  { %3897 = vmatprep.subr.bf16.mxu0 %v6590_v45  ;;  %v6679_v45 = vld [vmem:[%s9094_s2 + $0xdac] ss:$16 sps:$4 sm:$0xff]  }
 0x1bf   :  { %4185 = vmatpush1.bf16.msra.mxu1 %v6591_v47  ;;  %v6682_v47 = vld [vmem:[%s9094_s2 + $0x11c4] ss:$16 sps:$4 sm:$0xff]  }
 0x1c0   :  { %3898 = vmatpush1.bf16.msra.mxu0 %v6588_v25  ;;  %4195 = vmatprep.subr.bf16.mxu1 %v6601_v52  ;;  %v6677_v25 = vld [vmem:[%s9094_s2 + $0xda8] ss:$16 sps:$4 sm:$0xff]   ;;  %v6680_v52 = vld [vmem:[%s9094_s2 + $0x11c0] ss:$16 sps:$4 sm:$0xff]  }
 0x1c1   :  { %3908 = vmatprep.subr.bf16.mxu0 %v6598_v48  ;;  %v6685_v48 = vld [vmem:[%s9094_s2 + $0xdcc] ss:$16 sps:$4 sm:$0xff]  }
 0x1c2   :  { %4187 = vmatmul.mubr.bf16.vlgmr.msra.gmra.mrb[4].mxu1 %v8005_v36  ;;  %v6613_v36 = vld [vmem:[%s9094_s2 + $0xc4c] ss:$16 sps:$4 sm:$0xff]  }
 0x1c3   :  { %3900 = vmatmul.mubr.bf16.vlgmr.msra.gmra.mrb[0].mxu0 %v8418_v26  ;;  %4196 = vmatpush1.bf16.msra.mxu1 %v6599_v55  ;;  %v6688_v55 = vld [vmem:[%s9094_s2 + $0x11e4] ss:$16 sps:$4 sm:$0xff]  }
 0x1c4   :  { %3909 = vmatpush1.bf16.msra.mxu0 %v6596_v54  ;;  %4197 = vmatprep.subr.bf16.mxu1 %v6607_v30  ;;  %v6683_v54 = vld [vmem:[%s9094_s2 + $0xdc8] ss:$16 sps:$4 sm:$0xff]   ;;  %v6686_v30 = vld [vmem:[%s9094_s2 + $0x11e0] ss:$16 sps:$4 sm:$0xff]  }
 0x1c5   :  { %3910 = vmatprep.subr.bf16.mxu0 %v6604_v43  ;;  %3940 = vmatprep.mubr.bf16.mxu0 %v8439_v56  ;;  %v6691_v43 = vld [vmem:[%s9094_s2 + $0xdec] ss:$16 sps:$4 sm:$0xff]  }
 0x1c6   :  { %4227 = vmatprep.mubr.bf16.mxu1 %v8021_v39  ;;  %v6619_v39 = vld [vmem:[%s9094_s2 + $0xc6c] ss:$16 sps:$4 sm:$0xff]  }
 0x1c7   :  { %4198 = vmatpush1.bf16.msra.mxu1 %v6605_v58  ;;  %v6696_v58 = vld [vmem:[%s9094_s2 + $0xe0c] ss:$16 sps:$4 sm:$0xff]  }
 0x1c8   :  { %3911 = vmatpush1.bf16.msra.mxu0 %v6602_v57  ;;  %4199 = vmatprep.subr.bf16.mxu1 %v6613_v36  ;;  %v6689_v57 = vld [vmem:[%s9094_s2 + $0xde8] ss:$16 sps:$4 sm:$0xff]  }
 0x1c9   :  { %3912 = vmatprep.subr.bf16.mxu0 %v6610_v59  ;;  %v8624_v59 = vcombine.low %v8423_v53, %v8423_v53  ;;  %v6694_v36 = vld [vmem:[%s9094_s2 + $0xe08] ss:$16 sps:$4 sm:$0xff]  }
 0x1ca   :  { %v6697_v53 = vld [vmem:[%s9094_s2 + $0xe28] ss:$16 sps:$4 sm:$0xff]  }
 0x1cb   :  { %4200 = vmatpush1.bf16.msra.mxu1 %v6611_v61  ;;  %v6702_v61 = vld [vmem:[%s9094_s2 + $0xe4c] ss:$16 sps:$4 sm:$0xff]  }
 0x1cc   :  { %3913 = vmatpush1.bf16.msra.mxu0 %v6608_v60  ;;  %4201 = vmatprep.subr.bf16.mxu1 %v6619_v39  ;;  %v6699_v60 = vld [vmem:[%s9094_s2 + $0xe2c] ss:$16 sps:$4 sm:$0xff]  }
 0x1cd   :  { %3914 = vmatprep.subr.bf16.mxu0 %v6616_v62  ;;  %v6700_v62 = vld [vmem:[%s9094_s2 + $0xe48] ss:$16 sps:$4 sm:$0xff]   ;;  %v6708_v39 = vld [vmem:[%s9094_s2 + $0xe8c] ss:$16 sps:$4 sm:$0xff]  }
 0x1cf   :  { %4202 = vmatpush1.bf16.msra.mxu1 %v6617_v0  ;;  %v6711_v0 = vld [vmem:[%s9094_s2 + $0xeac] ss:$16 sps:$4 sm:$0xff]  }
 0x1d0   :  { %3915 = vmatpush1.bf16.msra.mxu0 %v6614_v63  ;;  %4203 = vmatprep.subr.bf16.mxu1 %v6625_v2  ;;  %v6706_v63 = vld [vmem:[%s9094_s2 + $0xe88] ss:$16 sps:$4 sm:$0xff]   ;;  %v6714_v2 = vld [vmem:[%s9094_s2 + $0xecc] ss:$16 sps:$4 sm:$0xff]  }
 0x1d1   :  { %3916 = vmatprep.subr.bf16.mxu0 %v6622_v1  ;;  %v6709_v1 = vld [vmem:[%s9094_s2 + $0xea8] ss:$16 sps:$4 sm:$0xff]  }
 0x1d3   :  { %4204 = vmatpush1.bf16.msra.mxu1 %v6623_v4  ;;  %v6717_v4 = vld [vmem:[%s9094_s2 + $0xeec] ss:$16 sps:$4 sm:$0xff]  }
 0x1d4   :  { %3917 = vmatpush1.bf16.msra.mxu0 %v6620_v3  ;;  %4205 = vmatprep.subr.bf16.mxu1 %v6631_v8  ;;  %v6712_v3 = vld [vmem:[%s9094_s2 + $0xec8] ss:$16 sps:$4 sm:$0xff]   ;;  %v6720_v8 = vld [vmem:[%s9094_s2 + $0xf0c] ss:$16 sps:$4 sm:$0xff]  }
 0x1d5   :  { %3918 = vmatprep.subr.bf16.mxu0 %v6628_v5  ;;  %v6715_v5 = vld [vmem:[%s9094_s2 + $0xee8] ss:$16 sps:$4 sm:$0xff]  }
 0x1d7   :  { %4206 = vmatpush1.bf16.msra.mxu1 %v6629_v10  ;;  %v6723_v10 = vld [vmem:[%s9094_s2 + $0xf2c] ss:$16 sps:$4 sm:$0xff]  }
 0x1d8   :  { %3919 = vmatpush1.bf16.msra.mxu0 %v6626_v9  ;;  %4207 = vmatprep.subr.bf16.mxu1 %v6637_v12  ;;  %v6718_v9 = vld [vmem:[%s9094_s2 + $0xf08] ss:$16 sps:$4 sm:$0xff]   ;;  %v6726_v12 = vld [vmem:[%s9094_s2 + $0xf4c] ss:$16 sps:$4 sm:$0xff]  }
 0x1d9   :  { %3920 = vmatprep.subr.bf16.mxu0 %v6634_v11  ;;  %v6721_v11 = vld [vmem:[%s9094_s2 + $0xf28] ss:$16 sps:$4 sm:$0xff]  }
 0x1db   :  { %4208 = vmatpush1.bf16.msra.mxu1 %v6635_v15  ;;  %v6729_v15 = vld [vmem:[%s9094_s2 + $0xf6c] ss:$16 sps:$4 sm:$0xff]  }
 0x1dc   :  { %3921 = vmatpush1.bf16.msra.mxu0 %v6632_v14  ;;  %4209 = vmatprep.subr.bf16.mxu1 %v6643_v17  ;;  %v6724_v14 = vld [vmem:[%s9094_s2 + $0xf48] ss:$16 sps:$4 sm:$0xff]   ;;  %v6732_v17 = vld [vmem:[%s9094_s2 + $0xf8c] ss:$16 sps:$4 sm:$0xff]  }
 0x1dd   :  { %3922 = vmatprep.subr.bf16.mxu0 %v6640_v16  ;;  %v6727_v16 = vld [vmem:[%s9094_s2 + $0xf68] ss:$16 sps:$4 sm:$0xff]  }
 0x1df   :  { %4210 = vmatpush1.bf16.msra.mxu1 %v6641_v6  ;;  %v6735_v6 = vld [vmem:[%s9094_s2 + $0xfac] ss:$16 sps:$4 sm:$0xff]  }
 0x1e0   :  { %3923 = vmatpush1.bf16.msra.mxu0 %v6638_v20  ;;  %4211 = vmatprep.subr.bf16.mxu1 %v6649_v18  ;;  %v6730_v20 = vld [vmem:[%s9094_s2 + $0xf88] ss:$16 sps:$4 sm:$0xff]   ;;  %v6738_v18 = vld [vmem:[%s9094_s2 + $0xfcc] ss:$16 sps:$4 sm:$0xff]  }
 0x1e1   :  { %3924 = vmatprep.subr.bf16.mxu0 %v6646_v23  ;;  %v6733_v23 = vld [vmem:[%s9094_s2 + $0xfa8] ss:$16 sps:$4 sm:$0xff]  }
 0x1e3   :  { %4212 = vmatpush1.bf16.msra.mxu1 %v6647_v51  ;;  %v6741_v51 = vld [vmem:[%s9094_s2 + $0xfec] ss:$16 sps:$4 sm:$0xff]  }
 0x1e4   :  { %3925 = vmatpush1.bf16.msra.mxu0 %v6644_v24  ;;  %4213 = vmatprep.subr.bf16.mxu1 %v6655_v28  ;;  %v6736_v24 = vld [vmem:[%s9094_s2 + $0xfc8] ss:$16 sps:$4 sm:$0xff]   ;;  %v6744_v28 = vld [vmem:[%s9094_s2 + $0x100c] ss:$16 sps:$4 sm:$0xff]  }
 0x1e5   :  { %3926 = vmatprep.subr.bf16.mxu0 %v6652_v27  ;;  %v6739_v27 = vld [vmem:[%s9094_s2 + $0xfe8] ss:$16 sps:$4 sm:$0xff]  }
 0x1e7   :  { %4214 = vmatpush1.bf16.msra.mxu1 %v6653_v29  ;;  %v6747_v29 = vld [vmem:[%s9094_s2 + $0x102c] ss:$16 sps:$4 sm:$0xff]  }
 0x1e8   :  { %3927 = vmatpush1.bf16.msra.mxu0 %v6650_v22  ;;  %4215 = vmatprep.subr.bf16.mxu1 %v6661_v31  ;;  %v6742_v22 = vld [vmem:[%s9094_s2 + $0x1008] ss:$16 sps:$4 sm:$0xff]   ;;  %v6750_v31 = vld [vmem:[%s9094_s2 + $0x104c] ss:$16 sps:$4 sm:$0xff]  }
 0x1e9   :  { %3928 = vmatprep.subr.bf16.mxu0 %v6658_v34  ;;  %v6745_v34 = vld [vmem:[%s9094_s2 + $0x1028] ss:$16 sps:$4 sm:$0xff]  }
 0x1eb   :  { %4216 = vmatpush1.bf16.msra.mxu1 %v6659_v13  ;;  %v6756_v13 = vld [vmem:[%s9094_s2 + $0x108c] ss:$16 sps:$4 sm:$0xff]  }
 0x1ec   :  { %3929 = vmatpush1.bf16.msra.mxu0 %v6656_v32  ;;  %4217 = vmatprep.subr.bf16.mxu1 %v6667_v19  ;;  %v6748_v32 = vld [vmem:[%s9094_s2 + $0x1048] ss:$16 sps:$4 sm:$0xff]   ;;  %v6759_v19 = vld [vmem:[%s9094_s2 + $0x10ac] ss:$16 sps:$4 sm:$0xff]  }
 0x1ed   :  { %3930 = vmatprep.subr.bf16.mxu0 %v6664_v33  ;;  %v6754_v33 = vld [vmem:[%s9094_s2 + $0x1088] ss:$16 sps:$4 sm:$0xff]  }
 0x1ef   :  { %4218 = vmatpush1.bf16.msra.mxu1 %v6665_v38  ;;  %v6762_v38 = vld [vmem:[%s9094_s2 + $0x10cc] ss:$16 sps:$4 sm:$0xff]  }
 0x1f0   :  { %3931 = vmatpush1.bf16.msra.mxu0 %v6662_v37  ;;  %4219 = vmatprep.subr.bf16.mxu1 %v6673_v40  ;;  %v6757_v37 = vld [vmem:[%s9094_s2 + $0x10a8] ss:$16 sps:$4 sm:$0xff]   ;;  %v6765_v40 = vld [vmem:[%s9094_s2 + $0x10ec] ss:$16 sps:$4 sm:$0xff]  }
 0x1f1   :  { %3932 = vmatprep.subr.bf16.mxu0 %v6670_v7  ;;  %v6760_v7 = vld [vmem:[%s9094_s2 + $0x10c8] ss:$16 sps:$4 sm:$0xff]  }
 0x1f3   :  { %4220 = vmatpush1.bf16.msra.mxu1 %v6671_v42  ;;  %v6768_v42 = vld [vmem:[%s9094_s2 + $0x110c] ss:$16 sps:$4 sm:$0xff]  }
 0x1f4   :  { %3933 = vmatpush1.bf16.msra.mxu0 %v6668_v41  ;;  %4221 = vmatprep.subr.bf16.mxu1 %v6679_v45  ;;  %v6763_v41 = vld [vmem:[%s9094_s2 + $0x10e8] ss:$16 sps:$4 sm:$0xff]  }
 0x1f5   :  { %3934 = vmatprep.subr.bf16.mxu0 %v6676_v44  ;;  %v6902_v44 = vmov 0.0   ;;  %v6766_v45 = vld [vmem:[%s9094_s2 + $0x1108] ss:$16 sps:$4 sm:$0xff]  }
 0x1f7   :  { %4222 = vmatpush1.bf16.msra.mxu1 %v6677_v25  ;;  %v6769_v25 = vld [vmem:[%s9094_s2 + $0x1128] ss:$16 sps:$4 sm:$0xff]  }
 0x1f8   :  { %3935 = vmatpush1.bf16.msra.mxu0 %v6674_v35  ;;  %4223 = vmatprep.subr.bf16.mxu1 %v6685_v48  ;;  %v6771_v35 = vld [vmem:[%s9094_s2 + $0x112c] ss:$16 sps:$4 sm:$0xff]   ;;  %v6772_v48 = vld [vmem:[%s9094_s2 + $0x1148] ss:$16 sps:$4 sm:$0xff]  }
 0x1f9   :  { %3936 = vmatprep.subr.bf16.mxu0 %v6682_v47  ;;  %v6774_v47 = vld [vmem:[%s9094_s2 + $0x114c] ss:$16 sps:$4 sm:$0xff]  }
 0x1fb   :  { %4224 = vmatpush1.bf16.msra.mxu1 %v6683_v54  ;;  %v6775_v54 = vld [vmem:[%s9094_s2 + $0x1168] ss:$16 sps:$4 sm:$0xff]  }
 0x1fc   :  { %3937 = vmatpush1.bf16.msra.mxu0 %v6680_v52  ;;  %4225 = vmatprep.subr.bf16.mxu1 %v6691_v43  ;;  %v6777_v52 = vld [vmem:[%s9094_s2 + $0x116c] ss:$16 sps:$4 sm:$0xff]   ;;  %v6778_v43 = vld [vmem:[%s9094_s2 + $0x1188] ss:$16 sps:$4 sm:$0xff]  }
 0x1fd   :  { %3938 = vmatprep.subr.bf16.mxu0 %v6688_v55  ;;  %v6780_v55 = vld [vmem:[%s9094_s2 + $0x118c] ss:$16 sps:$4 sm:$0xff]  }
 0x1ff   :  { %4226 = vmatpush1.bf16.msra.mxu1 %v6689_v57  ;;  %v6781_v57 = vld [vmem:[%s9094_s2 + $0x11a8] ss:$16 sps:$4 sm:$0xff]  }
 0x200   :  { %3939 = vmatpush1.bf16.msra.mxu0 %v6686_v30  ;;  %4236 = vmatprep.subr.bf16.mxu1 %v6696_v58  ;;  %v6783_v30 = vld [vmem:[%s9094_s2 + $0x11ac] ss:$16 sps:$4 sm:$0xff]  }
 0x201   :  { %v6786_v58 = vld [vmem:[%s9094_s2 + $0x11cc] ss:$16 sps:$4 sm:$0xff]  }
 0x202   :  { %4228 = vmatmul.mubr.bf16.vlgmr.msra.gmra.mrb[4].mxu1 %v8209_v21  ;;  %v6705_v21 = vld [vmem:[%s9094_s2 + $0xe6c] ss:$16 sps:$4 sm:$0xff]  }
 0x203   :  { %3941 = vmatmul.mubr.bf16.vlgmr.msra.gmra.mrb[0].mxu0 %v8624_v59  ;;  %4237 = vmatpush1.bf16.msra.mxu1 %v6694_v36  ;;  %v6784_v36 = vld [vmem:[%s9094_s2 + $0x11c8] ss:$16 sps:$4 sm:$0xff]  }
 0x204   :  { %4268 = vmatprep.mubr.bf16.mxu1 %v8230_v46  ;;  %4238 = vmatprep.subr.bf16.mxu1 %v6699_v60  ;;  %v6703_v46 = vld [vmem:[%s9094_s2 + $0xe68] ss:$16 sps:$4 sm:$0xff]   ;;  %v6789_v60 = vld [vmem:[%s9094_s2 + $0x11ec] ss:$16 sps:$4 sm:$0xff]  }
 0x205   :  { %4391 = vmatprep.mubr.f32.mxu0 %v6902_v44 }
 0x207   :  { %4239 = vmatpush1.bf16.msra.mxu1 %v6697_v53  ;;  %v6787_v53 = vld [vmem:[%s9094_s2 + $0x11e8] ss:$16 sps:$4 sm:$0xff]  }
 0x208   :  { %4240 = vmatprep.subr.bf16.mxu1 %v6702_v61  ;;  %v617_v61 = vlaneseq }
 0x20b   :  { %4241 = vmatpush1.bf16.msra.mxu1 %v6700_v62  ;;  %v8821_v62 = vshrl.u32 %v617_v61, 7 }
 0x20c   :  { %4242 = vmatprep.subr.bf16.mxu1 %v6705_v21 }
 0x20d   :  { %v619_v21 = vsub.s32 0, %v8821_v62 }
 0x20f   :  { %4243 = vmatpush1.bf16.msra.mxu1 %v6703_v46  ;;  %v615_v46 = vld [vmem:[%s9096_s3] sm:$0xf] }
 0x210   :  { %4244 = vmatprep.subr.bf16.mxu1 %v6708_v39  ;;  %v623_v39 = vsub.s32 1, %v8821_v62 }
 0x213   :  { %4245 = vmatpush1.bf16.msra.mxu1 %v6706_v63  ;;  %v620_v63 = vrot.slane %v615_v46, %v619_v21 }
 0x214   :  { %4246 = vmatprep.subr.bf16.mxu1 %v6711_v0  ;;  %v624_v0 = vrot.slane %v615_v46, %v623_v39 }
 0x217   :  { %4247 = vmatpush1.bf16.msra.mxu1 %v6709_v1  ;;  %v3615_v1 = vadd.f32 %v7874_v49, %v620_v63  ;;  %v627_v49 = vsub.s32 2, %v8821_v62 }
 0x218   :  { %4248 = vmatprep.subr.bf16.mxu1 %v6714_v2 }
 0x21b   :  { %4249 = vmatpush1.bf16.msra.mxu1 %v6712_v3 }
 0x21c   :  { %4250 = vmatprep.subr.bf16.mxu1 %v6717_v4 }
 0x21f   :  { %4251 = vmatpush1.bf16.msra.mxu1 %v6715_v5 }
 0x220   :  { %4252 = vmatprep.subr.bf16.mxu1 %v6720_v8 }
 0x223   :  { %4253 = vmatpush1.bf16.msra.mxu1 %v6718_v9 }
 0x224   :  { %4254 = vmatprep.subr.bf16.mxu1 %v6723_v10 }
 0x227   :  { %4255 = vmatpush1.bf16.msra.mxu1 %v6721_v11 }
 0x228   :  { %4256 = vmatprep.subr.bf16.mxu1 %v6726_v12  ;;  %v4322_v12 = vld [vmem:[%s9097_s1] sm:$0x3] }
 0x22b   :  { %4257 = vmatpush1.bf16.msra.mxu1 %v6724_v14  ;;  %v628_v14 = vrot.slane %v615_v46, %v627_v49  ;;  %v6891_v49 = vld [vmem:[%s9099_s6 + $0x10] sm:$0xff]  }
 0x22c   :  { %4258 = vmatprep.subr.bf16.mxu1 %v6729_v15 }
 0x22f   :  { %4259 = vmatpush1.bf16.msra.mxu1 %v6727_v16 }
 0x230   :  { %4260 = vmatprep.subr.bf16.mxu1 %v6732_v17 }
 0x233   :  { %4261 = vmatpush1.bf16.msra.mxu1 %v6730_v20 }
 0x234   :  { %4262 = vmatprep.subr.bf16.mxu1 %v6735_v6 }
 0x237   :  { %4263 = vmatpush1.bf16.msra.mxu1 %v6733_v23 }
 0x238   :  { %4264 = vmatprep.subr.bf16.mxu1 %v6738_v18 }
 0x23b   :  { %4265 = vmatpush1.bf16.msra.mxu1 %v6736_v24 }
 0x23c   :  { %4266 = vmatprep.subr.bf16.mxu1 %v6741_v51  ;;  %v6792_v51 = vld [vmem:[%s9098_s4 + $0x4] ss:$8 sps:$4 sm:$0xff]  }
 0x23f   :  { %4267 = vmatpush1.bf16.msra.mxu1 %v6739_v27 }
 0x240   :  { %4277 = vmatprep.subr.bf16.mxu1 %v6744_v28  ;;  %v6790_v28 = vld [vmem:[%s9098_s4] ss:$8 sps:$4 sm:$0xff]  }
 0x242   :  { %4269 = vmatmul.mubr.bf16.vlgmr.msra.gmra.mrb[4].mxu1 %v8418_v26  ;;  %v6753_v26 = vld [vmem:[%s9094_s2 + $0x106c] ss:$16 sps:$4 sm:$0xff]  }
 0x243   :  { %4278 = vmatpush1.bf16.msra.mxu1 %v6742_v22  ;;  %4309 = vmatprep.mubr.bf16.mxu1 %v8439_v56  ;;  %v6751_v56 = vld [vmem:[%s9094_s2 + $0x1068] ss:$16 sps:$4 sm:$0xff]   ;;  %v6795_v22 = vld [vmem:[%s9098_s4 + $0x14] ss:$8 sps:$4 sm:$0xff]  }
 0x244   :  { %4279 = vmatprep.subr.bf16.mxu1 %v6747_v29  ;;  %v6793_v29 = vld [vmem:[%s9098_s4 + $0x10] ss:$8 sps:$4 sm:$0xff]  }
 0x247   :  { %4280 = vmatpush1.bf16.msra.mxu1 %v6745_v34  ;;  %v6798_v34 = vld [vmem:[%s9098_s4 + $0x24] ss:$8 sps:$4 sm:$0xff]  }
 0x248   :  { %4281 = vmatprep.subr.bf16.mxu1 %v6750_v31  ;;  %v6796_v31 = vld [vmem:[%s9098_s4 + $0x20] ss:$8 sps:$4 sm:$0xff]  }
 0x24b   :  { %4282 = vmatpush1.bf16.msra.mxu1 %v6748_v32  ;;  %v6801_v32 = vld [vmem:[%s9098_s4 + $0x34] ss:$8 sps:$4 sm:$0xff]  }
 0x24c   :  { %4283 = vmatprep.subr.bf16.mxu1 %v6753_v26  ;;  %v6799_v26 = vld [vmem:[%s9098_s4 + $0x30] ss:$8 sps:$4 sm:$0xff]  }
 0x24f   :  { %4284 = vmatpush1.bf16.msra.mxu1 %v6751_v56  ;;  %v6804_v56 = vld [vmem:[%s9098_s4 + $0x44] ss:$8 sps:$4 sm:$0xff]  }
 0x250   :  { %4285 = vmatprep.subr.bf16.mxu1 %v6756_v13  ;;  %v6802_v13 = vld [vmem:[%s9098_s4 + $0x40] ss:$8 sps:$4 sm:$0xff]  }
 0x253   :  { %4286 = vmatpush1.bf16.msra.mxu1 %v6754_v33  ;;  %v6807_v33 = vld [vmem:[%s9098_s4 + $0x54] ss:$8 sps:$4 sm:$0xff]  }
 0x254   :  { %4287 = vmatprep.subr.bf16.mxu1 %v6759_v19  ;;  %v6805_v19 = vld [vmem:[%s9098_s4 + $0x50] ss:$8 sps:$4 sm:$0xff]  }
 0x257   :  { %4288 = vmatpush1.bf16.msra.mxu1 %v6757_v37  ;;  %v6810_v37 = vld [vmem:[%s9098_s4 + $0x64] ss:$8 sps:$4 sm:$0xff]  }
 0x258   :  { %4289 = vmatprep.subr.bf16.mxu1 %v6762_v38  ;;  %v6808_v38 = vld [vmem:[%s9098_s4 + $0x60] ss:$8 sps:$4 sm:$0xff]  }
 0x25b   :  { %4290 = vmatpush1.bf16.msra.mxu1 %v6760_v7  ;;  %v6813_v7 = vld [vmem:[%s9098_s4 + $0x74] ss:$8 sps:$4 sm:$0xff]  }
 0x25c   :  { %4291 = vmatprep.subr.bf16.mxu1 %v6765_v40  ;;  %v6811_v40 = vld [vmem:[%s9098_s4 + $0x70] ss:$8 sps:$4 sm:$0xff]  }
 0x25f   :  { %4292 = vmatpush1.bf16.msra.mxu1 %v6763_v41  ;;  %v6816_v41 = vld [vmem:[%s9098_s4 + $0x84] ss:$8 sps:$4 sm:$0xff]  }
 0x260   :  { %4293 = vmatprep.subr.bf16.mxu1 %v6768_v42  ;;  %v6814_v42 = vld [vmem:[%s9098_s4 + $0x80] ss:$8 sps:$4 sm:$0xff]  }
 0x263   :  { %4294 = vmatpush1.bf16.msra.mxu1 %v6766_v45  ;;  %v6817_v45 = vld [vmem:[%s9098_s4 + $0x90] ss:$8 sps:$4 sm:$0xff]  }
 0x264   :  { %4295 = vmatprep.subr.bf16.mxu1 %v6771_v35  ;;  %v6822_v35 = vld [vmem:[%s9098_s4 + $0xa4] ss:$8 sps:$4 sm:$0xff]  }
 0x267   :  { %4296 = vmatpush1.bf16.msra.mxu1 %v6769_v25  ;;  %v6820_v25 = vld [vmem:[%s9098_s4 + $0xa0] ss:$8 sps:$4 sm:$0xff]  }
 0x268   :  { %4297 = vmatprep.subr.bf16.mxu1 %v6774_v47  ;;  %v6825_v47 = vld [vmem:[%s9098_s4 + $0xb4] ss:$8 sps:$4 sm:$0xff]  }
 0x26b   :  { %4298 = vmatpush1.bf16.msra.mxu1 %v6772_v48  ;;  %v6823_v48 = vld [vmem:[%s9098_s4 + $0xb0] ss:$8 sps:$4 sm:$0xff]  }
 0x26c   :  { %4299 = vmatprep.subr.bf16.mxu1 %v6777_v52  ;;  %v6828_v52 = vld [vmem:[%s9098_s4 + $0xc4] ss:$8 sps:$4 sm:$0xff]  }
 0x26f   :  { %4300 = vmatpush1.bf16.msra.mxu1 %v6775_v54  ;;  %v6826_v54 = vld [vmem:[%s9098_s4 + $0xc0] ss:$8 sps:$4 sm:$0xff]  }
 0x270   :  { %4301 = vmatprep.subr.bf16.mxu1 %v6780_v55  ;;  %v6831_v55 = vld [vmem:[%s9098_s4 + $0xd4] ss:$8 sps:$4 sm:$0xff]  }
 0x273   :  { %4302 = vmatpush1.bf16.msra.mxu1 %v6778_v43  ;;  %v6829_v43 = vld [vmem:[%s9098_s4 + $0xd0] ss:$8 sps:$4 sm:$0xff]  }
 0x274   :  { %4303 = vmatprep.subr.bf16.mxu1 %v6783_v30  ;;  %v6834_v30 = vld [vmem:[%s9098_s4 + $0xe4] ss:$8 sps:$4 sm:$0xff]  }
 0x277   :  { %4304 = vmatpush1.bf16.msra.mxu1 %v6781_v57  ;;  %v6832_v57 = vld [vmem:[%s9098_s4 + $0xe0] ss:$8 sps:$4 sm:$0xff]  }
 0x278   :  { %4305 = vmatprep.subr.bf16.mxu1 %v6786_v58  ;;  %v6837_v58 = vld [vmem:[%s9098_s4 + $0xf4] ss:$8 sps:$4 sm:$0xff]  }
 0x27b   :  { %4306 = vmatpush1.bf16.msra.mxu1 %v6784_v36  ;;  %v6835_v36 = vld [vmem:[%s9098_s4 + $0xf0] ss:$8 sps:$4 sm:$0xff]  }
 0x27c   :  { %4307 = vmatprep.subr.bf16.mxu1 %v6789_v60  ;;  %v6840_v60 = vld [vmem:[%s9098_s4 + $0x104] ss:$8 sps:$4 sm:$0xff]  }
 0x27f   :  { %4308 = vmatpush1.bf16.msra.mxu1 %v6787_v53 }
 0x282   :  { %4310 = vmatmul.mubr.bf16.vlgmr.msra.gmra.mrb[4].mxu1 %v8624_v59  ;;  %v3617_v59 = vadd.f32 %v7876_v50, %v624_v0  ;;  %v631_v50 = vsub.s32 3, %v8821_v62  ;;  %v6838_v0 = vld [vmem:[%s9098_s4 + $0x100] ss:$8 sps:$4 sm:$0xff]  }
 0x284   :  { %v632_v15 = vrot.slane %v615_v46, %v631_v50  ;;  %v6892_v50 = vld [vmem:[%s9099_s6 + $0x58] sm:$0xff]  }
 0x2d6   :  { %v3942_v2 = vpop.f32.mrb[0].mxu0 }
 0x2d7   :  { %v5836_v3 = vadd.f32 %v3942_v2, %v3615_v1  ;;  %v3944_v4 = vpop.f32.mrb[1].mxu0  ;;  %v6843_v1 = vld [vmem:[%s9098_s4 + $0x114] ss:$8 sps:$4 sm:$0xff]   ;;  %v6846_v2 = vld [vmem:[%s9098_s4 + $0x124] ss:$8 sps:$4 sm:$0xff]  }
 0x2d8   :  { %v5838_v5 = vadd.f32 %v3944_v4, %v3617_v59  ;;  %v3946_v8 = vpop.f32.mrb[2].mxu0  ;;  %v6841_v59 = vld [vmem:[%s9098_s4 + $0x110] ss:$8 sps:$4 sm:$0xff]   ;;  %v6887_v4 = vld [vmem:[%s9099_s6] sm:$0xff]  }
 0x2d9   :  { %v3947_v9 = vpop.f32.mrb[3].mxu0  ;;  %v4318_v11 = vmax.f32 %v5836_v3, 0.0  ;;  %v6886_v3 = vld [vmem:[%s9099_s6 + $0x40] sm:$0xff]   ;;  %v6888_v8 = vld [vmem:[%s9099_s6 + $0x48] sm:$0xff]  }
 0x2da   :  { %v4319_v10 = vmax.f32 %v5838_v5, 0.0  ;;  %v6844_v5 = vld [vmem:[%s9098_s4 + $0x120] ss:$8 sps:$4 sm:$0xff]   ;;  %5813 = vmatprep.subr.bf16.mxu1 %v6886_v3 }
 0x2db   :  { %5814 = vmatpush3.bf16.msra.mxu1 %v6887_v4  ;;  %v6889_v9 = vld [vmem:[%s9099_s6 + $0x8] sm:$0xff]  }
 0x2dc   :  { %4327 = vmatprep.subr.mxu0 %v4319_v10  ;;  %5815 = vmatprep.subr.bf16.mxu1 %v6888_v8  ;;  %v6890_v10 = vld [vmem:[%s9099_s6 + $0x50] sm:$0xff]  }
 0x2dd   :  { %4328 = vmatpush1.msra.mxu0 %v4318_v11  ;;  %v6849_v11 = vld [vmem:[%s9098_s4 + $0x134] ss:$8 sps:$4 sm:$0xff]  }
 0x2de   :  { %5730 = vmatmul.mubr.msk.f32.vlgmr.msra.gmra.mrb[4].mxu0 %vm4323_vm0, %v4322_v12 }
 0x2df   :  { %4462 = vmatprep.mubr.f32.mxu0 %v6902_v44  ;;  %v6819_v44 = vld [vmem:[%s9098_s4 + $0x94] ss:$8 sps:$4 sm:$0xff]   ;;  %5816 = vmatpush3.bf16.msra.mxu1 %v6889_v9 }
 0x2e0   :  { %5817 = vmatprep.subr.bf16.mxu1 %v6890_v10 }
 0x2e3   :  { %5818 = vmatpush3.bf16.msra.mxu1 %v6891_v49 }
 0x2e4   :  { %5819 = vmatprep.subr.bf16.mxu1 %v6892_v50 }
 0x355   :  { %v4311_v16 = vpop.f32.mrb[4].mxu1 }
 0x356   :  { %v5839_v17 = vadd.f32 %v4311_v16, %v628_v14  ;;  %v4313_v20 = vpop.f32.mrb[5].mxu1  ;;  %v6852_v14 = vld [vmem:[%s9098_s4 + $0x144] ss:$8 sps:$4 sm:$0xff]   ;;  %v6855_v16 = vld [vmem:[%s9098_s4 + $0x154] ss:$8 sps:$4 sm:$0xff]  }
 0x357   :  { %v5840_v6 = vadd.f32 %v4313_v20, %v632_v15  ;;  %v4315_v23 = vpop.f32.mrb[6].mxu1  ;;  %v6850_v15 = vld [vmem:[%s9098_s4 + $0x140] ss:$8 sps:$4 sm:$0xff]  }
 0x358   :  { %v4316_v18 = vpop.f32.mrb[7].mxu1  ;;  %v4320_v27 = vmax.f32 %v5839_v17, 0.0  ;;  %v6893_v17 = vld [vmem:[%s9099_s6 + $0x18] sm:$0xff]   ;;  %v6894_v20 = vld [vmem:[%s9099_s6 + $0x60] sm:$0xff]  }
 0x359   :  { %v4321_v24 = vmax.f32 %v5840_v6, 0.0  ;;  %5820 = vmatpush3.bf16.msra.mxu1 %v6893_v17  ;;  %v6895_v6 = vld [vmem:[%s9099_s6 + $0x20] sm:$0xff]   ;;  %v6853_v23 = vld [vmem:[%s9098_s4 + $0x150] ss:$8 sps:$4 sm:$0xff]   ;;  %v6896_v18 = vld [vmem:[%s9099_s6 + $0x68] sm:$0xff]  }
 0x35a   :  { %5821 = vmatprep.subr.bf16.mxu1 %v6894_v20 }
 0x35b   :  { %4398 = vmatprep.subr.mxu0 %v4321_v24  ;;  %v6858_v24 = vld [vmem:[%s9098_s4 + $0x164] ss:$8 sps:$4 sm:$0xff]  }
 0x35c   :  { %4399 = vmatpush1.msra.mxu0 %v4320_v27  ;;  %v6856_v27 = vld [vmem:[%s9098_s4 + $0x160] ss:$8 sps:$4 sm:$0xff]  }
 0x35d   :  { %5731 = vmatmul.mubr.msk.f32.vlgmr.msra.gmra.mrb[6].mxu0 %vm4323_vm0, %v4322_v12  ;;  %4869 = vmatprep.subr.bf16.mxu0 %v6792_v51  ;;  %v6847_v12 = vld [vmem:[%s9098_s4 + $0x130] ss:$8 sps:$4 sm:$0xff]   ;;  %v6897_v51 = vld [vmem:[%s9099_s6 + $0x28] sm:$0xff]  }
 0x35e   :  { %4870 = vmatpush1.bf16.msra.mxu0 %v6790_v28  ;;  %5822 = vmatpush3.bf16.msra.mxu1 %v6895_v6  ;;  %v6861_v28 = vld [vmem:[%s9098_s4 + $0x174] ss:$8 sps:$4 sm:$0xff]  }
 0x35f   :  { %4871 = vmatprep.subr.bf16.mxu0 %v6795_v22  ;;  %5823 = vmatprep.subr.bf16.mxu1 %v6896_v18  ;;  %v6859_v22 = vld [vmem:[%s9098_s4 + $0x170] ss:$8 sps:$4 sm:$0xff]  }
 0x362   :  { %4872 = vmatpush1.bf16.msra.mxu0 %v6793_v29  ;;  %5824 = vmatpush3.bf16.msra.mxu1 %v6897_v51  ;;  %v6864_v29 = vld [vmem:[%s9098_s4 + $0x184] ss:$8 sps:$4 sm:$0xff]  }
 0x363   :  { %4873 = vmatprep.subr.bf16.mxu0 %v6798_v34  ;;  %v6862_v34 = vld [vmem:[%s9098_s4 + $0x180] ss:$8 sps:$4 sm:$0xff]  }
 0x366   :  { %4874 = vmatpush1.bf16.msra.mxu0 %v6796_v31  ;;  %v6867_v31 = vld [vmem:[%s9098_s4 + $0x194] ss:$8 sps:$4 sm:$0xff]  }
 0x367   :  { %4875 = vmatprep.subr.bf16.mxu0 %v6801_v32  ;;  %v6865_v32 = vld [vmem:[%s9098_s4 + $0x190] ss:$8 sps:$4 sm:$0xff]  }
 0x36a   :  { %4876 = vmatpush1.bf16.msra.mxu0 %v6799_v26  ;;  %v6870_v26 = vld [vmem:[%s9098_s4 + $0x1a4] ss:$8 sps:$4 sm:$0xff]  }
 0x36b   :  { %4877 = vmatprep.subr.bf16.mxu0 %v6804_v56  ;;  %v6868_v56 = vld [vmem:[%s9098_s4 + $0x1a0] ss:$8 sps:$4 sm:$0xff]  }
 0x36e   :  { %4878 = vmatpush1.bf16.msra.mxu0 %v6802_v13  ;;  %v6873_v13 = vld [vmem:[%s9098_s4 + $0x1b4] ss:$8 sps:$4 sm:$0xff]  }
 0x36f   :  { %4879 = vmatprep.subr.bf16.mxu0 %v6807_v33  ;;  %v6871_v33 = vld [vmem:[%s9098_s4 + $0x1b0] ss:$8 sps:$4 sm:$0xff]  }
 0x372   :  { %4880 = vmatpush1.bf16.msra.mxu0 %v6805_v19  ;;  %v6876_v19 = vld [vmem:[%s9098_s4 + $0x1c4] ss:$8 sps:$4 sm:$0xff]  }
 0x373   :  { %4881 = vmatprep.subr.bf16.mxu0 %v6810_v37  ;;  %v6874_v37 = vld [vmem:[%s9098_s4 + $0x1c0] ss:$8 sps:$4 sm:$0xff]  }
 0x376   :  { %4882 = vmatpush1.bf16.msra.mxu0 %v6808_v38  ;;  %v6879_v38 = vld [vmem:[%s9098_s4 + $0x1d4] ss:$8 sps:$4 sm:$0xff]  }
 0x377   :  { %4883 = vmatprep.subr.bf16.mxu0 %v6813_v7  ;;  %v6877_v7 = vld [vmem:[%s9098_s4 + $0x1d0] ss:$8 sps:$4 sm:$0xff]  }
 0x37a   :  { %4884 = vmatpush1.bf16.msra.mxu0 %v6811_v40  ;;  %v6882_v40 = vld [vmem:[%s9098_s4 + $0x1e4] ss:$8 sps:$4 sm:$0xff]  }
 0x37b   :  { %4885 = vmatprep.subr.bf16.mxu0 %v6816_v41  ;;  %v6880_v41 = vld [vmem:[%s9098_s4 + $0x1e0] ss:$8 sps:$4 sm:$0xff]  }
 0x37e   :  { %4886 = vmatpush1.bf16.msra.mxu0 %v6814_v42  ;;  %v6885_v42 = vld [vmem:[%s9098_s4 + $0x1f4] ss:$8 sps:$4 sm:$0xff]  }
 0x37f   :  { %4887 = vmatprep.subr.bf16.mxu0 %v6819_v44  ;;  %v6883_v44 = vld [vmem:[%s9098_s4 + $0x1f0] ss:$8 sps:$4 sm:$0xff]  }
 0x382   :  { %4888 = vmatpush1.bf16.msra.mxu0 %v6817_v45 }
 0x383   :  { %4889 = vmatprep.subr.bf16.mxu0 %v6822_v35 }
 0x386   :  { %4890 = vmatpush1.bf16.msra.mxu0 %v6820_v25 }
 0x387   :  { %4891 = vmatprep.subr.bf16.mxu0 %v6825_v47 }
 0x38a   :  { %4892 = vmatpush1.bf16.msra.mxu0 %v6823_v48  ;;  %v6898_v48 = vld [vmem:[%s9099_s6 + $0x70] sm:$0xff]  }
 0x38b   :  { %4893 = vmatprep.subr.bf16.mxu0 %v6828_v52  ;;  %v6899_v52 = vld [vmem:[%s9099_s6 + $0x30] sm:$0xff]   ;;  %5825 = vmatprep.subr.bf16.mxu1 %v6898_v48 }
 0x38c   :  { %5826 = vmatpush3.bf16.msra.mxu1 %v6899_v52 }
 0x38e   :  { %4894 = vmatpush1.bf16.msra.mxu0 %v6826_v54  ;;  %v6900_v54 = vld [vmem:[%s9099_s6 + $0x78] sm:$0xff]  }
 0x38f   :  { %4895 = vmatprep.subr.bf16.mxu0 %v6831_v55  ;;  %v6901_v55 = vld [vmem:[%s9099_s6 + $0x38] sm:$0xff]   ;;  %5827 = vmatprep.subr.bf16.mxu1 %v6900_v54 }
 0x390   :  { %5828 = vmatpush3.bf16.msra.mxu1 %v6901_v55 }
 0x392   :  { %4896 = vmatpush1.bf16.msra.mxu0 %v6829_v43  ;;  %v4537_v43 = vld [vmem:[%s9100_s5] sm:$0x3] }
 0x393   :  { %4897 = vmatprep.subr.bf16.mxu0 %v6834_v30  ;;  %v4542_v30 = vrot.slane %v4537_v43, %v619_v21  ;;  %v5796_v21 = vld [vmem:[%s9101_s7] ss:$0 sm:$0xff] }
 0x396   :  { %4898 = vmatpush1.bf16.msra.mxu0 %v6832_v57  ;;  %v4546_v57 = vrot.slane %v4537_v43, %v623_v39 }
 0x397   :  { %4899 = vmatprep.subr.bf16.mxu0 %v6837_v58 }
 0x39a   :  { %4900 = vmatpush1.bf16.msra.mxu0 %v6835_v36 }
 0x39b   :  { %4910 = vmatprep.subr.bf16.mxu0 %v6840_v60 }
 0x3b1   :  { %v4393_v53 = vpop.f32.mrb[4].mxu0 }
 0x3b2   :  { %v4469_v61 = vpack.c.bf16 %v4393_v53, %v4393_v53  ;;  %v4395_v46 = vpop.f32.mrb[5].mxu0 }
 0x3b3   :  { %v4470_v63 = vpack.c.bf16 %v4395_v46, %v4395_v46 }
 0x3b5   :  { %4901 = vmatprep.mubr.bf16.mxu0 %v4470_v63 }
 0x3b6   :  { %4902 = vmatmul.mubr.bf16.vlgmr.msra.gmra.mrb[8].mxu0 %v4469_v61 }
 0x3b7   :  { %4911 = vmatpush1.bf16.msra.mxu0 %v6838_v0 }
 0x3b8   :  { %4912 = vmatprep.subr.bf16.mxu0 %v6843_v1 }
 0x3bb   :  { %4913 = vmatpush1.bf16.msra.mxu0 %v6841_v59 }
 0x3bc   :  { %4914 = vmatprep.subr.bf16.mxu0 %v6846_v2 }
 0x3bf   :  { %4915 = vmatpush1.bf16.msra.mxu0 %v6844_v5 }
 0x3c0   :  { %4916 = vmatprep.subr.bf16.mxu0 %v6849_v11 }
 0x3c3   :  { %4917 = vmatpush1.bf16.msra.mxu0 %v6847_v12 }
 0x3c4   :  { %4918 = vmatprep.subr.bf16.mxu0 %v6852_v14 }
 0x3c7   :  { %4919 = vmatpush1.bf16.msra.mxu0 %v6850_v15 }
 0x3c8   :  { %4920 = vmatprep.subr.bf16.mxu0 %v6855_v16 }
 0x3cb   :  { %4921 = vmatpush1.bf16.msra.mxu0 %v6853_v23 }
 0x3cc   :  { %4922 = vmatprep.subr.bf16.mxu0 %v6858_v24 }
 0x3cf   :  { %4923 = vmatpush1.bf16.msra.mxu0 %v6856_v27 }
 0x3d0   :  { %4924 = vmatprep.subr.bf16.mxu0 %v6861_v28 }
 0x3d3   :  { %4925 = vmatpush1.bf16.msra.mxu0 %v6859_v22 }
 0x3d4   :  { %4926 = vmatprep.subr.bf16.mxu0 %v6864_v29 }
 0x3d7   :  { %4927 = vmatpush1.bf16.msra.mxu0 %v6862_v34 }
 0x3d8   :  { %4928 = vmatprep.subr.bf16.mxu0 %v6867_v31 }
 0x3db   :  { %4929 = vmatpush1.bf16.msra.mxu0 %v6865_v32 }
 0x3dc   :  { %4930 = vmatprep.subr.bf16.mxu0 %v6870_v26 }
 0x3df   :  { %4931 = vmatpush1.bf16.msra.mxu0 %v6868_v56 }
 0x3e0   :  { %4932 = vmatprep.subr.bf16.mxu0 %v6873_v13 }
 0x3e3   :  { %4933 = vmatpush1.bf16.msra.mxu0 %v6871_v33 }
 0x3e4   :  { %4934 = vmatprep.subr.bf16.mxu0 %v6876_v19 }
 0x3e7   :  { %4935 = vmatpush1.bf16.msra.mxu0 %v6874_v37 }
 0x3e8   :  { %4936 = vmatprep.subr.bf16.mxu0 %v6879_v38 }
 0x3eb   :  { %4937 = vmatpush1.bf16.msra.mxu0 %v6877_v7 }
 0x3ec   :  { %4938 = vmatprep.subr.bf16.mxu0 %v6882_v40 }
 0x3ef   :  { %4939 = vmatpush1.bf16.msra.mxu0 %v6880_v41 }
 0x3f0   :  { %4940 = vmatprep.subr.bf16.mxu0 %v6885_v42 }
 0x3f3   :  { %4941 = vmatpush1.bf16.msra.mxu0 %v6883_v44 }
 0x430   :  { %v4464_v45 = vpop.f32.mrb[6].mxu0 }
 0x431   :  { %v4466_v35 = vpop.f32.mrb[7].mxu0  ;;  %v4471_v47 = vpack.c.bf16 %v4464_v45, %v4464_v45 }
 0x432   :  { %v4472_v25 = vpack.c.bf16 %v4466_v35, %v4466_v35 }
 0x434   :  { %4942 = vmatprep.mubr.bf16.mxu0 %v4472_v25 }
 0x435   :  { %4943 = vmatmul.mubr.bf16.vlgmr.msra.gmra.mrb[8].mxu0 %v4471_v47 }
 0x508   :  { %v4944_v58 = vpop.f32.mrb[8].mxu0 }
 0x509   :  { %v5841_v36 = vadd.f32 %v4944_v58, %v4542_v30  ;;  %v4946_v60 = vpop.f32.mrb[9].mxu0 }
 0x50a   :  { %v5842_v53 = vadd.f32 %v4946_v60, %v4546_v57  ;;  %v4948_v61 = vpop.f32.mrb[10].mxu0 }
 0x50b   :  { %v4951_v46 = vmax.f32 %v5841_v36, 0.0  ;;  %v4949_v63 = vpop.f32.mrb[11].mxu0 }
 0x50c   :  { %v4952_v0 = vmax.f32 %v5842_v53, 0.0 }
 0x50d   :  { %v4953_v59 = vpack.c.bf16 %v4951_v46, %v4951_v46 }
 0x50e   :  { %v4954_v1 = vpack.c.bf16 %v4952_v0, %v4952_v0 }
 0x510   :  { %5122 = vmatprep.mubr.bf16.mxu1 %v4954_v1 }
 0x511   :  { %5123 = vmatmul.mubr.bf16.vlgmr.msra.gmra.mrb[8].mxu1 %v4953_v59 }
 0x5e4   :  { %v5829_v2 = vpop.f32.mrb[8].mxu1 }
 0x5e5   :  { %v5830_v3 = vpop.f32.mrb[9].mxu1 }
 0x5e6   :  { %v5831_v62 = vadd.f32 %v5830_v3, %v5829_v2  ;;  %v5832_v39 = vpop.f32.mrb[10].mxu1 }
 0x5e7   :  { %v5833_v4 = vpop.f32.mrb[11].mxu1 }
 0x5e8   :  { %v5125_v5 = vadd.f32 %v5831_v62, %v5796_v21 }
 0x5ea   :  { %5131 = vst.msk [vmem:[%s9102_s8] sm:$0x3] %vm5130_vm1, %v5125_v5 }

</bundles_post_ra>
